<compile_context>
chip_gen: v7x
topology: tpu7x:2x2x1
jax: 0.10.0
libtpu: 0.0.40
codegen_flags: <defaults>
</compile_context>

<pallas_src>
import functools
import numpy as np
import jax
import jax.numpy as jnp
from jax import lax
from jax.experimental import pallas as pl
from jax.experimental.pallas import tpu as pltpu

WINDOW_SIZE = 5
SIGMA = 1.5
PAD = WINDOW_SIZE // 2
C1 = (0.01 * 1.0) ** 2
C2 = (0.03 * 1.0) ** 2
NUM_FIELDS = 5  # fa, mri, fa*fa, mri*mri, fa*mri


def _gaussian_taps(size=WINDOW_SIZE, sigma=SIGMA):
    """Normalized 1-D Gaussian taps (the 5x5x5 window is exactly separable)."""
    coords = np.arange(size, dtype=np.float64) - (size - 1) / 2.0
    g = np.exp(-(coords ** 2) / (2.0 * sigma ** 2))
    return (g / g.sum()).astype(np.float32)


def _band_matrix(n, taps):
    """(n, n) banded-Toeplitz matrix for a zero-padded 5-tap 1-D blur.

    B[i, j] = g[j - i + PAD] for |i - j| <= PAD, else 0.  g is symmetric, so
    `x_row @ B` blurs along rows and `B @ x_col` blurs along columns, with the
    conv3d `padding=2` zero boundary built into the band.
    """
    b = np.zeros((n, n), dtype=np.float32)
    for i in range(n):
        for k in range(WINDOW_SIZE):
            j = i + k - PAD
            if 0 <= j < n:
                b[i, j] = taps[k]
    return b


def _ssim3d_kernel(bhw_ref, bd_ref, fa_ref, mri_ref, o_ref, *, d):
    fa = fa_ref[0]                      # (D, HW)  lane-dense (HW multiple of 128 here)
    mri = mri_ref[0]                    # (D, HW)

    # Five fields needing the identical blur, stacked along sublanes so each blur
    # stage is a single matmul for all of them.  Pieces are D (=16) rows -> the
    # concatenation is tile-aligned.
    stack = jnp.concatenate([fa, mri, fa * fa, mri * mri, fa * mri], axis=0)  # (5D, HW)

    # (H,W) blur: ONE MXU matmul, K = N = HW (256).  Zero-padding boundary is baked
    # into the banded kron operator, so no padded planes/scratch are needed.
    s = jnp.dot(stack, bhw_ref[...],
                preferred_element_type=jnp.float32,
                precision=lax.Precision.HIGHEST)                              # (5D, HW)

    # D blur: ONE block-diagonal banded matmul over the stack axis.  The block
    # structure keeps fields from leaking into each other and the band encodes
    # the zero-padded D boundary.
    s = jnp.dot(bd_ref[...], s,
                preferred_element_type=jnp.float32,
                precision=lax.Precision.HIGHEST)                              # (5D, HW)

    # Field extraction: static sublane slices at multiples of D (tile-aligned for
    # D % 8 == 0; still correct otherwise, just a small relayout).
    mu_fa = s[0 * d:1 * d]
    mu_mri = s[1 * d:2 * d]
    e_fafa = s[2 * d:3 * d]
    e_mrimri = s[3 * d:4 * d]
    e_famri = s[4 * d:5 * d]

    sigma_fa_sq = e_fafa - mu_fa * mu_fa
    sigma_mri_sq = e_mrimri - mu_mri * mu_mri
    sigma_famri = e_famri - mu_fa * mu_mri

    num = (2.0 * mu_fa * mu_mri + C1) * (2.0 * sigma_famri + C2)
    den = (mu_fa * mu_fa + mu_mri * mu_mri + C1) * (sigma_fa_sq + sigma_mri_sq + C2)
    ssim_map = num / den                                                      # (D, HW)

    # Per-volume, lane-dense partial sum: one reduction pass, unmasked (1, HW)
    # store.  The final `1 - mean` happens in the wrapper, so the batch grid axis
    # stays "parallel" with no resident accumulator.
    o_ref[0] = jnp.sum(ssim_map, axis=0, keepdims=True)                       # (1, HW)


def ssim3d_pallas(fa_map, mri_map):
    """fa_map, mri_map: (N, 1, D, H, W) float32.  Returns scalar 1 - mean(ssim_map)."""
    assert fa_map.shape == mri_map.shape
    N, C, D, H, W = fa_map.shape
    assert C == 1, "SSIM3D module is built with channels=1 / groups=1"
    HW = H * W
    # TODO(synk): for large volumes (e.g. H = W = 128, where the fused (HW,HW)
    # operator would be huge), switch to separate (H,H)/(W,W) band matmuls plus a
    # halo-tiled D grid axis; lanes are naturally dense there (W >= 128).
    assert HW <= 4096, "fused (HW,HW) blur operator is intended for small volumes"

    # Reshape in HBM (free): lane axis becomes H*W -> fully lane-dense vregs.
    fa = fa_map.reshape(N, D, HW).astype(jnp.float32)
    mri = mri_map.reshape(N, D, HW).astype(jnp.float32)

    taps = _gaussian_taps()
    # Fused (H,W) blur operator: kron of the two 1-D band matrices (symmetric).
    b_hw = jnp.asarray(np.kron(_band_matrix(H, taps), _band_matrix(W, taps)))  # (HW, HW)
    # Block-diagonal D-blur operator over the 5-field stack.
    fd = NUM_FIELDS * D
    bd0 = _band_matrix(D, taps)
    b_d_np = np.zeros((fd, fd), dtype=np.float32)
    for f in range(NUM_FIELDS):
        b_d_np[f * D:(f + 1) * D, f * D:(f + 1) * D] = bd0
    b_d = jnp.asarray(b_d_np)                                                  # (5D, 5D)

    kernel = functools.partial(_ssim3d_kernel, d=D)

    # Per-step VMEM footprint (double-buffered inputs + band matrices + temps),
    # capped generation-aware with headroom instead of grabbing the full VMEM.
    step_bytes = (2 * 2 * D * HW            # fa/mri blocks (double-buffered)
                  + 2 * (HW * HW + fd * fd)  # band matrices (double-buffered)
                  + 4 * fd * HW              # stack + two matmul results + slack
                  + 8 * D * HW) * 4          # pointwise temporaries
    try:
        vmem_cap = pltpu.get_tpu_info().vmem_capacity_bytes
    except Exception:
        vmem_cap = 64 * 1024 * 1024
    vmem_limit = int(min(max(2 * step_bytes, 16 * 1024 * 1024), 0.7 * vmem_cap))

    partial = pl.pallas_call(
        kernel,
        out_shape=jax.ShapeDtypeStruct((N, 1, HW), jnp.float32),
        grid_spec=pltpu.PrefetchScalarGridSpec(
            num_scalar_prefetch=0,
            grid=(N,),
            in_specs=[
                pl.BlockSpec((HW, HW), lambda n: (0, 0)),     # fused (H,W) band op
                pl.BlockSpec((fd, fd), lambda n: (0, 0)),     # block-diag D band op
                pl.BlockSpec((1, D, HW), lambda n: (n, 0, 0)),
                pl.BlockSpec((1, D, HW), lambda n: (n, 0, 0)),
            ],
            out_specs=pl.BlockSpec((1, 1, HW), lambda n: (n, 0, 0)),
        ),
        compiler_params=pltpu.CompilerParams(
            dimension_semantics=("parallel",),   # per-n outputs -> megacore safe
            vmem_limit_bytes=vmem_limit,
        ),
    )(b_hw, b_d, fa, mri)                                                       # (N,1,HW)

    total = N * D * HW
    return 1.0 - jnp.sum(partial) / total


def ssim3d_reference(fa_map, mri_map):
    """Pure-JAX reference mirroring the PyTorch module (direct 5x5x5 conv3d)."""
    size, sigma = WINDOW_SIZE, SIGMA
    coords = jnp.arange(size, dtype=jnp.float32) - (size - 1) / 2.0
    zz, yy, xx = jnp.meshgrid(coords, coords, coords, indexing="ij")
    kern = jnp.exp(-(zz ** 2 + yy ** 2 + xx ** 2) / (2.0 * sigma ** 2))
    kern = kern / kern.sum()
    w = kern.reshape(1, 1, size, size, size)

    def conv(x):
        return lax.conv_general_dilated(
            x, w, window_strides=(1, 1, 1),
            padding=[(PAD, PAD)] * 3,
            dimension_numbers=("NCDHW", "OIDHW", "NCDHW"),
            precision=lax.Precision.HIGHEST)

    mu_fa = conv(fa_map)
    mu_mri = conv(mri_map)
    sigma_fa_sq = conv(fa_map * fa_map) - mu_fa ** 2
    sigma_mri_sq = conv(mri_map * mri_map) - mu_mri ** 2
    sigma_famri = conv(fa_map * mri_map) - mu_fa * mu_mri
    ssim_map = ((2 * mu_fa * mu_mri + C1) * (2 * sigma_famri + C2)
                / ((mu_fa ** 2 + mu_mri ** 2 + C1) * (sigma_fa_sq + sigma_mri_sq + C2)))
    return 1.0 - ssim_map.mean()


if __name__ == "__main__":
    key = jax.random.PRNGKey(0)
    k1, k2 = jax.random.split(key)
    N, C, D, H, W = 2, 1, 16, 16, 16
    fa_map = jax.random.uniform(k1, (N, C, D, H, W), dtype=jnp.float32)
    mri_map = jax.random.uniform(k2, (N, C, D, H, W), dtype=jnp.float32)

    out = jax.block_until_ready(ssim3d_pallas(fa_map, mri_map))
    ref = jax.block_until_ready(ssim3d_reference(fa_map, mri_map))
    np.testing.assert_allclose(np.asarray(out), np.asarray(ref), rtol=1e-3, atol=1e-3)
    print("KERNEL_OK")
</pallas_src>

<mosaic_0001>
module attributes {stable_mosaic.version = 11 : i64} {
  func.func @_ssim3d_kernel(%arg0: i32, %arg1: memref<256x256xf32, #tpu.memory_space<vmem>>, %arg2: memref<80x80xf32, #tpu.memory_space<vmem>>, %arg3: memref<1x16x256xf32, #tpu.memory_space<vmem>>, %arg4: memref<1x16x256xf32, #tpu.memory_space<vmem>>, %arg5: memref<1x1x256xf32, #tpu.memory_space<vmem>>) attributes {dimension_semantics = [#tpu.dimension_semantics<parallel>], iteration_bounds = array<i64: 2>, scalar_prefetch = 0 : i64, scratch_operands = 0 : i64, tpu.core_type = #tpu.core_type<tc>, window_params = [{pipeline_mode = #tpu.pipeline_mode<synchronous>, transform_indices = @transform_0, window_bounds = array<i64: 256, 256>}, {pipeline_mode = #tpu.pipeline_mode<synchronous>, transform_indices = @transform_1, window_bounds = array<i64: 80, 80>}, {transform_indices = @transform_2, window_bounds = array<i64: 1, 16, 256>}, {transform_indices = @transform_3, window_bounds = array<i64: 1, 16, 256>}, {transform_indices = @transform_4, window_bounds = array<i64: 1, 1, 256>}]} {
    %c0 = arith.constant 0 : index
    %c0_0 = arith.constant 0 : index
    %c0_1 = arith.constant 0 : index
    %0 = vector.load %arg3[%c0, %c0_0, %c0_1] : memref<1x16x256xf32, #tpu.memory_space<vmem>>, vector<1x16x256xf32>
    %1 = vector.shape_cast %0 : vector<1x16x256xf32> to vector<16x256xf32>
    %c0_2 = arith.constant 0 : index
    %c0_3 = arith.constant 0 : index
    %c0_4 = arith.constant 0 : index
    %2 = vector.load %arg4[%c0_2, %c0_3, %c0_4] : memref<1x16x256xf32, #tpu.memory_space<vmem>>, vector<1x16x256xf32>
    %3 = vector.shape_cast %2 : vector<1x16x256xf32> to vector<16x256xf32>
    %4 = arith.mulf %1, %1 : vector<16x256xf32>
    %5 = arith.mulf %3, %3 : vector<16x256xf32>
    %6 = arith.mulf %1, %3 : vector<16x256xf32>
    %7 = tpu.concatenate %1, %3, %4, %5, %6 in 0 : vector<16x256xf32>, vector<16x256xf32>, vector<16x256xf32>, vector<16x256xf32>, vector<16x256xf32> -> vector<80x256xf32>
    %c0_5 = arith.constant 0 : index
    %c0_6 = arith.constant 0 : index
    %8 = vector.load %arg1[%c0_5, %c0_6] : memref<256x256xf32, #tpu.memory_space<vmem>>, vector<256x256xf32>
    %cst = arith.constant dense<0.000000e+00> : vector<80x256xf32>
    %9 = tpu.matmul %7, %8, %cst {dimension_numbers = #tpu.dot_dimension_numbers<[1], [0], [0], [1], [0, 0, 1, 1], [], []>, precision = #tpu.contract_precision<fp32>} : vector<80x256xf32>, vector<256x256xf32>, vector<80x256xf32> -> vector<80x256xf32>
    %c0_7 = arith.constant 0 : index
    %c0_8 = arith.constant 0 : index
    %10 = vector.load %arg2[%c0_7, %c0_8] : memref<80x80xf32, #tpu.memory_space<vmem>>, vector<80x80xf32>
    %cst_9 = arith.constant dense<0.000000e+00> : vector<80x256xf32>
    %11 = tpu.matmul %10, %9, %cst_9 {dimension_numbers = #tpu.dot_dimension_numbers<[1], [0], [0], [1], [0, 0, 1, 1], [], []>, precision = #tpu.contract_precision<fp32>} : vector<80x80xf32>, vector<80x256xf32>, vector<80x256xf32> -> vector<80x256xf32>
    %12 = vector.extract_strided_slice %11 {offsets = [0, 0], sizes = [16, 256], strides = [1, 1]} : vector<80x256xf32> to vector<16x256xf32>
    %13 = vector.extract_strided_slice %11 {offsets = [16, 0], sizes = [16, 256], strides = [1, 1]} : vector<80x256xf32> to vector<16x256xf32>
    %14 = vector.extract_strided_slice %11 {offsets = [32, 0], sizes = [16, 256], strides = [1, 1]} : vector<80x256xf32> to vector<16x256xf32>
    %15 = vector.extract_strided_slice %11 {offsets = [48, 0], sizes = [16, 256], strides = [1, 1]} : vector<80x256xf32> to vector<16x256xf32>
    %16 = vector.extract_strided_slice %11 {offsets = [64, 0], sizes = [16, 256], strides = [1, 1]} : vector<80x256xf32> to vector<16x256xf32>
    %17 = arith.mulf %12, %12 : vector<16x256xf32>
    %18 = arith.subf %14, %17 : vector<16x256xf32>
    %19 = arith.mulf %13, %13 : vector<16x256xf32>
    %20 = arith.subf %15, %19 : vector<16x256xf32>
    %21 = arith.mulf %12, %13 : vector<16x256xf32>
    %22 = arith.subf %16, %21 : vector<16x256xf32>
    %cst_10 = arith.constant 2.000000e+00 : f32
    %23 = vector.broadcast %cst_10 : f32 to vector<16x256xf32>
    %24 = arith.mulf %23, %12 : vector<16x256xf32>
    %25 = arith.mulf %24, %13 : vector<16x256xf32>
    %cst_11 = arith.constant 9.99999974E-5 : f32
    %26 = vector.broadcast %cst_11 : f32 to vector<16x256xf32>
    %27 = arith.addf %25, %26 : vector<16x256xf32>
    %cst_12 = arith.constant 2.000000e+00 : f32
    %28 = vector.broadcast %cst_12 : f32 to vector<16x256xf32>
    %29 = arith.mulf %28, %22 : vector<16x256xf32>
    %cst_13 = arith.constant 8.99999984E-4 : f32
    %30 = vector.broadcast %cst_13 : f32 to vector<16x256xf32>
    %31 = arith.addf %29, %30 : vector<16x256xf32>
    %32 = arith.mulf %27, %31 : vector<16x256xf32>
    %33 = arith.mulf %12, %12 : vector<16x256xf32>
    %34 = arith.mulf %13, %13 : vector<16x256xf32>
    %35 = arith.addf %33, %34 : vector<16x256xf32>
    %cst_14 = arith.constant 9.99999974E-5 : f32
    %36 = vector.broadcast %cst_14 : f32 to vector<16x256xf32>
    %37 = arith.addf %35, %36 : vector<16x256xf32>
    %38 = arith.addf %18, %20 : vector<16x256xf32>
    %cst_15 = arith.constant 8.99999984E-4 : f32
    %39 = vector.broadcast %cst_15 : f32 to vector<16x256xf32>
    %40 = arith.addf %38, %39 : vector<16x256xf32>
    %41 = arith.mulf %37, %40 : vector<16x256xf32>
    %42 = arith.divf %32, %41 : vector<16x256xf32>
    %cst_16 = arith.constant dense<0.000000e+00> : vector<256xf32>
    %43 = vector.multi_reduction <add>, %42, %cst_16 [0] : vector<16x256xf32> to vector<256xf32>
    %44 = vector.shape_cast %43 : vector<256xf32> to vector<1x256xf32>
    %c0_17 = arith.constant 0 : index
    %c0_18 = arith.constant 0 : index
    %c0_19 = arith.constant 0 : index
    %45 = vector.load %arg5[%c0_17, %c0_18, %c0_19] : memref<1x1x256xf32, #tpu.memory_space<vmem>>, vector<1x1x256xf32>
    %46 = vector.shape_cast %45 : vector<1x1x256xf32> to vector<1x256xf32>
    %47 = vector.shape_cast %44 : vector<1x256xf32> to vector<1x1x256xf32>
    tpu.vector_store %arg5[%c0_17, %c0_18, %c0_19], %47 {strides = array<i32>} : memref<1x1x256xf32, #tpu.memory_space<vmem>>, vector<1x1x256xf32>,
    return
  }
  func.func @transform_0(%arg0: i32) -> (i32, i32) {
    %c0_i32 = arith.constant 0 : i32
    %c0_i32_0 = arith.constant 0 : i32
    %c0_i32_1 = arith.constant 0 : i32
    return %c0_i32, %c0_i32_0 : i32, i32
  }
  func.func @transform_1(%arg0: i32) -> (i32, i32) {
    %c0_i32 = arith.constant 0 : i32
    %c0_i32_0 = arith.constant 0 : i32
    %c0_i32_1 = arith.constant 0 : i32
    return %c0_i32, %c0_i32_0 : i32, i32
  }
  func.func @transform_2(%arg0: i32) -> (i32, i32, i32) {
    %c0_i32 = arith.constant 0 : i32
    %c0_i32_0 = arith.constant 0 : i32
    %c0_i32_1 = arith.constant 0 : i32
    return %arg0, %c0_i32, %c0_i32_0 : i32, i32, i32
  }
  func.func @transform_3(%arg0: i32) -> (i32, i32, i32) {
    %c0_i32 = arith.constant 0 : i32
    %c0_i32_0 = arith.constant 0 : i32
    %c0_i32_1 = arith.constant 0 : i32
    return %arg0, %c0_i32, %c0_i32_0 : i32, i32, i32
  }
  func.func @transform_4(%arg0: i32) -> (i32, i32, i32) {
    %c0_i32 = arith.constant 0 : i32
    %c0_i32_0 = arith.constant 0 : i32
    %c0_i32_1 = arith.constant 0 : i32
    return %arg0, %c0_i32, %c0_i32_0 : i32, i32, i32
  }
}

</mosaic_0001>

<bundles_post_ra>
// kernel: tpu_custom_call.1
= control target key start
LH: loop header
LB: loop body
LE: loop exit
PB: predicated region body
PF: predicated region fallthrough
CT: control target
= control target key end

     0   :  { %s7114_s0 = inlined_call_operand.hbm [shape: f32[256,256], index: 0, kind: input, shape index: {}]   ;;  %s7115_s1 = inlined_call_operand.hbm [shape: f32[80,80], index: 1, kind: input, shape index: {}]   ;;  %s7116_s2 = inlined_call_operand.hbm [shape: f32[2,16,256], index: 2, kind: input, shape index: {}]   ;;  %s7117_s3 = inlined_call_operand.hbm [shape: f32[2,16,256], index: 3, kind: input, shape index: {}]   ;;  %s7118_s4 = inlined_call_operand.hbm [shape: f32[2,1,256], index: 4, kind: output, shape index: {}]  }
   0x1   :  { %7452 = sst [smem:[#allocation152_spill]] %s7114_s0 }
   0x2   :  { %7453 = sst [smem:[#allocation153_spill]] %s7116_s2 }
   0x3   :  { %9 = vsyncpa [#allocation3], 0 }
   0x4   :  { %10 = vsyncpa [#allocation6], 0 }
   0x5   :  { %11 = vsyncpa [#allocation4], 0 }
   0x6   :  { %13 = vsyncpa [#allocation4 + $0x1], 0  ;;  %s4667_s15 = smov 0   ;;  %s4669_s16 = smov 0  }
   0x7   :  { %s4671_s17 = smov 0   ;;  %s4673_s18 = smov 0  }
   0x8 LB: > { %s4688_s19 = sadd.s32 4294967295, %s4629_s18   ;;  %s3624_s20 = sadd.s32 4294967294, %s4629_s18   ;;  %s4629_s18 = sphi %s4673_s18, %s8087_s18   ;;  %s4625_s17 = sphi %s4671_s17, %s8086_s17   ;;  %s4621_s16 = sphi %s4669_s16, %s8085_s16   ;;  %s4617_s15 = sphi %s4667_s15, %s8084_s15  }
   0x9   : > { %s4692_s21 = sadd.s32 1, %s4629_s18   ;;  %s68_s22 = sadd.s32 1, %s4625_s17 }
   0xa   : > { %s65_s23 = ssub.s32 %s4629_s18, %s4692_s21  ;;  %p75_p0 = scmp.ne.s32.totalorder %s4625_s17, %s4621_s16 }
   0xb   : > { %p66_p1 = scmp.eq.s32.totalorder %s65_s23, 0  ;;  %p76_p2 = scmp.eq.s32.totalorder %s4629_s18, 0 }
   0xc   : > { %p81_p3 = scmp.ne.s32.totalorder %s4621_s16, %s4617_s15  ;;  %p7119_p4 = scmp.eq.s32.totalorder %s4688_s19, 0 }
   0xd   : > { %s4704_s24 = scalar_select %p66_p1, %s4625_s17, %s68_s22  }
   0xe   : > { %p4706_p5 = por %p76_p2, %p75_p0  ;;  %p4712_p6 = por %p7119_p4, %p81_p3 }
   0xf   : > { %p131_p7 = scmp.eq.s32.totalorder %s4688_s19, 1  ;;  %p137_p8 = scmp.eq.s32.totalorder %s3624_s20, 1 }
  0x10   : > { %s7454_s25 = scalar_select %p4706_p5, 1, 0 }
  0x11   : > { %s7455_s26 = scalar_select %p4712_p6, 1, 0 }
  0x12   : > { %p3625_p9 = scmp.ge.s32.totalorder %s4629_s18, 1  ;;  %p144_p10 = scmp.lt.s32.totalorder %s4629_s18, 3 }
  0x13   : > { %p4719_p11 = por %p131_p7, %p75_p0  ;;  %p4723_p12 = por %p137_p8, %p81_p3 }
  0x14   : > { %p4727_p13 = pnand %p3625_p9, %p144_p10  ;;  %s4631_s30 = smov [#allocation2]  }
  0x15   : > { %s7456_s27 = scalar_select %p4719_p11, 1, 0 }
  0x16   : > { %s7457_s28 = scalar_select %p4723_p12, 1, 0 }
  0x17   : > { %s7458_s29 = scalar_select %p4727_p13, 1, 0 }
  0x18   : > { %p4367_p1 = pneg %p4727_p13  ;;  %s156_s5 = sshll.u32 %s4631_s30, 4  ;;  %s157_s5 = int_to_ptr.vmem [resolvable:$true] %s156_s5 }
  0x19   : > { %s183_s7 = sand.u32 1, %s4629_s18   ;;  %s7460_s0 = sld [smem:[#allocation152_spill]] }
  0x1a   : > { %p4735_p2 = pnand %p4367_p1, %p7119_p4 }
  0x1c   : > { %p7126_p8 = pneg %p4735_p2 }
  0x1f   : > { %s4439_s10 = scalar_lea.hbm %s7460_s0, 8192 }
  0x20   : > { %p4440_p7 = scmp.ne.s32.totalorder %s7460_s0, %s4439_s10  ;;  %p4446_p1 = scmp.lt.u32.totalorder %s4439_s10, %s7460_s0 }
  0x22   : > { %p4442_p9 = pnand %p7126_p8, %p4440_p7 }
  0x24   : > { %p4443_p10 = pneg %p4442_p9 }
  0x26   : > { %p4448_p0 = pnand %p4446_p1, %p4443_p10 }
  0x28   : > { %4451 = shalt.err (!%p4448_p0)
}
  0x29   : > { %s4452_s20 = scalar_lea.vmem %s157_s5, 8192  ;;  %p4460_p11 = scmp.lt.s32.totalorder %s157_s5, %s157_s5 }
  0x2a   : > { %p4453_p4 = scmp.ne.s32.totalorder %s157_s5, %s4452_s20  ;;  %p4461_p6 = scmp.lt.s32.totalorder %s4452_s20, %s4452_s20 }
  0x2c   : > { %p4455_p3 = pnand %p4453_p4, %p7126_p8  ;;  %p4462_p13 = por %p4461_p6, %p4460_p11 }
  0x2e   : > { %p4456_p12 = pneg %p4455_p3 }
  0x30   : > { %p4463_p5 = pnand %p4462_p13, %p4456_p12 }
  0x32   : > { %4466 = shalt.err (!%p4463_p5)
}
  0x33   : > { %s7124_s22 = smov 256   ;;  %s7130_s23 = smov 16  }
  0x34   : > { %4370 = dma.hbm_to_vmem [thread:$0]  (!%p4735_p2), %s7460_s0, 8192, %s157_s5, [#allocation3], %s7124_s22, %s7124_s22, %s7130_s23  }
  0x35   : > { %p7461_p4 = scmp.ne.s32.totalorder %s7454_s25, 0  ;;  %p7462_p6 = scmp.lt.s32.totalorder %s4629_s18, 2 }
  0x36   : > { %s185_s10 = sand.u32 1, %s4625_s17   ;;  %s7123_s12 = sshll.u32 %s4629_s18, 9 }
  0x37   : > { %p4771_p11 = pnand %p7462_p6, %p7461_p4  ;;  %s4776_s11 = sshll.u32 %s185_s10, 5 }
  0x38   : > { %s7464_s2 = sld [smem:[#allocation153_spill]]  ;;  %s187_s25 = scalar_lea.vmem [#allocation7], %s4776_s11 }
  0x39   : > { %s7463_s9 = scalar_select %p4771_p11, 1, 0 }
  0x3a   : > { %s194_s5 = sshll.u32 %s187_s25, 4  ;;  %s4789_s30 = scalar_lea.sflag [#allocation3], %s183_s7  ;;  %s4787_s5 = int_to_ptr.vmem [resolvable:$true] %s194_s5 }
  0x3b   : > { %p7127_p12 = pneg %p4771_p11 }
  0x3e   : > { %s4784_s20 = scalar_lea.hbm %s7464_s2, %s7123_s12  ;;  %s4472_s14 = scalar_lea.hbm %s7464_s2, 1024 }
  0x3f   : > { %s4467_s8 = scalar_lea.hbm %s4784_s20, 512  ;;  %p4473_p3 = scmp.lt.u32.totalorder %s4784_s20, %s7464_s2 }
  0x40   : > { %p4468_p5 = scmp.ne.s32.totalorder %s4784_s20, %s4467_s8  ;;  %p4474_p7 = scmp.lt.u32.totalorder %s4472_s14, %s4467_s8 }
  0x41   : > { %p4476_p10 = scmp.lt.u32.totalorder %s4467_s8, %s4784_s20 }
  0x42   : > { %p4470_p13 = pnand %p7127_p12, %p4468_p5  ;;  %p4475_p9 = por %p4474_p7, %p4473_p3 }
  0x44   : > { %p4471_p0 = pneg %p4470_p13  ;;  %p4477_p1 = por %p4476_p10, %p4475_p9 }
  0x46   : > { %p4478_p4 = pnand %p4477_p1, %p4471_p0 }
  0x48   : > { %4481 = shalt.err (!%p4478_p4)
}
  0x49   : > { %s4482_s7 = scalar_lea.vmem %s4787_s5, 512  ;;  %s4634_s25 = smov [#allocation7]  }
  0x4a   : > { %p4483_p6 = scmp.ne.s32.totalorder %s4787_s5, %s4482_s7  ;;  %s4487_s10 = sshll.u32 %s4634_s25, 4  ;;  %s4488_s10 = int_to_ptr.vmem [resolvable:$false] %s4487_s10 }
  0x4b   : > { %s4489_s22 = scalar_lea.vmem %s4488_s10, 1024  ;;  %p4490_p8 = scmp.lt.s32.totalorder %s4787_s5, %s4488_s10 }
  0x4c   : > { %p4485_p5 = pnand %p4483_p6, %p7127_p12  ;;  %p4491_p3 = scmp.lt.s32.totalorder %s4489_s22, %s4482_s7 }
  0x4e   : > { %p4486_p13 = pneg %p4485_p5  ;;  %p4492_p7 = por %p4491_p3, %p4490_p8 }
  0x50   : > { %p4493_p9 = pnand %p4492_p7, %p4486_p13 }
  0x52   : > { %4496 = shalt.err (!%p4493_p9)
}
  0x53   : > { %s7465_s12 = smov 256   ;;  %s4635_s8 = smov [#allocation5]  }
  0x54   : > { %4377 = dma.hbm_to_vmem [thread:$0]  (!%p4771_p11), %s4784_s20, 512, %s4787_s5, %s4789_s30, %s7465_s12, %s7465_s12, %s7130_s23  }
  0x55   : > { %s169_s13 = sshll.u32 %s4635_s8, 4  ;;  %s4497_s7 = scalar_lea.hbm %s7115_s1, 1280  ;;  %s170_s13 = int_to_ptr.vmem [resolvable:$true] %s169_s13 }
  0x56   : > { %p4498_p8 = scmp.ne.s32.totalorder %s7115_s1, %s4497_s7  ;;  %p7466_p0 = pneg %p4735_p2 }
  0x57   : > { %p4504_p4 = scmp.lt.u32.totalorder %s4497_s7, %s7115_s1 }
  0x58   : > { %p4500_p10 = pnand %p4498_p8, %p7466_p0 }
  0x5a   : > { %p4501_p1 = pneg %p4500_p10 }
  0x5c   : > { %p4506_p6 = pnand %p4504_p4, %p4501_p1 }
  0x5e   : > { %4509 = shalt.err (!%p4506_p6)
}
  0x5f   : > { %s4510_s20 = scalar_lea.vmem %s170_s13, 1280  ;;  %p7467_p13 = pmov %p7466_p0 }
  0x60   : > { %p4511_p5 = scmp.ne.s32.totalorder %s170_s13, %s4510_s20  ;;  %p4518_p9 = scmp.lt.s32.totalorder %s170_s13, %s170_s13 }
  0x61   : > { %p4519_p12 = scmp.lt.s32.totalorder %s4510_s20, %s4510_s20 }
  0x62   : > { %p4513_p3 = pnand %p4511_p5, %p7467_p13 }
  0x63   : > { %p4520_p11 = por %p4519_p12, %p4518_p9 }
  0x64   : > { %p4514_p7 = pneg %p4513_p3 }
  0x66   : > { %p4521_p0 = pnand %p4520_p11, %p4514_p7 }
  0x68   : > { %4524 = shalt.err (!%p4521_p0)
}
  0x69   : > { %s4636_s5 = smov 128   ;;  %s4637_s0 = smov 8  }
  0x6a   : > { %4373 = dma.hbm_to_vmem [thread:$0]  (!%p4735_p2), %s7115_s1, 1280, %s170_s13, [#allocation6], %s4636_s5, %s4636_s5, %s4637_s0  }
  0x6b   : > { %s7468_s14 = sshll.u32 %s4629_s18, 9  ;;  %s208_s22 = scalar_lea.vmem [#allocation8], %s4776_s11 }
  0x6c   : > { %s4845_s10 = scalar_lea.hbm %s7117_s3, %s7468_s14  ;;  %s215_s20 = sshll.u32 %s208_s22, 4  ;;  %s4848_s20 = int_to_ptr.vmem [resolvable:$true] %s215_s20 }
  0x6d   : > { %s4525_s23 = scalar_lea.hbm %s4845_s10, 512  ;;  %p7469_p12 = scmp.ne.s32.totalorder %s7463_s9, 0 }
  0x6e   : > { %p4526_p11 = scmp.ne.s32.totalorder %s4845_s10, %s4525_s23  ;;  %s4530_s5 = scalar_lea.hbm %s7117_s3, 1024 }
  0x6f   : > { %p7470_p8 = pneg %p7469_p12  ;;  %p4531_p1 = scmp.lt.u32.totalorder %s4845_s10, %s7117_s3 }
  0x70   : > { %p4532_p4 = scmp.lt.u32.totalorder %s4530_s5, %s4525_s23  ;;  %p4534_p5 = scmp.lt.u32.totalorder %s4525_s23, %s4845_s10 }
  0x71   : > { %p4528_p10 = pnand %p4526_p11, %p7470_p8 }
  0x72   : > { %p4533_p6 = por %p4532_p4, %p4531_p1 }
  0x73   : > { %p4529_p2 = pneg %p4528_p10 }
  0x74   : > { %p4535_p13 = por %p4534_p5, %p4533_p6 }
  0x76   : > { %p4536_p3 = pnand %p4535_p13, %p4529_p2 }
  0x78   : > { %4539 = shalt.err (!%p4536_p3)
}
  0x79   : > { %s4540_s11 = scalar_lea.vmem %s4848_s20, 512  ;;  %p7471_p9 = pmov %p7470_p8 }
  0x7a   : > { %p4541_p7 = scmp.ne.s32.totalorder %s4848_s20, %s4540_s11  ;;  %s4638_s8 = smov [#allocation8]  }
  0x7b   : > { %s4545_s14 = sshll.u32 %s4638_s8, 4  ;;  %s4546_s14 = int_to_ptr.vmem [resolvable:$false] %s4545_s14 }
  0x7c   : > { %p4543_p0 = pnand %p4541_p7, %p7471_p9  ;;  %s4547_s25 = scalar_lea.vmem %s4546_s14, 1024 }
  0x7d   : > { %p4548_p8 = scmp.lt.s32.totalorder %s4848_s20, %s4546_s14  ;;  %p4549_p10 = scmp.lt.s32.totalorder %s4547_s25, %s4540_s11 }
  0x7e   : > { %p4544_p11 = pneg %p4543_p0 }
  0x7f   : > { %p4550_p1 = por %p4549_p10, %p4548_p8 }
  0x81   : > { %p4551_p4 = pnand %p4550_p1, %p4544_p11 }
  0x83   : > { %4554 = shalt.err (!%p4551_p4)
}
  0x84   : > { %s7472_s23 = smov 16   ;;  %p7473_p2 = scmp.ne.s32.totalorder %s7458_s29, 0 }
  0x85   : > { %4380 = dma.hbm_to_vmem [thread:$0]  (!%p7469_p12), %s4845_s10, 512, %s4848_s20, %s4789_s30, %s7465_s12, %s7465_s12, %s7472_s23  }
  0x86   : > { %227 = sbr.rel (%p7473_p2) target bundleno = 1277 (0x4fd), region = 36 }
  0x8d   : > { %p7474_p6 = scmp.eq.s32.totalorder %s4688_s19, 0 }
  0x8f   : > { %4600 = dma.done.wait (%p7474_p6), [#allocation3], 8192   ;;  %p7475_p5 = pmov %p7474_p6 }
  0x91   : > { %4602 = vsyncadd (%p7475_p5), [#allocation3], 4294959104  ;;  %p7476_p13 = pmov %p7475_p5 }
  0x92   : > { %p7477_p3 = pmov %p7475_p5 }
  0x93   : > { %4604 = dma.done.wait (%p7476_p13), [#allocation6], 1280  }
  0x94   : > { %4606 = vsyncadd (%p7477_p3), [#allocation6], 4294966016  ;;  %s237_s9 = sand.u32 1, %s4688_s19   ;;  %s4889_s30 = sand.u32 1, %s4621_s16  }
  0x95   : > { %s3638_s29 = sshll.u32 %s4889_s30, 5  ;;  %s238_s12 = scalar_lea.sflag [#allocation3], %s237_s9 }
  0x96   : > { %s4894_s7 = scalar_lea.vmem [#allocation7], %s3638_s29  ;;  %p7478_p12 = scmp.ne.s32.totalorder %s7455_s26, 0 }
  0x98   : > { %4608 = dma.done.wait (%p7478_p12), %s238_s12, 1024  }
  0x99   : > { %4610 = vsyncadd (%p7478_p12), %s238_s12, 4294966272  ;;  %v4900_v0 = vld [vmem:[#allocation2 + $0x8] sm:$0xff]  ;;  %v4902_v1 = vld [vmem:[#allocation2 + $0x18] sm:$0xff]  ;;  %s250_s26 = scalar_lea.vmem [#allocation8], %s3638_s29  ;;  %vm2216_vm0 = vcmask 654336   ;;  %s3640_s10 = sshll.u32 %s4889_s30, 1 }
  0x9a   : > { %7479 = vst [vmem:[#allocation14_spill] sm:$0xff] %v4900_v0  ;;  %7480 = vst [vmem:[#allocation15_spill] sm:$0xff] %v4902_v1  ;;  %v4904_v2 = vld [vmem:[#allocation2] sm:$0xff]  ;;  %v7173_v3 = vand.u32 4294901760, %v4900_v0  ;;  %v7171_v4 = vand.u32 4294901760, %v4902_v1  ;;  %v4908_v5 = vld [vmem:[#allocation2 + $0x10] sm:$0xff] }
  0x9b   : > { %7481 = vst [vmem:[#allocation16_spill] sm:$0xff] %v4904_v2  ;;  %7482 = vst [vmem:[#allocation17_spill] sm:$0xff] %v4908_v5  ;;  %v7169_v6 = vand.u32 4294901760, %v4904_v2  ;;  %v4911_v7 = vld [vmem:[#allocation2 + $0x28] sm:$0xff]  ;;  %v4913_v8 = vld [vmem:[#allocation2 + $0x38] sm:$0xff]  ;;  %v7167_v9 = vand.u32 4294901760, %v4908_v5 }
  0x9c   : > { %7483 = vst [vmem:[#allocation18_spill] sm:$0xff] %v4911_v7  ;;  %7484 = vst [vmem:[#allocation19_spill] sm:$0xff] %v4913_v8  ;;  %v7166_v10 = vand.u32 4294901760, %v4911_v7  ;;  %v7163_v11 = vand.u32 4294901760, %v4913_v8  ;;  %v4918_v12 = vld [vmem:[#allocation2 + $0x20] sm:$0xff]  ;;  %v4920_v13 = vld [vmem:[#allocation2 + $0x30] sm:$0xff]  ;;  %v4925_v14 = vsub.f32 %v4900_v0, %v7173_v3  ;;  %v4930_v15 = vsub.f32 %v4902_v1, %v7171_v4 }
  0x9d   : > { %7485 = vst [vmem:[#allocation20_spill] sm:$0xff] %v4918_v12  ;;  %7486 = vst [vmem:[#allocation21_spill] sm:$0xff] %v4920_v13  ;;  %v4935_v16 = vsub.f32 %v4904_v2, %v7169_v6  ;;  %v7162_v17 = vand.u32 4294901760, %v4918_v12  ;;  %v4941_v18 = vsub.f32 %v4908_v5, %v7167_v9  ;;  %v7159_v21 = vand.u32 4294901760, %v4920_v13  ;;  %v4990_v38 = vld [vmem:[#allocation2 + $0x48] sm:$0xff]  ;;  %v4992_v39 = vld [vmem:[#allocation2 + $0x58] sm:$0xff] }
  0x9e   : > { %7487 = vst [vmem:[#allocation22_spill] sm:$0xff] %v4925_v14  ;;  %7488 = vst [vmem:[#allocation23_spill] sm:$0xff] %v4930_v15  ;;  %v4946_v19 = vsub.f32 %v4911_v7, %v7166_v10  ;;  %v4951_v20 = vsub.f32 %v4913_v8, %v7163_v11  ;;  %v7141_v22 = vand.u32 4294901760, %v4925_v14  ;;  %v7140_v23 = vand.u32 4294901760, %v4930_v15  ;;  %v4997_v44 = vld [vmem:[#allocation2 + $0x40] sm:$0xff]  ;;  %v5002_v49 = vld [vmem:[#allocation2 + $0x50] sm:$0xff] }
  0x9f   : > { %7489 = vst [vmem:[#allocation24_spill] sm:$0xff] %v4935_v16  ;;  %7490 = vst [vmem:[#allocation25_spill] sm:$0xff] %v4941_v18  ;;  %v7139_v24 = vand.u32 4294901760, %v4935_v16  ;;  %v4960_v25 = vsub.f32 %v4918_v12, %v7162_v17  ;;  %v7138_v26 = vand.u32 4294901760, %v4941_v18  ;;  %v4968_v29 = vsub.f32 %v4920_v13, %v7159_v21  ;;  %v5004_v50 = vld [vmem:[#allocation2 + $0x68] sm:$0xff]  ;;  %v5008_v55 = vld [vmem:[#allocation2 + $0x78] sm:$0xff] }
  0xa0   : > { %7491 = vst [vmem:[#allocation26_spill] sm:$0xff] %v4946_v19  ;;  %7492 = vst [vmem:[#allocation27_spill] sm:$0xff] %v4951_v20  ;;  %v7136_v27 = vand.u32 4294901760, %v4946_v19  ;;  %v7134_v28 = vand.u32 4294901760, %v4951_v20  ;;  %v656_v30 = vsub.f32 %v4925_v14, %v7141_v22  ;;  %v668_v31 = vsub.f32 %v4930_v15, %v7140_v23  ;;  %v5010_v56 = vld [vmem:[#allocation2 + $0x60] sm:$0xff]  ;;  %v5162_v17 = vld [vmem:[#allocation2 + $0xc8] sm:$0xff] }
  0xa1   : > { %7493 = vst [vmem:[#allocation28_spill] sm:$0xff] %v4960_v25  ;;  %7494 = vst [vmem:[#allocation29_spill] sm:$0xff] %v4968_v29  ;;  %v662_v32 = vsub.f32 %v4935_v16, %v7139_v24  ;;  %v7132_v33 = vand.u32 4294901760, %v4960_v25  ;;  %v674_v34 = vsub.f32 %v4941_v18, %v7138_v26  ;;  %v7131_v37 = vand.u32 4294901760, %v4968_v29  ;;  %v5084_v26 = vld [vmem:[#allocation2 + $0x98] sm:$0xff]  ;;  %v5093_v22 = vld [vmem:[#allocation2 + $0x80] sm:$0xff] }
  0xa2   : > { %v680_v35 = vsub.f32 %v4946_v19, %v7136_v27  ;;  %v692_v36 = vsub.f32 %v4951_v20, %v7134_v28  ;;  %7495 = vst [vmem:[#allocation30_spill] sm:$0xff] %v4990_v38  ;;  %7496 = vst [vmem:[#allocation31_spill] sm:$0xff] %v4992_v39  ;;  %v657_v40 = vand.u32 4294901760, %v656_v30  ;;  %v669_v41 = vand.u32 4294901760, %v668_v31  ;;  %v5025_v31 = vld [vmem:[#allocation2 + $0x70] sm:$0xff]  ;;  %v5076_v28 = vld [vmem:[#allocation2 + $0x88] sm:$0xff] }
  0xa3   : > { %v663_v42 = vand.u32 4294901760, %v662_v32  ;;  %v686_v43 = vsub.f32 %v4960_v25, %v7132_v33  ;;  %7497 = vst [vmem:[#allocation32_spill] sm:$0xff] %v4997_v44  ;;  %v675_v45 = vand.u32 4294901760, %v674_v34  ;;  %v698_v48 = vsub.f32 %v4968_v29, %v7131_v37  ;;  %7498 = vst [vmem:[#allocation33_spill] sm:$0xff] %v5002_v49  ;;  %v5186_v3 = vld [vmem:[#allocation2 + $0xc0] sm:$0xff]  ;;  %v5362_v12 = vld [vmem:[#allocation2 + $0x158] sm:$0xff] }
  0xa4   : > { %v681_v46 = vand.u32 4294901760, %v680_v35  ;;  %v693_v47 = vand.u32 4294901760, %v692_v36  ;;  %7499 = vst [vmem:[#allocation34_spill] sm:$0xff] %v5004_v50  ;;  %v3713_v51 = vpack.c.bf16 %v669_v41, %v657_v40  ;;  %v7158_v53 = vand.u32 4294901760, %v4990_v38  ;;  %7500 = vst [vmem:[#allocation35_spill] sm:$0xff] %v5008_v55  ;;  %v5374_v8 = vld [vmem:[#allocation2 + $0x140] sm:$0xff] }
  0xa5   : > { %v687_v52 = vand.u32 4294901760, %v686_v43  ;;  %v7152_v54 = vand.u32 4294901760, %v4992_v39  ;;  %7501 = vst [vmem:[#allocation36_spill] sm:$0xff] %v5010_v56  ;;  %v3715_v57 = vpack.c.bf16 %v675_v45, %v663_v42  ;;  %v699_v59 = vand.u32 4294901760, %v698_v48  ;;  %7504 = vst [vmem:[#allocation39_spill] sm:$0xff] %v5025_v31  ;;  %s3648_s22 = sshll.u32 %s4688_s19, 5 }
  0xa6   : > { %v3717_v58 = vpack.c.bf16 %v693_v47, %v681_v46  ;;  %v7151_v60 = vand.u32 4294901760, %v4997_v44  ;;  %3714 = vmatprep.subr.bf16.mxu0 %v3713_v51  ;;  %v5016_v61 = vsub.f32 %v4990_v38, %v7158_v53  ;;  %v7148_v63 = vand.u32 4294901760, %v5002_v49  ;;  %7511 = vst [vmem:[#allocation46_spill] sm:$0xff] %v5076_v28  ;;  %7512 = vst [vmem:[#allocation47_spill] sm:$0xff] %v5084_v26  ;;  %v5342_v38 = vld [vmem:[#allocation2 + $0x148] sm:$0xff]  ;;  %s279_s20 = scalar_lea.vmem [#allocation9], %s3640_s10  ;;  %s7070_s0 = scalar_lea.hbm %s7118_s4, %s3648_s22 }
  0xa7   : > { %v5021_v62 = vsub.f32 %v4992_v39, %v7152_v54  ;;  %v7147_v30 = vand.u32 4294901760, %v5004_v50  ;;  %3716 = vmatpush1.bf16.msra.mxu0 %v3715_v57  ;;  %v3719_v32 = vpack.c.bf16 %v699_v59, %v687_v52  ;;  %v7146_v35 = vand.u32 4294901760, %v5008_v55  ;;  %7513 = vst [vmem:[#allocation48_spill] sm:$0xff] %v5093_v22  ;;  %7526 = vst [vmem:[#allocation61_spill] sm:$0xff] %v5162_v17  ;;  %s3515_s6 = sshll.u32 %s279_s20, 4  ;;  %s3501_s2 = scalar_lea.sflag [#allocation4], %s4889_s30  ;;  %s7072_s6 = int_to_ptr.vmem [resolvable:$true] %s3515_s6 }
  0xa8   : > { %7502 = vst [vmem:[#allocation37_spill] sm:$0xff] %v5016_v61  ;;  %v5030_v34 = vsub.f32 %v4997_v44, %v7151_v60  ;;  %v7144_v36 = vand.u32 4294901760, %v5010_v56  ;;  %3718 = vmatprep.subr.bf16.mxu0 %v3717_v58  ;;  %v7133_v40 = vand.u32 4294901760, %v5016_v61  ;;  %v5039_v42 = vsub.f32 %v5002_v49, %v7148_v63  ;;  %v5104_v60 = vld [vmem:[#allocation2 + $0xb8] sm:$0xff]  ;;  %7529 = vst [vmem:[#allocation64_spill] sm:$0xff] %v5186_v3  ;;  %s4555_s11 = scalar_lea.vmem %s7072_s6, 32 }
  0xa9   : > { %7503 = vst [vmem:[#allocation38_spill] sm:$0xff] %v5021_v62  ;;  %v7135_v41 = vand.u32 4294901760, %v5021_v62  ;;  %v5044_v43 = vsub.f32 %v5004_v50, %v7147_v30  ;;  %v5050_v46 = vsub.f32 %v5008_v55, %v7146_v35  ;;  %v7143_v47 = vand.u32 4294901760, %v5025_v31  ;;  %7516 = vst [vmem:[#allocation51_spill] sm:$0xff] %v5104_v60  ;;  %p4556_p7 = scmp.ne.s32.totalorder %s7072_s6, %s4555_s11  ;;  %p8081_p9 = scmp.ne.s32.totalorder %s7456_s27, 0 }
  0xaa   : > { %7505 = vst [vmem:[#allocation40_spill] sm:$0xff] %v5030_v34  ;;  %7506 = vst [vmem:[#allocation41_spill] sm:$0xff] %v5039_v42  ;;  %v7137_v45 = vand.u32 4294901760, %v5030_v34  ;;  %v5056_v48 = vsub.f32 %v5010_v56, %v7144_v36  ;;  %v704_v51 = vsub.f32 %v5016_v61, %v7133_v40  ;;  %v7142_v57 = vand.u32 4294901760, %v5039_v42  ;;  %v5284_v56 = vld [vmem:[#allocation2 + $0x110] sm:$0xff]  ;;  %s4641_s19 = smov [#allocation9]  }
  0xab   : > { %7507 = vst [vmem:[#allocation42_spill] sm:$0xff] %v5044_v43  ;;  %7508 = vst [vmem:[#allocation43_spill] sm:$0xff] %v5050_v46  ;;  %v716_v52 = vsub.f32 %v5021_v62, %v7135_v41  ;;  %v7145_v58 = vand.u32 4294901760, %v5044_v43  ;;  %3720 = vmatpush1.bf16.msra.mxu0 %v3719_v32  ;;  %v7149_v37 = vand.u32 4294901760, %v5050_v46  ;;  %v5074_v40 = vsub.f32 %v5025_v31, %v7143_v47  ;;  %p4557_p0 = pnand %p4556_p7, %p8081_p9  ;;  %s4559_s8 = sshll.u32 %s4641_s19, 4  ;;  %s4560_s8 = int_to_ptr.vmem [resolvable:$false] %s4559_s8 }
  0xac   : > { %7509 = vst [vmem:[#allocation44_spill] sm:$0xff] %v5056_v48  ;;  %v710_v59 = vsub.f32 %v5030_v34, %v7137_v45  ;;  %v7150_v33 = vand.u32 4294901760, %v5056_v48  ;;  %v705_v41 = vand.u32 4294901760, %v704_v51  ;;  %v722_v32 = vsub.f32 %v5039_v42, %v7142_v57  ;;  %v5095_v57 = vld [vmem:[#allocation2 + $0x90] sm:$0xff]  ;;  %7552 = vst [vmem:[#allocation80_spill] sm:$0xff] %v5284_v56  ;;  %s4561_s14 = scalar_lea.vmem %s4560_s8, 64  ;;  %p4562_p8 = scmp.lt.s32.totalorder %s7072_s6, %s4560_s8 }
  0xad   : > { %7510 = vst [vmem:[#allocation45_spill] sm:$0xff] %v5074_v40  ;;  %v717_v27 = vand.u32 4294901760, %v716_v52  ;;  %v728_v45 = vsub.f32 %v5044_v43, %v7145_v58  ;;  %v740_v23 = vsub.f32 %v5050_v46, %v7149_v37  ;;  %v7153_v52 = vand.u32 4294901760, %v5074_v40  ;;  %7514 = vst [vmem:[#allocation49_spill] sm:$0xff] %v5095_v57  ;;  %p4558_p11 = pneg %p4557_p0  ;;  %p4563_p10 = scmp.lt.s32.totalorder %s4561_s14, %s4555_s11 }
  0xae   : > { %v711_v24 = vand.u32 4294901760, %v710_v59  ;;  %v734_v51 = vsub.f32 %v5056_v48, %v7150_v33  ;;  %v723_v36 = vand.u32 4294901760, %v722_v32  ;;  %v7155_v35 = vand.u32 4294901760, %v5076_v28  ;;  %v5098_v59 = vld [vmem:[#allocation2 + $0xa8] sm:$0xff]  ;;  %7561 = vst [vmem:[#allocation89_spill] sm:$0xff] %v5342_v38  ;;  %7565 = vst [vmem:[#allocation91_spill] sm:$0xff] %v5362_v12 }
  0xaf   : > { %v3721_v47 = vpack.c.bf16 %v717_v27, %v705_v41  ;;  %v729_v58 = vand.u32 4294901760, %v728_v45  ;;  %7515 = vst [vmem:[#allocation50_spill] sm:$0xff] %v5098_v59  ;;  %v741_v30 = vand.u32 4294901760, %v740_v23  ;;  %v746_v37 = vsub.f32 %v5074_v40, %v7153_v52  ;;  %v5113_v45 = vld [vmem:[#allocation2 + $0xa0] sm:$0xff]  ;;  %7568 = vst [vmem:[#allocation93_spill] sm:$0xff] %v5374_v8  ;;  %p4564_p1 = por %p4563_p10, %p4562_p8 }
  0xb0   : > { %v735_v63 = vand.u32 4294901760, %v734_v51  ;;  %v7154_v33 = vand.u32 4294901760, %v5084_v26  ;;  %v3723_v54 = vpack.c.bf16 %v723_v36, %v711_v24  ;;  %v5109_v27 = vsub.f32 %v5076_v28, %v7155_v35  ;;  %7518 = vst [vmem:[#allocation53_spill] sm:$0xff] %v5113_v45 }
  0xb1   : > { %3722 = vmatprep.subr.bf16.mxu0 %v3721_v47  ;;  %v7156_v41 = vand.u32 4294901760, %v5093_v22  ;;  %v7157_v23 = vand.u32 4294901760, %v5095_v57  ;;  %v3725_v32 = vpack.c.bf16 %v741_v30, %v729_v58  ;;  %v747_v51 = vand.u32 4294901760, %v746_v37  ;;  %v5133_v58 = vld [vmem:[#allocation2 + $0xb0] sm:$0xff]  ;;  %p4565_p4 = pnand %p4564_p1, %p4558_p11 }
  0xb2   : > { %7517 = vst [vmem:[#allocation52_spill] sm:$0xff] %v5109_v27  ;;  %v5118_v52 = vsub.f32 %v5084_v26, %v7154_v33  ;;  %v7160_v24 = vand.u32 4294901760, %v5098_v59  ;;  %3724 = vmatpush1.bf16.msra.mxu0 %v3723_v54  ;;  %v7161_v36 = vand.u32 4294901760, %v5109_v27  ;;  %v7164_v37 = vand.u32 4294901760, %v5104_v60  ;;  %7522 = vst [vmem:[#allocation57_spill] sm:$0xff] %v5133_v58 }
  0xb3   : > { %v5125_v47 = vsub.f32 %v5093_v22, %v7156_v41  ;;  %v5130_v30 = vsub.f32 %v5095_v57, %v7157_v23  ;;  %3726 = vmatprep.subr.bf16.mxu0 %v3725_v32  ;;  %v3727_v33 = vpack.c.bf16 %v747_v51, %v735_v63  ;;  %v7168_v41 = vand.u32 4294901760, %v5113_v45  ;;  %v5202_v22 = vld [vmem:[#allocation2 + $0xf8] sm:$0xff] }
  0xb4   : > { %7519 = vst [vmem:[#allocation54_spill] sm:$0xff] %v5118_v52  ;;  %v7165_v54 = vand.u32 4294901760, %v5118_v52  ;;  %v5139_v35 = vsub.f32 %v5098_v59, %v7160_v24  ;;  %v752_v23 = vsub.f32 %v5109_v27, %v7161_v36  ;;  %v5150_v63 = vsub.f32 %v5104_v60, %v7164_v37  ;;  %7534 = vst [vmem:[#allocation68_spill] sm:$0xff] %v5202_v22 }
  0xb5   : > { %7520 = vst [vmem:[#allocation55_spill] sm:$0xff] %v5125_v47  ;;  %7521 = vst [vmem:[#allocation56_spill] sm:$0xff] %v5130_v30  ;;  %v7170_v53 = vand.u32 4294901760, %v5125_v47  ;;  %v7172_v21 = vand.u32 4294901760, %v5130_v30  ;;  %v7177_v24 = vand.u32 4294901760, %v5133_v58  ;;  %v5160_v36 = vsub.f32 %v5113_v45, %v7168_v41 }
  0xb6   : > { %7523 = vst [vmem:[#allocation58_spill] sm:$0xff] %v5139_v35  ;;  %7524 = vst [vmem:[#allocation59_spill] sm:$0xff] %v5150_v63  ;;  %v764_v32 = vsub.f32 %v5118_v52, %v7165_v54  ;;  %v7174_v51 = vand.u32 4294901760, %v5139_v35  ;;  %3728 = vmatpush1.bf16.msra.mxu0 %v3727_v33  ;;  %v753_v11 = vand.u32 4294901760, %v752_v23  ;;  %v7180_v10 = vand.u32 4294901760, %v5150_v63  ;;  %v5180_v23 = vld [vmem:[#allocation2 + $0xd8] sm:$0xff] }
  0xb7   : > { %7525 = vst [vmem:[#allocation60_spill] sm:$0xff] %v5160_v36  ;;  %v758_v37 = vsub.f32 %v5125_v47, %v7170_v53  ;;  %v770_v54 = vsub.f32 %v5130_v30, %v7172_v21  ;;  %v5178_v33 = vsub.f32 %v5133_v58, %v7177_v24  ;;  %7528 = vst [vmem:[#allocation63_spill] sm:$0xff] %v5180_v23  ;;  %v7531_v60 = vand.u32 4294901760, %v5160_v36 }
  0xb8   : > { %v765_v9 = vand.u32 4294901760, %v764_v32  ;;  %v776_v41 = vsub.f32 %v5139_v35, %v7174_v51  ;;  %v788_v21 = vsub.f32 %v5150_v63, %v7180_v10  ;;  %v7183_v32 = vand.u32 4294901760, %v5162_v17  ;;  %v5188_v51 = vld [vmem:[#allocation2 + $0xd0] sm:$0xff] }
  0xb9   : > { %7527 = vst [vmem:[#allocation62_spill] sm:$0xff] %v5178_v33  ;;  %v759_v53 = vand.u32 4294901760, %v758_v37  ;;  %v771_v4 = vand.u32 4294901760, %v770_v54  ;;  %7530 = vst [vmem:[#allocation65_spill] sm:$0xff] %v5188_v51  ;;  %v782_v24 = vsub.f32 %v5160_v36, %v7531_v60  ;;  %v7184_v58 = vand.u32 4294901760, %v5178_v33  ;;  %v5194_v37 = vld [vmem:[#allocation2 + $0xe8] sm:$0xff] }
  0xba   : > { %v3729_v6 = vpack.c.bf16 %v765_v9, %v753_v11  ;;  %v777_v45 = vand.u32 4294901760, %v776_v41  ;;  %7532 = vst [vmem:[#allocation66_spill] sm:$0xff] %v5194_v37  ;;  %v789_v59 = vand.u32 4294901760, %v788_v21  ;;  %v7185_v10 = vand.u32 4294901760, %v5180_v23  ;;  %v5209_v21 = vld [vmem:[#allocation2 + $0xe0] sm:$0xff] }
  0xbb   : > { %v3731_v54 = vpack.c.bf16 %v771_v4, %v759_v53  ;;  %v5200_v57 = vsub.f32 %v5162_v17, %v7183_v32  ;;  %v783_v9 = vand.u32 4294901760, %v782_v24  ;;  %v794_v11 = vsub.f32 %v5178_v33, %v7184_v58  ;;  %7535 = vst [vmem:[#allocation69_spill] sm:$0xff] %v5209_v21 }
  0xbc   : > { %3730 = vmatprep.subr.bf16.mxu0 %v3729_v6  ;;  %v7186_v60 = vand.u32 4294901760, %v5186_v3  ;;  %v7188_v4 = vand.u32 4294901760, %v5188_v51  ;;  %v3733_v53 = vpack.c.bf16 %v789_v59, %v777_v45  ;;  %v5215_v32 = vsub.f32 %v5180_v23, %v7185_v10  ;;  %v5229_v45 = vld [vmem:[#allocation2 + $0xf0] sm:$0xff] }
  0xbd   : > { %7533 = vst [vmem:[#allocation67_spill] sm:$0xff] %v5200_v57  ;;  %3732 = vmatpush1.bf16.msra.mxu0 %v3731_v54  ;;  %v7191_v41 = vand.u32 4294901760, %v5200_v57  ;;  %v7193_v6 = vand.u32 4294901760, %v5194_v37  ;;  %v795_v24 = vand.u32 4294901760, %v794_v11  ;;  %7539 = vst [vmem:[#allocation73_spill] sm:$0xff] %v5229_v45 }
  0xbe   : > { %7536 = vst [vmem:[#allocation70_spill] sm:$0xff] %v5215_v32  ;;  %v5221_v58 = vsub.f32 %v5186_v3, %v7186_v60  ;;  %v5226_v54 = vsub.f32 %v5188_v51, %v7188_v4  ;;  %3734 = vmatprep.subr.bf16.mxu0 %v3733_v53  ;;  %v7541_v53 = vand.u32 4294901760, %v5202_v22  ;;  %v7544_v17 = vand.u32 4294901760, %v5215_v32 }
  0xbf   : > { %v800_v10 = vsub.f32 %v5200_v57, %v7191_v41  ;;  %v5238_v60 = vsub.f32 %v5194_v37, %v7193_v6  ;;  %v3735_v4 = vpack.c.bf16 %v795_v24, %v783_v9  ;;  %v5248_v41 = vld [vmem:[#allocation2 + $0x108] sm:$0xff] }
  0xc0   : > { %7537 = vst [vmem:[#allocation71_spill] sm:$0xff] %v5221_v58  ;;  %7538 = vst [vmem:[#allocation72_spill] sm:$0xff] %v5226_v54  ;;  %v7196_v51 = vand.u32 4294901760, %v5221_v58  ;;  %v7198_v59 = vand.u32 4294901760, %v5226_v54  ;;  %v5246_v23 = vsub.f32 %v5202_v22, %v7541_v53  ;;  %v812_v6 = vsub.f32 %v5215_v32, %v7544_v17  ;;  %v5267_v17 = vld [vmem:[#allocation2 + $0x118] sm:$0xff] }
  0xc1   : > { %7540 = vst [vmem:[#allocation74_spill] sm:$0xff] %v5238_v60  ;;  %7543 = vst [vmem:[#allocation76_spill] sm:$0xff] %v5248_v41  ;;  %v801_v11 = vand.u32 4294901760, %v800_v10  ;;  %3736 = vmatpush1.bf16.msra.mxu0 %v3735_v4  ;;  %v7545_v10 = vand.u32 4294901760, %v5209_v21  ;;  %v7547_v4 = vand.u32 4294901760, %v5238_v60 }
  0xc2   : > { %7542 = vst [vmem:[#allocation75_spill] sm:$0xff] %v5246_v23  ;;  %v806_v24 = vsub.f32 %v5221_v58, %v7196_v51  ;;  %v818_v53 = vsub.f32 %v5226_v54, %v7198_v59  ;;  %7546 = vst [vmem:[#allocation77_spill] sm:$0xff] %v5267_v17  ;;  %v813_v37 = vand.u32 4294901760, %v812_v6  ;;  %v7548_v51 = vand.u32 4294901760, %v5229_v45  ;;  %v5282_v6 = vld [vmem:[#allocation2 + $0x100] sm:$0xff] }
  0xc3   : > { %v5265_v22 = vsub.f32 %v5209_v21, %v7545_v10  ;;  %v824_v9 = vsub.f32 %v5238_v60, %v7547_v4  ;;  %v7208_v59 = vand.u32 4294901760, %v5248_v41  ;;  %v7550_v31 = vand.u32 4294901760, %v5246_v23  ;;  %7551 = vst [vmem:[#allocation79_spill] sm:$0xff] %v5282_v6 }
  0xc4   : > { %v5275_v26 = vsub.f32 %v5229_v45, %v7548_v51  ;;  %v807_v3 = vand.u32 4294901760, %v806_v24  ;;  %v819_v28 = vand.u32 4294901760, %v818_v53  ;;  %v3737_v4 = vpack.c.bf16 %v813_v37, %v801_v11  ;;  %v5288_v45 = vld [vmem:[#allocation2 + $0x128] sm:$0xff] }
  0xc5   : > { %v836_v10 = vsub.f32 %v5246_v23, %v7550_v31  ;;  %v7207_v21 = vand.u32 4294901760, %v5265_v22  ;;  %v825_v55 = vand.u32 4294901760, %v824_v9  ;;  %v7212_v51 = vand.u32 4294901760, %v5267_v17  ;;  %7553 = vst [vmem:[#allocation81_spill] sm:$0xff] %v5288_v45  ;;  %v5308_v9 = vld [vmem:[#allocation2 + $0x138] sm:$0xff] }
  0xc6   : > { %7549 = vst [vmem:[#allocation78_spill] sm:$0xff] %v5275_v26  ;;  %v7209_v50 = vand.u32 4294901760, %v5275_v26  ;;  %v3739_v24 = vpack.c.bf16 %v819_v28, %v807_v3  ;;  %v5296_v49 = vsub.f32 %v5248_v41, %v7208_v59  ;;  %3738 = vmatprep.subr.bf16.mxu0 %v3737_v4  ;;  %v7214_v3 = vand.u32 4294901760, %v5282_v6  ;;  %7556 = vst [vmem:[#allocation84_spill] sm:$0xff] %v5308_v9 }
  0xc7   : > { %v837_v53 = vand.u32 4294901760, %v836_v10  ;;  %v830_v31 = vsub.f32 %v5265_v22, %v7207_v21  ;;  %v5304_v11 = vsub.f32 %v5267_v17, %v7212_v51  ;;  %v7215_v28 = vand.u32 4294901760, %v5284_v56  ;;  %v5310_v10 = vld [vmem:[#allocation2 + $0x120] sm:$0xff] }
  0xc8   : > { %7554 = vst [vmem:[#allocation82_spill] sm:$0xff] %v5296_v49  ;;  %v842_v37 = vsub.f32 %v5275_v26, %v7209_v50  ;;  %7557 = vst [vmem:[#allocation85_spill] sm:$0xff] %v5310_v10  ;;  %3740 = vmatpush1.bf16.msra.mxu0 %v3739_v24  ;;  %v7218_v59 = vand.u32 4294901760, %v5296_v49  ;;  %v7220_v50 = vand.u32 4294901760, %v5288_v45  ;;  %v5318_v51 = vsub.f32 %v5282_v6, %v7214_v3  ;;  %v5325_v24 = vld [vmem:[#allocation2 + $0x130] sm:$0xff] }
  0xc9   : > { %7555 = vst [vmem:[#allocation83_spill] sm:$0xff] %v5304_v11  ;;  %v3741_v21 = vpack.c.bf16 %v837_v53, %v825_v55  ;;  %v831_v4 = vand.u32 4294901760, %v830_v31  ;;  %v7221_v44 = vand.u32 4294901760, %v5304_v11  ;;  %v5323_v17 = vsub.f32 %v5284_v56, %v7215_v28  ;;  %7560 = vst [vmem:[#allocation88_spill] sm:$0xff] %v5325_v24 }
  0xca   : > { %v843_v41 = vand.u32 4294901760, %v842_v37  ;;  %7558 = vst [vmem:[#allocation86_spill] sm:$0xff] %v5318_v51  ;;  %v848_v55 = vsub.f32 %v5296_v49, %v7218_v59  ;;  %v5334_v31 = vsub.f32 %v5288_v45, %v7220_v50  ;;  %v7562_v13 = vand.u32 4294901760, %v5308_v9  ;;  %v5377_v45 = vld [vmem:[#allocation2 + $0x150] sm:$0xff] }
  0xcb   : > { %7559 = vst [vmem:[#allocation87_spill] sm:$0xff] %v5323_v17  ;;  %3742 = vmatprep.subr.bf16.mxu0 %v3741_v21  ;;  %v860_v28 = vsub.f32 %v5304_v11, %v7221_v44  ;;  %v7223_v21 = vand.u32 4294901760, %v5318_v51  ;;  %v7224_v39 = vand.u32 4294901760, %v5323_v17  ;;  %7569 = vst [vmem:[#allocation94_spill] sm:$0xff] %v5377_v45 }
  0xcc   : > { %v3743_v3 = vpack.c.bf16 %v843_v41, %v831_v4  ;;  %v849_v59 = vand.u32 4294901760, %v848_v55  ;;  %v5348_v50 = vsub.f32 %v5308_v9, %v7562_v13  ;;  %v7232_v41 = vand.u32 4294901760, %v5325_v24 }
  0xcd   : > { %v861_v4 = vand.u32 4294901760, %v860_v28  ;;  %v854_v44 = vsub.f32 %v5318_v51, %v7223_v21  ;;  %v866_v37 = vsub.f32 %v5323_v17, %v7224_v39  ;;  %v7564_v55 = vand.u32 4294901760, %v5310_v10 }
  0xce   : > { %7563 = vst [vmem:[#allocation90_spill] sm:$0xff] %v5348_v50  ;;  %3744 = vmatpush1.bf16.msra.mxu0 %v3743_v3  ;;  %v7566_v13 = vand.u32 4294901760, %v5334_v31  ;;  %v7234_v28 = vand.u32 4294901760, %v5348_v50  ;;  %v5371_v21 = vsub.f32 %v5325_v24, %v7232_v41  ;;  %v7239_v41 = vand.u32 4294901760, %v5362_v12  ;;  %v5384_v24 = vld [vmem:[#allocation2 + $0x168] sm:$0xff] }
  0xcf   : > { %v5360_v53 = vsub.f32 %v5310_v10, %v7564_v55  ;;  %v3745_v7 = vpack.c.bf16 %v861_v4, %v849_v59  ;;  %v855_v55 = vand.u32 4294901760, %v854_v44  ;;  %v867_v10 = vand.u32 4294901760, %v866_v37  ;;  %7570 = vst [vmem:[#allocation95_spill] sm:$0xff] %v5384_v24 }
  0xd0   : > { %v872_v3 = vsub.f32 %v5334_v31, %v7566_v13  ;;  %7567 = vst [vmem:[#allocation92_spill] sm:$0xff] %v5371_v21  ;;  %v884_v13 = vsub.f32 %v5348_v50, %v7234_v28  ;;  %v7236_v2 = vand.u32 4294901760, %v5371_v21  ;;  %v7571_v59 = vand.u32 4294901760, %v5342_v38 }
  0xd1   : > { %v7235_v9 = vand.u32 4294901760, %v5360_v53  ;;  %3746 = vmatprep.subr.bf16.mxu0 %v3745_v7  ;;  %v3747_v39 = vpack.c.bf16 %v867_v10, %v855_v55  ;;  %v7241_v4 = vand.u32 4294901760, %v5374_v8  ;;  %v5401_v7 = vsub.f32 %v5362_v12, %v7239_v41  ;;  %v5404_v55 = vld [vmem:[#allocation2 + $0x178] sm:$0xff] }
  0xd2   : > { %v873_v5 = vand.u32 4294901760, %v872_v3  ;;  %v5392_v37 = vsub.f32 %v5342_v38, %v7571_v59  ;;  %v885_v3 = vand.u32 4294901760, %v884_v13  ;;  %v890_v28 = vsub.f32 %v5371_v21, %v7236_v2  ;;  %7574 = vst [vmem:[#allocation98_spill] sm:$0xff] %v5404_v55  ;;  %v5413_v38 = vld [vmem:[#allocation2 + $0x160] sm:$0xff] }
  0xd3   : > { %v878_v44 = vsub.f32 %v5360_v53, %v7235_v9  ;;  %7573 = vst [vmem:[#allocation97_spill] sm:$0xff] %v5401_v7  ;;  %v7243_v10 = vand.u32 4294901760, %v5377_v45  ;;  %3748 = vmatpush1.bf16.msra.mxu0 %v3747_v39  ;;  %v5410_v13 = vsub.f32 %v5374_v8, %v7241_v4  ;;  %v7247_v2 = vand.u32 4294901760, %v5384_v24  ;;  %7576 = vst [vmem:[#allocation100_spill] sm:$0xff] %v5413_v38  ;;  %v5438_v4 = vld [vmem:[#allocation2 + $0x188] sm:$0xff] }
  0xd4   : > { %7572 = vst [vmem:[#allocation96_spill] sm:$0xff] %v5392_v37  ;;  %v7245_v59 = vand.u32 4294901760, %v5392_v37  ;;  %v3749_v56 = vpack.c.bf16 %v885_v3, %v873_v5  ;;  %v891_v41 = vand.u32 4294901760, %v890_v28  ;;  %v7249_v12 = vand.u32 4294901760, %v5401_v7  ;;  %v5431_v28 = vld [vmem:[#allocation2 + $0x170] sm:$0xff]  ;;  %7580 = vst [vmem:[#allocation104_spill] sm:$0xff] %v5438_v4 }
  0xd5   : > { %v879_v9 = vand.u32 4294901760, %v878_v44  ;;  %7575 = vst [vmem:[#allocation99_spill] sm:$0xff] %v5410_v13  ;;  %v5419_v39 = vsub.f32 %v5377_v45, %v7243_v10  ;;  %v5429_v5 = vsub.f32 %v5384_v24, %v7247_v2  ;;  %7579 = vst [vmem:[#allocation103_spill] sm:$0xff] %v5431_v28  ;;  %v7581_v6 = vand.u32 4294901760, %v5410_v13 }
  0xd6   : > { %v896_v44 = vsub.f32 %v5392_v37, %v7245_v59  ;;  %3750 = vmatprep.subr.bf16.mxu0 %v3749_v56  ;;  %v908_v10 = vsub.f32 %v5401_v7, %v7249_v12  ;;  %v7582_v56 = vand.u32 4294901760, %v5404_v55  ;;  %v7592_v40 = vand.u32 4294901760, %v5438_v4 }
  0xd7   : > { %7577 = vst [vmem:[#allocation101_spill] sm:$0xff] %v5419_v39  ;;  %7578 = vst [vmem:[#allocation102_spill] sm:$0xff] %v5429_v5  ;;  %v3751_v3 = vpack.c.bf16 %v891_v41, %v879_v9  ;;  %v7255_v45 = vand.u32 4294901760, %v5419_v39  ;;  %v902_v2 = vsub.f32 %v5410_v13, %v7581_v6  ;;  %v5458_v6 = vld [vmem:[#allocation2 + $0x198] sm:$0xff]  ;;  %v7587_v27 = vand.u32 4294901760, %v5429_v5 }
  0xd8   : > { %v897_v8 = vand.u32 4294901760, %v896_v44  ;;  %v5447_v9 = vsub.f32 %v5404_v55, %v7582_v56  ;;  %v909_v41 = vand.u32 4294901760, %v908_v10  ;;  %v7584_v44 = vand.u32 4294901760, %v5413_v38  ;;  %7586 = vst [vmem:[#allocation107_spill] sm:$0xff] %v5458_v6  ;;  %v5465_v55 = vld [vmem:[#allocation2 + $0x180] sm:$0xff] }
  0xd9   : > { %3752 = vmatpush1.bf16.msra.mxu0 %v3751_v3  ;;  %v914_v12 = vsub.f32 %v5419_v39, %v7255_v45  ;;  %v903_v24 = vand.u32 4294901760, %v902_v2  ;;  %v920_v56 = vsub.f32 %v5429_v5, %v7587_v27  ;;  %7588 = vst [vmem:[#allocation108_spill] sm:$0xff] %v5465_v55  ;;  %v5473_v2 = vld [vmem:[#allocation2 + $0x190] sm:$0xff]  ;;  %v7595_v48 = vand.u32 4294901760, %v5458_v6  ;;  %v5509_v3 = vld [vmem:[#allocation2 + $0x1a0] sm:$0xff] }
  0xda   : > { %7583 = vst [vmem:[#allocation105_spill] sm:$0xff] %v5447_v9  ;;  %v5456_v52 = vsub.f32 %v5413_v38, %v7584_v44  ;;  %v7262_v10 = vand.u32 4294901760, %v5447_v9  ;;  %v3753_v45 = vpack.c.bf16 %v909_v41, %v897_v8  ;;  %v7589_v44 = vand.u32 4294901760, %v5431_v28  ;;  %7591 = vst [vmem:[#allocation110_spill] sm:$0xff] %v5473_v2 }
  0xdb   : > { %v915_v59 = vand.u32 4294901760, %v914_v12  ;;  %v921_v0 = vand.u32 4294901760, %v920_v56  ;;  %v5482_v8 = vsub.f32 %v5438_v4, %v7592_v40  ;;  %v5484_v12 = vld [vmem:[#allocation2 + $0x1a8] sm:$0xff]  ;;  %v5495_v40 = vsub.f32 %v5458_v6, %v7595_v48  ;;  %7599 = vst [vmem:[#allocation116_spill] sm:$0xff] %v5509_v3 }
  0xdc   : > { %7585 = vst [vmem:[#allocation106_spill] sm:$0xff] %v5456_v52  ;;  %v7266_v1 = vand.u32 4294901760, %v5456_v52  ;;  %v5471_v38 = vsub.f32 %v5431_v28, %v7589_v44  ;;  %v932_v27 = vsub.f32 %v5447_v9, %v7262_v10  ;;  %7594 = vst [vmem:[#allocation112_spill] sm:$0xff] %v5484_v12  ;;  %3754 = vmatprep.subr.bf16.mxu0 %v3753_v45  ;;  %v7271_v28 = vand.u32 4294901760, %v5465_v55  ;;  %v5498_v45 = vld [vmem:[#allocation2 + $0x1b8] sm:$0xff] }
  0xdd   : > { %7593 = vst [vmem:[#allocation111_spill] sm:$0xff] %v5482_v8  ;;  %v3755_v41 = vpack.c.bf16 %v915_v59, %v903_v24  ;;  %7596 = vst [vmem:[#allocation113_spill] sm:$0xff] %v5495_v40  ;;  %v7600_v4 = vand.u32 4294901760, %v5482_v8 }
  0xde   : > { %7590 = vst [vmem:[#allocation109_spill] sm:$0xff] %v5471_v38  ;;  %v926_v44 = vsub.f32 %v5456_v52, %v7266_v1  ;;  %v7268_v56 = vand.u32 4294901760, %v5471_v38  ;;  %v933_v10 = vand.u32 4294901760, %v932_v27  ;;  %7597 = vst [vmem:[#allocation114_spill] sm:$0xff] %v5498_v45  ;;  %v5506_v27 = vsub.f32 %v5465_v55, %v7271_v28  ;;  %v5534_v28 = vld [vmem:[#allocation2 + $0x1c8] sm:$0xff] }
  0xdf   : > { %3756 = vmatpush1.bf16.msra.mxu0 %v3755_v41  ;;  %v7276_v1 = vand.u32 4294901760, %v5484_v12  ;;  %v944_v6 = vsub.f32 %v5482_v8, %v7600_v4  ;;  %v7280_v41 = vand.u32 4294901760, %v5495_v40  ;;  %7605 = vst [vmem:[#allocation120_spill] sm:$0xff] %v5534_v28 }
  0xe0   : > { %v927_v24 = vand.u32 4294901760, %v926_v44  ;;  %v938_v59 = vsub.f32 %v5471_v38, %v7268_v56  ;;  %7598 = vst [vmem:[#allocation115_spill] sm:$0xff] %v5506_v27  ;;  %v3757_v48 = vpack.c.bf16 %v933_v10, %v921_v0  ;;  %v7601_v44 = vand.u32 4294901760, %v5473_v2  ;;  %v5527_v10 = vld [vmem:[#allocation2 + $0x1b0] sm:$0xff] }
  0xe1   : > { %v5525_v0 = vsub.f32 %v5484_v12, %v7276_v1  ;;  %7604 = vst [vmem:[#allocation119_spill] sm:$0xff] %v5527_v10  ;;  %v945_v4 = vand.u32 4294901760, %v944_v6  ;;  %v956_v43 = vsub.f32 %v5495_v40, %v7280_v41 }
  0xe2   : > { %v5518_v56 = vsub.f32 %v5473_v2, %v7601_v44  ;;  %v939_v46 = vand.u32 4294901760, %v938_v59  ;;  %3758 = vmatprep.subr.bf16.mxu0 %v3757_v48  ;;  %v7606_v2 = vand.u32 4294901760, %v5506_v27  ;;  %v7607_v48 = vand.u32 4294901760, %v5498_v45 }
  0xe3   : > { %7603 = vst [vmem:[#allocation118_spill] sm:$0xff] %v5525_v0  ;;  %v957_v42 = vand.u32 4294901760, %v956_v43  ;;  %v7612_v34 = vand.u32 4294901760, %v5525_v0 }
  0xe4   : > { %7602 = vst [vmem:[#allocation117_spill] sm:$0xff] %v5518_v56  ;;  %v7284_v44 = vand.u32 4294901760, %v5518_v56  ;;  %v3759_v55 = vpack.c.bf16 %v939_v46, %v927_v24  ;;  %v950_v1 = vsub.f32 %v5506_v27, %v7606_v2  ;;  %v5543_v6 = vsub.f32 %v5498_v45, %v7607_v48  ;;  %v5554_v2 = vld [vmem:[#allocation2 + $0x1d8] sm:$0xff] }
  0xe5   : > { %v7609_v46 = vand.u32 4294901760, %v5509_v3  ;;  %7611 = vst [vmem:[#allocation123_spill] sm:$0xff] %v5554_v2  ;;  %v968_v48 = vsub.f32 %v5525_v0, %v7612_v34  ;;  %v3761_v59 = vpack.c.bf16 %v957_v42, %v945_v4  ;;  %v7617_v0 = vand.u32 4294901760, %v5534_v28 }
  0xe6   : > { %7608 = vst [vmem:[#allocation121_spill] sm:$0xff] %v5543_v6  ;;  %v962_v41 = vsub.f32 %v5518_v56, %v7284_v44  ;;  %3760 = vmatpush1.bf16.msra.mxu0 %v3759_v55  ;;  %v951_v12 = vand.u32 4294901760, %v950_v1  ;;  %v7293_v43 = vand.u32 4294901760, %v5543_v6  ;;  %v5561_v44 = vld [vmem:[#allocation2 + $0x1c0] sm:$0xff]  ;;  %v5569_v1 = vld [vmem:[#allocation2 + $0x1d0] sm:$0xff] }
  0xe7   : > { %v5552_v24 = vsub.f32 %v5509_v3, %v7609_v46  ;;  %7613 = vst [vmem:[#allocation124_spill] sm:$0xff] %v5561_v44  ;;  %v7614_v46 = vand.u32 4294901760, %v5527_v10  ;;  %7616 = vst [vmem:[#allocation126_spill] sm:$0xff] %v5569_v1  ;;  %v969_v55 = vand.u32 4294901760, %v968_v48  ;;  %v5578_v42 = vsub.f32 %v5534_v28, %v7617_v0  ;;  %3762 = vmatprep.subr.bf16.mxu0 %v3761_v59  ;;  %v5594_v59 = vld [vmem:[#allocation2 + $0x1f8] sm:$0xff] }
  0xe8   : > { %v963_v62 = vand.u32 4294901760, %v962_v41  ;;  %v980_v34 = vsub.f32 %v5543_v6, %v7293_v43  ;;  %v5580_v41 = vld [vmem:[#allocation2 + $0x1e8] sm:$0xff]  ;;  %v7620_v6 = vand.u32 4294901760, %v5554_v2  ;;  %7622 = vst [vmem:[#allocation130_spill] sm:$0xff] %v5594_v59 }
  0xe9   : > { %7610 = vst [vmem:[#allocation122_spill] sm:$0xff] %v5552_v24  ;;  %v7297_v61 = vand.u32 4294901760, %v5552_v24  ;;  %v5567_v3 = vsub.f32 %v5527_v10, %v7614_v46  ;;  %7618 = vst [vmem:[#allocation127_spill] sm:$0xff] %v5578_v42  ;;  %v7302_v10 = vand.u32 4294901760, %v5561_v44  ;;  %v7624_v28 = vand.u32 4294901760, %v5578_v42 }
  0xea   : > { %7619 = vst [vmem:[#allocation128_spill] sm:$0xff] %v5580_v41  ;;  %v3763_v4 = vpack.c.bf16 %v963_v62, %v951_v12  ;;  %v981_v43 = vand.u32 4294901760, %v980_v34  ;;  %v5591_v0 = vsub.f32 %v5554_v2, %v7620_v6  ;;  %v5605_v6 = vld [vmem:[#allocation2 + $0x1e0] sm:$0xff]  ;;  %v7625_v2 = vand.u32 4294901760, %v5569_v1 }
  0xeb   : > { %7615 = vst [vmem:[#allocation125_spill] sm:$0xff] %v5567_v3  ;;  %v974_v46 = vsub.f32 %v5552_v24, %v7297_v61  ;;  %v7299_v48 = vand.u32 4294901760, %v5567_v3  ;;  %v5602_v34 = vsub.f32 %v5561_v44, %v7302_v10  ;;  %v7627_v44 = vand.u32 4294901760, %v5580_v41  ;;  %v5631_v10 = vld [vmem:[%s4894_s7 + $0x8] sm:$0xff] }
  0xec   : > { %7621 = vst [vmem:[#allocation129_spill] sm:$0xff] %v5591_v0  ;;  %3764 = vmatpush1.bf16.msra.mxu0 %v3763_v4  ;;  %v3765_v45 = vpack.c.bf16 %v981_v43, %v969_v55  ;;  %v992_v4 = vsub.f32 %v5578_v42, %v7624_v28  ;;  %v5623_v55 = vld [vmem:[#allocation2 + $0x1f0] sm:$0xff] }
  0xed   : > { %v975_v62 = vand.u32 4294901760, %v974_v46  ;;  %v986_v12 = vsub.f32 %v5567_v3, %v7299_v48  ;;  %7623 = vst [vmem:[#allocation131_spill] sm:$0xff] %v5602_v34  ;;  %v7310_v46 = vand.u32 4294901760, %v5591_v0  ;;  %v5614_v48 = vsub.f32 %v5569_v1, %v7625_v2  ;;  %7629 = vst [vmem:[#allocation134_spill] sm:$0xff] %v5623_v55 }
  0xee   : > { %v5621_v43 = vsub.f32 %v5580_v41, %v7627_v44  ;;  %3766 = vmatprep.subr.bf16.mxu0 %v3765_v45  ;;  %v993_v28 = vand.u32 4294901760, %v992_v4  ;;  %v7630_v1 = vand.u32 4294901760, %v5602_v34  ;;  %v7631_v45 = vand.u32 4294901760, %v5594_v59 }
  0xef   : > { %7626 = vst [vmem:[#allocation132_spill] sm:$0xff] %v5614_v48  ;;  %v987_v3 = vand.u32 4294901760, %v986_v12  ;;  %v1004_v42 = vsub.f32 %v5591_v0, %v7310_v46  ;;  %v7314_v2 = vand.u32 4294901760, %v5614_v48  ;;  %v7685_v0 = vld [vmem:[#allocation81_spill] sm:$0xff] }
  0xf0   : > { %7628 = vst [vmem:[#allocation133_spill] sm:$0xff] %v5621_v43  ;;  %v998_v44 = vsub.f32 %v5602_v34, %v7630_v1  ;;  %v7317_v41 = vand.u32 4294901760, %v5621_v43  ;;  %v5640_v4 = vsub.f32 %v5594_v59, %v7631_v45 }
  0xf1   : > { %v3767_v61 = vpack.c.bf16 %v987_v3, %v975_v62  ;;  %v1005_v24 = vand.u32 4294901760, %v1004_v42  ;;  %v1010_v46 = vsub.f32 %v5614_v48, %v7314_v2  ;;  %v7633_v3 = vand.u32 4294901760, %v5605_v6 }
  0xf2   : > { %7632 = vst [vmem:[#allocation135_spill] sm:$0xff] %v5640_v4  ;;  %v999_v1 = vand.u32 4294901760, %v998_v44  ;;  %v1016_v34 = vsub.f32 %v5621_v43, %v7317_v41  ;;  %v7319_v45 = vand.u32 4294901760, %v5640_v4  ;;  %v5656_v42 = vand.u32 4294901760, %v5631_v10 }
  0xf3   : > { %v5649_v62 = vsub.f32 %v5605_v6, %v7633_v3  ;;  %3768 = vmatpush1.bf16.msra.mxu0 %v3767_v61  ;;  %v3769_v59 = vpack.c.bf16 %v1005_v24, %v993_v28  ;;  %v1011_v2 = vand.u32 4294901760, %v1010_v46  ;;  %v7636_v48 = vand.u32 4294901760, %v5623_v55 }
  0xf4   : > { %7635 = vst [vmem:[#allocation137_spill] sm:$0xff] %v5656_v42  ;;  %v1017_v61 = vand.u32 4294901760, %v1016_v34  ;;  %v1028_v44 = vsub.f32 %v5640_v4, %v7319_v45  ;;  %1038 = vmatprep.mubr.f32.mxu0 %v5656_v42  ;;  %v3783_v45 = vpack.c.bf16 %v4968_v29, %v4960_v25  ;;  %v7661_v4 = vld [vmem:[#allocation45_spill] sm:$0xff]  ;;  %v7686_v29 = vand.u32 4294901760, %v7685_v0  ;;  %v7687_v25 = vld [vmem:[#allocation84_spill] sm:$0xff]  ;;  %v7702_v0 = vld [vmem:[#allocation94_spill] sm:$0xff] }
  0xf5   : > { %7634 = vst [vmem:[#allocation136_spill] sm:$0xff] %v5649_v62  ;;  %v7320_v12 = vand.u32 4294901760, %v5649_v62  ;;  %v5662_v3 = vsub.f32 %v5623_v55, %v7636_v48  ;;  %3770 = vmatprep.subr.bf16.mxu0 %v3769_v59  ;;  %v3771_v41 = vpack.c.bf16 %v1011_v2, %v999_v1  ;;  %v5678_v2 = vld [vmem:[%s4894_s7] sm:$0xff]  ;;  %v7703_v40 = vand.u32 4294901760, %v7702_v0  ;;  %v7720_v0 = vld [vmem:[#allocation108_spill] sm:$0xff] }
  0xf6   : > { %v1029_v28 = vand.u32 4294901760, %v1028_v44  ;;  %v5742_v1 = vld [vmem:[%s250_s26] sm:$0xff] }
  0xf7   : > { %7637 = vst [vmem:[#allocation138_spill] sm:$0xff] %v5662_v3  ;;  %v1022_v24 = vsub.f32 %v5649_v62, %v7320_v12  ;;  %v7321_v46 = vand.u32 4294901760, %v5662_v3  ;;  %3772 = vmatpush1.bf16.msra.mxu0 %v3771_v41  ;;  %v3781_v12 = vpack.c.bf16 %v4951_v20, %v4946_v19  ;;  %v7642_v20 = vld [vmem:[#allocation37_spill] sm:$0xff]  ;;  %v7643_v19 = vld [vmem:[#allocation38_spill] sm:$0xff]  ;;  %v5758_v8 = vand.u32 4294901760, %v5742_v1 }
  0xf8   : > { %v3773_v55 = vpack.c.bf16 %v1029_v28, %v1017_v61  ;;  %v3777_v61 = vpack.c.bf16 %v4930_v15, %v4925_v14  ;;  %v3779_v28 = vpack.c.bf16 %v4941_v18, %v4935_v16  ;;  %v3785_v18 = vpack.c.bf16 %v7643_v19, %v7642_v20  ;;  %v5748_v16 = vld [vmem:[%s250_s26 + $0x18] sm:$0xff]  ;;  %v7656_v19 = vld [vmem:[#allocation42_spill] sm:$0xff] }
  0xf9   : > { %v1023_v48 = vand.u32 4294901760, %v1022_v24  ;;  %v1034_v34 = vsub.f32 %v5662_v3, %v7321_v46  ;;  %v5691_v24 = vld [vmem:[%s4894_s7 + $0x18] sm:$0xff]  ;;  %7649 = vst [vmem:[#allocation143_spill] sm:$0xff] %v5758_v8  ;;  %v5768_v14 = vand.u32 4294901760, %v5748_v16  ;;  %v7670_v41 = vld [vmem:[#allocation54_spill] sm:$0xff] }
  0xfa   : > { %3774 = vmatprep.subr.bf16.mxu0 %v3773_v55  ;;  %v5700_v55 = vand.u32 4294901760, %v5678_v2  ;;  %v7652_v20 = vld [vmem:[#allocation40_spill] sm:$0xff]  ;;  %v7653_v15 = vld [vmem:[#allocation41_spill] sm:$0xff]  ;;  %v5796_v27 = vmul.f32 %v5691_v24, %v5691_v24 }
  0xfb   : > { %v1035_v59 = vand.u32 4294901760, %v1034_v34  ;;  %7654 = vst [vmem:[#allocation144_spill] sm:$0xff] %v5768_v14 }
  0xfc   : > { %7638 = vst [vmem:[#allocation139_spill] sm:$0xff] %v5700_v55  ;;  %7663 = vst [vmem:[#allocation149_spill] sm:$0xff] %v5796_v27 }
  0xfd   : > { %v3775_v34 = vpack.c.bf16 %v1035_v59, %v1023_v48  ;;  %v5709_v48 = vand.u32 4294901760, %v5691_v24  ;;  %v5712_v59 = vld [vmem:[%s4894_s7 + $0x10] sm:$0xff] }
  0xff   : > { %3776 = vmatpush1.bf16.msra.mxu0 %v3775_v34  ;;  %7639 = vst [vmem:[#allocation140_spill] sm:$0xff] %v5709_v48  ;;  %v5722_v34 = vld [vmem:[%s250_s26 + $0x8] sm:$0xff] }
 0x100   : > { %3778 = vmatprep.subr.bf16.mxu0 %v3777_v61  ;;  %v5732_v61 = vand.u32 4294901760, %v5712_v59  ;;  %v5740_v44 = vand.u32 4294901760, %v5722_v34 }
 0x102   : > { %1040 = vmatmul.mubr.f32.vlgmr.msra.gmra.mrb[0].mxu0 %v5700_v55  ;;  %7640 = vst [vmem:[#allocation141_spill] sm:$0xff] %v5732_v61  ;;  %7641 = vst [vmem:[#allocation142_spill] sm:$0xff] %v5740_v44  ;;  %v5770_v55 = vld [vmem:[%s250_s26 + $0x10] sm:$0xff] }
 0x103   : > { %3780 = vmatpush1.bf16.msra.mxu0 %v3779_v28  ;;  %1046 = vmatprep.mubr.f32.mxu0 %v5709_v48  ;;  %v3787_v28 = vpack.c.bf16 %v7653_v15, %v7652_v20  ;;  %v5782_v15 = vand.u32 4294901760, %v5770_v55  ;;  %v5786_v20 = vmul.f32 %v5678_v2, %v5678_v2 }
 0x104   : > { %3782 = vmatprep.subr.bf16.mxu0 %v3781_v12 }
 0x105   : > { %7658 = vst [vmem:[#allocation146_spill] sm:$0xff] %v5782_v15  ;;  %7659 = vst [vmem:[#allocation147_spill] sm:$0xff] %v5786_v20 }
 0x106   : > { %1048 = vmatmul.mubr.f32.gmra.mrb[2].mxu0 %v5732_v61  ;;  %v5774_v61 = vmul.f32 %v5631_v10, %v5631_v10 }
 0x107   : > { %3784 = vmatpush1.bf16.msra.mxu0 %v3783_v45  ;;  %1054 = vmatprep.mubr.f32.mxu0 %v5740_v44  ;;  %v7657_v45 = vld [vmem:[#allocation43_spill] sm:$0xff]  ;;  %v7660_v44 = vld [vmem:[#allocation44_spill] sm:$0xff] }
 0x108   : > { %7655 = vst [vmem:[#allocation145_spill] sm:$0xff] %v5774_v61  ;;  %3786 = vmatprep.subr.bf16.mxu0 %v3785_v18  ;;  %v3789_v43 = vpack.c.bf16 %v7657_v45, %v7656_v19  ;;  %v3791_v12 = vpack.c.bf16 %v7661_v4, %v7660_v44  ;;  %v5792_v18 = vand.u32 4294901760, %v5774_v61  ;;  %v7664_v45 = vld [vmem:[#allocation14_spill] sm:$0xff]  ;;  %v5809_v4 = vand.u32 4294901760, %v5786_v20  ;;  %v7680_v20 = vld [vmem:[#allocation16_spill] sm:$0xff] }
 0x109   : > { %v7665_v19 = vand.u32 4294901760, %v7664_v45  ;;  %v5813_v44 = vmul.f32 %v5712_v59, %v5712_v59  ;;  %v7681_v61 = vand.u32 4294901760, %v7680_v20  ;;  %v7697_v20 = vld [vmem:[#allocation91_spill] sm:$0xff] }
 0x10a   : > { %1056 = vmatmul.mubr.f32.gmra.mrb[4].mxu0 %v5758_v8  ;;  %7662 = vst [vmem:[#allocation148_spill] sm:$0xff] %v5792_v18  ;;  %v7666_v8 = vld [vmem:[#allocation15_spill] sm:$0xff]  ;;  %v7698_v56 = vand.u32 4294901760, %v7697_v20 }
 0x10b   : > { %3788 = vmatpush1.bf16.msra.mxu0 %v3787_v28  ;;  %1062 = vmatprep.mubr.f32.mxu0 %v5768_v14  ;;  %v7667_v62 = vand.u32 4294901760, %v7666_v8  ;;  %v7669_v28 = vld [vmem:[#allocation52_spill] sm:$0xff]  ;;  %7671 = vst [vmem:[#allocation15_spill] sm:$0xff] %v5809_v4  ;;  %7672 = vst [vmem:[#allocation150_spill] sm:$0xff] %v5813_v44  ;;  %v5817_v8 = vmul.f32 %v5722_v34, %v5722_v34  ;;  %v7717_v20 = vld [vmem:[#allocation107_spill] sm:$0xff] }
 0x10c   : > { %3790 = vmatprep.subr.bf16.mxu0 %v3789_v43  ;;  %v3793_v48 = vpack.c.bf16 %v7670_v41, %v7669_v28  ;;  %v5827_v28 = vand.u32 4294901760, %v5796_v27  ;;  %v7695_v27 = vld [vmem:[#allocation89_spill] sm:$0xff] }
 0x10d   : > { %v5802_v3 = vpack.c.bf16 %v7667_v62, %v7665_v19  ;;  %7673 = vst [vmem:[#allocation151_spill] sm:$0xff] %v5817_v8  ;;  %v7674_v19 = vld [vmem:[#allocation79_spill] sm:$0xff]  ;;  %v7676_v62 = vld [vmem:[#allocation80_spill] sm:$0xff] }
 0x10e   : > { %1064 = vmatmul.mubr.f32.gmra.mrb[6].mxu0 %v5782_v15  ;;  %v7675_v43 = vand.u32 4294901760, %v7674_v19  ;;  %v7677_v45 = vand.u32 4294901760, %v7676_v62  ;;  %7679 = vst [vmem:[#allocation80_spill] sm:$0xff] %v5827_v28  ;;  %v7682_v15 = vld [vmem:[#allocation17_spill] sm:$0xff]  ;;  %v7688_v19 = vand.u32 4294901760, %v7687_v25 }
 0x10f   : > { %7668 = vst [vmem:[#allocation14_spill] sm:$0xff] %v5802_v3  ;;  %3650 = vmatprep.subr.bf16.mxu1 %v5802_v3  ;;  %3792 = vmatpush1.bf16.msra.mxu0 %v3791_v12  ;;  %v7683_v14 = vand.u32 4294901760, %v7682_v15  ;;  %v7692_v12 = vld [vmem:[#allocation88_spill] sm:$0xff] }
 0x110   : > { %v5823_v41 = vpack.c.bf16 %v7677_v45, %v7675_v43  ;;  %1070 = vmatprep.mubr.f32.mxu0 %v5792_v18  ;;  %v5839_v46 = vpack.c.bf16 %v7688_v19, %v7686_v29  ;;  %v7690_v43 = vld [vmem:[#allocation85_spill] sm:$0xff]  ;;  %v7693_v45 = vand.u32 4294901760, %v7692_v12  ;;  %3794 = vmatprep.subr.bf16.mxu0 %v3793_v48  ;;  %v7705_v29 = vld [vmem:[#allocation95_spill] sm:$0xff] }
 0x111   : > { %v5833_v3 = vpack.c.bf16 %v7683_v14, %v7681_v61  ;;  %v7691_v62 = vand.u32 4294901760, %v7690_v43  ;;  %v7700_v14 = vld [vmem:[#allocation93_spill] sm:$0xff]  ;;  %v7706_v19 = vand.u32 4294901760, %v7705_v29  ;;  %v7707_v43 = vld [vmem:[#allocation98_spill] sm:$0xff]  ;;  %v7721_v29 = vand.u32 4294901760, %v7720_v0 }
 0x112   : > { %7678 = vst [vmem:[#allocation79_spill] sm:$0xff] %v5823_v41  ;;  %7689 = vst [vmem:[#allocation17_spill] sm:$0xff] %v5839_v46  ;;  %v7696_v41 = vand.u32 4294901760, %v7695_v27  ;;  %v7701_v61 = vand.u32 4294901760, %v7700_v14  ;;  %v7708_v46 = vand.u32 4294901760, %v7707_v43  ;;  %1072 = vmatmul.mubr.f32.gmra.mrb[8].mxu0 %v5809_v4  ;;  %v7718_v14 = vand.u32 4294901760, %v7717_v20 }
 0x113   : > { %7684 = vst [vmem:[#allocation16_spill] sm:$0xff] %v5833_v3  ;;  %v5845_v18 = vpack.c.bf16 %v7693_v45, %v7691_v62  ;;  %v7710_v62 = vld [vmem:[#allocation100_spill] sm:$0xff]  ;;  %v7712_v45 = vld [vmem:[#allocation103_spill] sm:$0xff]  ;;  %3652 = vmatpush1.bf16.msra.mxu1 %v5833_v3  ;;  %1078 = vmatprep.mubr.f32.mxu0 %v5827_v28 }
 0x114   : > { %v5851_v15 = vpack.c.bf16 %v7698_v56, %v7696_v41  ;;  %v5857_v25 = vpack.c.bf16 %v7703_v40, %v7701_v61  ;;  %v5863_v12 = vpack.c.bf16 %v7708_v46, %v7706_v19  ;;  %v7711_v48 = vand.u32 4294901760, %v7710_v62  ;;  %v7715_v41 = vld [vmem:[#allocation104_spill] sm:$0xff]  ;;  %v7722_v19 = vld [vmem:[#allocation110_spill] sm:$0xff]  ;;  %v7728_v20 = vld [vmem:[#allocation19_spill] sm:$0xff] }
 0x115   : > { %7694 = vst [vmem:[#allocation81_spill] sm:$0xff] %v5845_v18  ;;  %v7713_v27 = vand.u32 4294901760, %v7712_v45  ;;  %v5874_v56 = vand.u32 4294901760, %v5813_v44  ;;  %v5878_v40 = vmul.f32 %v5742_v1, %v5742_v1  ;;  %v7716_v46 = vand.u32 4294901760, %v7715_v41  ;;  %v7726_v41 = vld [vmem:[#allocation18_spill] sm:$0xff]  ;;  %v7738_v28 = vld [vmem:[#allocation119_spill] sm:$0xff] }
 0x116   : > { %7699 = vst [vmem:[#allocation84_spill] sm:$0xff] %v5851_v15  ;;  %7704 = vst [vmem:[#allocation85_spill] sm:$0xff] %v5857_v25  ;;  %v7723_v43 = vand.u32 4294901760, %v7722_v19  ;;  %v5897_v45 = vand.u32 4294901760, %v5817_v8  ;;  %v7736_v8 = vld [vmem:[#allocation116_spill] sm:$0xff]  ;;  %v7739_v4 = vand.u32 4294901760, %v7738_v28 }
 0x117   : > { %7709 = vst [vmem:[#allocation88_spill] sm:$0xff] %v5863_v12  ;;  %v5869_v18 = vpack.c.bf16 %v7713_v27, %v7711_v48  ;;  %v5884_v61 = vpack.c.bf16 %v7718_v14, %v7716_v46  ;;  %v7725_v48 = vpack.c.bf16 %v5130_v30, %v5125_v47  ;;  %v5901_v27 = vmul.f32 %v5748_v16, %v5748_v16 }
 0x118   : > { %v5890_v62 = vpack.c.bf16 %v7723_v43, %v7721_v29  ;;  %v7727_v46 = vand.u32 4294901760, %v7726_v41  ;;  %v7729_v14 = vand.u32 4294901760, %v7728_v20  ;;  %v7730_v29 = vld [vmem:[#allocation112_spill] sm:$0xff]  ;;  %v7732_v43 = vld [vmem:[#allocation114_spill] sm:$0xff]  ;;  %v7735_v47 = vpack.c.bf16 %v5150_v63, %v5139_v35  ;;  %1080 = vmatmul.mubr.f32.gmra.mrb[10].mxu0 %v5874_v56 }
 0x119   : > { %7714 = vst [vmem:[#allocation89_spill] sm:$0xff] %v5869_v18  ;;  %7719 = vst [vmem:[#allocation91_spill] sm:$0xff] %v5884_v61  ;;  %3796 = vmatpush1.bf16.msra.mxu0 %v7725_v48  ;;  %v7731_v19 = vand.u32 4294901760, %v7730_v29  ;;  %v7733_v30 = vand.u32 4294901760, %v7732_v43  ;;  %v7737_v44 = vand.u32 4294901760, %v7736_v8  ;;  %v7741_v41 = vld [vmem:[#allocation120_spill] sm:$0xff]  ;;  %1086 = vmatprep.mubr.f32.mxu0 %v5897_v45 }
 0x11a   : > { %7724 = vst [vmem:[#allocation93_spill] sm:$0xff] %v5890_v62  ;;  %v5907_v0 = vpack.c.bf16 %v7729_v14, %v7727_v46  ;;  %3798 = vmatprep.subr.bf16.mxu0 %v7735_v47  ;;  %v7742_v20 = vand.u32 4294901760, %v7741_v41  ;;  %v7743_v46 = vld [vmem:[#allocation123_spill] sm:$0xff]  ;;  %v7746_v29 = vld [vmem:[#allocation124_spill] sm:$0xff]  ;;  %v7753_v35 = vld [vmem:[#allocation130_spill] sm:$0xff]  ;;  %v7757_v28 = vand.u32 4294901760, %v5605_v6 }
 0x11b   : > { %v5913_v48 = vpack.c.bf16 %v7733_v30, %v7731_v19  ;;  %v5922_v62 = vpack.c.bf16 %v7739_v4, %v7737_v44  ;;  %v7744_v14 = vand.u32 4294901760, %v7743_v46  ;;  %v7747_v43 = vand.u32 4294901760, %v7746_v29  ;;  %v7748_v30 = vld [vmem:[#allocation126_spill] sm:$0xff]  ;;  %v7751_v63 = vld [vmem:[#allocation128_spill] sm:$0xff]  ;;  %v7766_v6 = vld [vmem:[#allocation21_spill] sm:$0xff] }
 0x11c   : > { %v7749_v19 = vand.u32 4294901760, %v7748_v30  ;;  %v7752_v47 = vand.u32 4294901760, %v7751_v63  ;;  %v7754_v8 = vand.u32 4294901760, %v7753_v35  ;;  %3654 = vmatprep.subr.bf16.mxu1 %v5907_v0  ;;  %v5945_v4 = vand.u32 4294901760, %v5878_v40  ;;  %v7758_v41 = vld [vmem:[#allocation134_spill] sm:$0xff]  ;;  %v7764_v29 = vld [vmem:[#allocation20_spill] sm:$0xff] }
 0x11d   : > { %7734 = vst [vmem:[#allocation94_spill] sm:$0xff] %v5913_v48  ;;  %7740 = vst [vmem:[#allocation95_spill] sm:$0xff] %v5922_v62  ;;  %v5928_v3 = vpack.c.bf16 %v7744_v14, %v7742_v20  ;;  %v5949_v44 = vmul.f32 %v5770_v55, %v5770_v55  ;;  %v7759_v20 = vand.u32 4294901760, %v7758_v41  ;;  %v7761_v35 = vpack.c.bf16 %v5178_v33, %v5160_v36  ;;  %v7772_v41 = vld [vmem:[#allocation31_spill] sm:$0xff] }
 0x11e   : > { %v5934_v48 = vpack.c.bf16 %v7749_v19, %v7747_v43  ;;  %v5940_v61 = vpack.c.bf16 %v7754_v8, %v7752_v47  ;;  %7756 = vst [vmem:[#allocation104_spill] sm:$0xff] %v5945_v4  ;;  %v5962_v46 = vand.u32 4294901760, %v5901_v27  ;;  %v5966_v14 = vmul.f32 %v5722_v34, %v5631_v10  ;;  %v7770_v8 = vld [vmem:[#allocation30_spill] sm:$0xff]  ;;  %1088 = vmatmul.mubr.f32.gmra.mrb[12].mxu0 %v5945_v4 }
 0x11f   : > { %7745 = vst [vmem:[#allocation98_spill] sm:$0xff] %v5928_v3  ;;  %v5955_v63 = vpack.c.bf16 %v7759_v20, %v7757_v28  ;;  %3800 = vmatpush1.bf16.msra.mxu0 %v7761_v35  ;;  %v7765_v43 = vand.u32 4294901760, %v7764_v29  ;;  %v7767_v30 = vand.u32 4294901760, %v7766_v6  ;;  %v7769_v47 = vpack.c.bf16 %v5215_v32, %v5200_v57 }
 0x120   : > { %7750 = vst [vmem:[#allocation100_spill] sm:$0xff] %v5934_v48  ;;  %7755 = vst [vmem:[#allocation103_spill] sm:$0xff] %v5940_v61  ;;  %v7771_v28 = vand.u32 4294901760, %v7770_v8  ;;  %v7773_v20 = vand.u32 4294901760, %v7772_v41  ;;  %v5986_v29 = vand.u32 4294901760, %v5949_v44  ;;  %v7776_v6 = vpack.c.bf16 %v5226_v54, %v5221_v58  ;;  %1094 = vmatprep.mubr.f32.mxu0 %v5962_v46  ;;  %v7777_v8 = vld [vmem:[#allocation32_spill] sm:$0xff] }
 0x121   : > { %7760 = vst [vmem:[#allocation107_spill] sm:$0xff] %v5955_v63  ;;  %7762 = vst [vmem:[#allocation108_spill] sm:$0xff] %v5962_v46  ;;  %v5972_v19 = vpack.c.bf16 %v7767_v30, %v7765_v43  ;;  %3802 = vmatprep.subr.bf16.mxu0 %v7769_v47  ;;  %v5990_v43 = vmul.f32 %v5742_v1, %v5678_v2  ;;  %v5998_v30 = vand.u32 4294901760, %v5966_v14  ;;  %v7779_v41 = vld [vmem:[#allocation33_spill] sm:$0xff]  ;;  %v7785_v58 = vld [vmem:[#allocation35_spill] sm:$0xff] }
 0x122   : > { %7763 = vst [vmem:[#allocation110_spill] sm:$0xff] %v5966_v14  ;;  %v5981_v35 = vpack.c.bf16 %v7773_v20, %v7771_v28  ;;  %v6002_v47 = vmul.f32 %v5748_v16, %v5691_v24  ;;  %v7778_v28 = vand.u32 4294901760, %v7777_v8  ;;  %v7780_v20 = vand.u32 4294901760, %v7779_v41  ;;  %1096 = vmatmul.mubr.f32.gmra.mrb[14].mxu0 %v5986_v29  ;;  %v7790_v41 = vld [vmem:[#allocation39_spill] sm:$0xff] }
 0x123   : > { %7768 = vst [vmem:[#allocation18_spill] sm:$0xff] %v5972_v19  ;;  %3656 = vmatpush1.bf16.msra.mxu1 %v5972_v19  ;;  %7775 = vst [vmem:[#allocation112_spill] sm:$0xff] %v5990_v43  ;;  %3804 = vmatpush1.bf16.msra.mxu0 %v7776_v6  ;;  %v7782_v57 = vpack.c.bf16 %v5246_v23, %v5238_v60  ;;  %v7783_v6 = vld [vmem:[#allocation34_spill] sm:$0xff]  ;;  %v7786_v33 = vand.u32 4294901760, %v7785_v58  ;;  %v6022_v8 = vand.u32 4294901760, %v5990_v43  ;;  %v7796_v14 = vld [vmem:[#allocation47_spill] sm:$0xff] }
 0x124   : > { %7774 = vst [vmem:[#allocation19_spill] sm:$0xff] %v5981_v35  ;;  %3658 = vmatprep.subr.bf16.mxu1 %v5981_v35  ;;  %v6008_v32 = vpack.c.bf16 %v7780_v20, %v7778_v28  ;;  %v7784_v54 = vand.u32 4294901760, %v7783_v6  ;;  %v6026_v28 = vmul.f32 %v5770_v55, %v5712_v59  ;;  %1102 = vmatprep.mubr.f32.mxu0 %v5998_v30  ;;  %v6034_v58 = vand.u32 4294901760, %v6002_v47  ;;  %v7794_v60 = vld [vmem:[#allocation46_spill] sm:$0xff] }
 0x125   : > { %3806 = vmatprep.subr.bf16.mxu0 %v7782_v57  ;;  %v7787_v57 = vpack.c.bf16 %v5275_v26, %v5265_v22  ;;  %v7791_v20 = vand.u32 4294901760, %v7790_v41  ;;  %v7793_v23 = vpack.c.bf16 %v5304_v11, %v5296_v49  ;;  %v7795_v43 = vand.u32 4294901760, %v7794_v60  ;;  %v7805_v11 = vld [vmem:[#allocation50_spill] sm:$0xff] }
 0x126   : > { %7781 = vst [vmem:[#allocation114_spill] sm:$0xff] %v6008_v32  ;;  %v6017_v36 = vpack.c.bf16 %v7786_v33, %v7784_v54  ;;  %v7788_v33 = vld [vmem:[#allocation36_spill] sm:$0xff]  ;;  %v7797_v26 = vand.u32 4294901760, %v7796_v14  ;;  %1104 = vmatmul.mubr.f32.gmra.mrb[16].mxu0 %v6022_v8  ;;  %v7802_v14 = vld [vmem:[#allocation49_spill] sm:$0xff]  ;;  %v7806_v49 = vand.u32 4294901760, %v7805_v11 }
 0x127   : > { %3660 = vmatpush1.bf16.msra.mxu1 %v6008_v32  ;;  %3808 = vmatpush1.bf16.msra.mxu0 %v7787_v57  ;;  %v7789_v54 = vand.u32 4294901760, %v7788_v33  ;;  %v6054_v33 = vand.u32 4294901760, %v6026_v28 }
 0x128   : > { %3662 = vmatprep.subr.bf16.mxu1 %v6017_v36  ;;  %3810 = vmatprep.subr.bf16.mxu0 %v7793_v23  ;;  %v6049_v57 = vpack.c.bf16 %v7797_v26, %v7795_v43  ;;  %v6063_v23 = vsub.f32 %v5631_v10, %v5656_v42  ;;  %v7800_v26 = vld [vmem:[#allocation48_spill] sm:$0xff]  ;;  %v7803_v43 = vand.u32 4294901760, %v7802_v14  ;;  %v7809_v10 = vpack.c.bf16 %v5371_v21, %v5360_v53  ;;  %v7812_v14 = vld [vmem:[#allocation57_spill] sm:$0xff] }
 0x129   : > { %v6040_v6 = vpack.c.bf16 %v7791_v20, %v7789_v54  ;;  %7798 = vst [vmem:[#allocation119_spill] sm:$0xff] %v6054_v33  ;;  %v7799_v54 = vpack.c.bf16 %v5323_v17, %v5318_v51  ;;  %1110 = vmatprep.mubr.f32.mxu0 %v6034_v58  ;;  %v7801_v60 = vand.u32 4294901760, %v7800_v26  ;;  %v7804_v20 = vpack.c.bf16 %v5348_v50, %v5334_v31  ;;  %v7807_v17 = vld [vmem:[#allocation51_spill] sm:$0xff]  ;;  %v7810_v26 = vld [vmem:[#allocation53_spill] sm:$0xff] }
 0x12a   : > { %1112 = vmatmul.mubr.f32.gmra.mrb[18].mxu0 %v6054_v33  ;;  %v7813_v11 = vand.u32 4294901760, %v7812_v14  ;;  %v7822_v14 = vld [vmem:[#allocation65_spill] sm:$0xff] }
 0x12b   : > { %7792 = vst [vmem:[#allocation116_spill] sm:$0xff] %v6040_v6  ;;  %3664 = vmatpush1.bf16.msra.mxu1 %v6040_v6  ;;  %3812 = vmatpush1.bf16.msra.mxu0 %v7799_v54  ;;  %v6069_v41 = vpack.c.bf16 %v7803_v43, %v7801_v60  ;;  %v7808_v54 = vand.u32 4294901760, %v7807_v17  ;;  %v7811_v60 = vand.u32 4294901760, %v7810_v26  ;;  %v7815_v17 = vld [vmem:[#allocation61_spill] sm:$0xff]  ;;  %v7820_v26 = vld [vmem:[#allocation64_spill] sm:$0xff] }
 0x12c   : > { %3666 = vmatprep.subr.bf16.mxu1 %v6049_v57  ;;  %3814 = vmatprep.subr.bf16.mxu0 %v7804_v20  ;;  %v7816_v20 = vand.u32 4294901760, %v7815_v17  ;;  %v7855_v21 = vld [vmem:[#allocation81_spill] sm:$0xff] }
 0x12d   : > { %v6078_v51 = vpack.c.bf16 %v7808_v54, %v7806_v49  ;;  %1312 = vmatprep.mubr.f32.mxu0 %v6063_v23  ;;  %v6091_v43 = vpack.c.bf16 %v7813_v11, %v7811_v60  ;;  %v7814_v49 = vpack.c.bf16 %v5401_v7, %v5392_v37  ;;  %v7817_v54 = vld [vmem:[#allocation63_spill] sm:$0xff]  ;;  %v7821_v60 = vand.u32 4294901760, %v7820_v26  ;;  %v7830_v26 = vld [vmem:[#allocation69_spill] sm:$0xff] }
 0x12e   : > { %v7818_v42 = vand.u32 4294901760, %v7817_v54  ;;  %v7823_v11 = vand.u32 4294901760, %v7822_v14  ;;  %v7832_v14 = vld [vmem:[#allocation73_spill] sm:$0xff] }
 0x12f   : > { %3668 = vmatpush1.bf16.msra.mxu1 %v6069_v41  ;;  %3816 = vmatpush1.bf16.msra.mxu0 %v7809_v10  ;;  %v7819_v10 = vpack.c.bf16 %v5419_v39, %v5410_v13 }
 0x130   : > { %3670 = vmatprep.subr.bf16.mxu1 %v6078_v51  ;;  %3818 = vmatprep.subr.bf16.mxu0 %v7814_v49  ;;  %v6100_v50 = vpack.c.bf16 %v7818_v42, %v7816_v20  ;;  %v6111_v7 = vpack.c.bf16 %v7823_v11, %v7821_v60  ;;  %v7824_v49 = vpack.c.bf16 %v5447_v9, %v5429_v5  ;;  %v7825_v42 = vld [vmem:[#allocation66_spill] sm:$0xff]  ;;  %v7827_v20 = vld [vmem:[#allocation68_spill] sm:$0xff]  ;;  %v7831_v60 = vand.u32 4294901760, %v7830_v26  ;;  %v7842_v26 = vld [vmem:[#allocation115_spill] sm:$0xff] }
 0x131   : > { %v7826_v17 = vand.u32 4294901760, %v7825_v42  ;;  %v7828_v54 = vand.u32 4294901760, %v7827_v20  ;;  %v7833_v11 = vand.u32 4294901760, %v7832_v14  ;;  %v7835_v42 = vld [vmem:[#allocation111_spill] sm:$0xff]  ;;  %v7845_v14 = vld [vmem:[#allocation118_spill] sm:$0xff] }
 0x133   : > { %3672 = vmatpush1.bf16.msra.mxu1 %v6091_v43  ;;  %3820 = vmatpush1.bf16.msra.mxu0 %v7819_v10  ;;  %v6120_v37 = vpack.c.bf16 %v7828_v54, %v7826_v17  ;;  %v7829_v10 = vpack.c.bf16 %v5471_v38, %v5456_v52  ;;  %v6131_v9 = vpack.c.bf16 %v7833_v11, %v7831_v60  ;;  %v7837_v17 = vld [vmem:[#allocation76_spill] sm:$0xff]  ;;  %v7839_v54 = vld [vmem:[#allocation77_spill] sm:$0xff] }
 0x134   : > { %3674 = vmatprep.subr.bf16.mxu1 %v6100_v50  ;;  %3822 = vmatprep.subr.bf16.mxu0 %v7824_v49  ;;  %v7834_v49 = vld [vmem:[#allocation113_spill] sm:$0xff]  ;;  %v7838_v20 = vand.u32 4294901760, %v7837_v17  ;;  %v7840_v39 = vand.u32 4294901760, %v7839_v54  ;;  %v7850_v54 = vld [vmem:[#allocation122_spill] sm:$0xff] }
 0x135   : > { %v7836_v5 = vpack.c.bf16 %v7834_v49, %v7835_v42  ;;  %v7844_v60 = vld [vmem:[#allocation121_spill] sm:$0xff]  ;;  %v7847_v49 = vld [vmem:[#allocation79_spill] sm:$0xff] }
 0x136   : > { %v6140_v13 = vpack.c.bf16 %v7840_v39, %v7838_v20  ;;  %v7846_v11 = vpack.c.bf16 %v7844_v60, %v7845_v14  ;;  %v7849_v17 = vld [vmem:[#allocation125_spill] sm:$0xff]  ;;  %v7853_v42 = vld [vmem:[#allocation127_spill] sm:$0xff] }
 0x137   : > { %3676 = vmatpush1.bf16.msra.mxu1 %v6111_v7  ;;  %3824 = vmatpush1.bf16.msra.mxu0 %v7829_v10  ;;  %v7841_v10 = vld [vmem:[#allocation117_spill] sm:$0xff]  ;;  %v7851_v39 = vpack.c.bf16 %v7849_v17, %v7850_v54  ;;  %v7862_v17 = vld [vmem:[#allocation139_spill] sm:$0xff]  ;;  %v7866_v54 = vld [vmem:[#allocation140_spill] sm:$0xff] }
 0x138   : > { %3678 = vmatprep.subr.bf16.mxu1 %v6120_v37  ;;  %3826 = vmatprep.subr.bf16.mxu0 %v7836_v5  ;;  %v7843_v38 = vpack.c.bf16 %v7841_v10, %v7842_v26  ;;  %v7848_v5 = vld [vmem:[#allocation17_spill] sm:$0xff]  ;;  %v7857_v10 = vld [vmem:[#allocation131_spill] sm:$0xff] }
 0x139   : > { %v7852_v20 = vld [vmem:[#allocation129_spill] sm:$0xff] }
 0x13a   : > { %v7854_v52 = vpack.c.bf16 %v7852_v20, %v7853_v42  ;;  %v7860_v14 = vld [vmem:[#allocation133_spill] sm:$0xff]  ;;  %v7864_v20 = vld [vmem:[#allocation136_spill] sm:$0xff] }
 0x13b   : > { %3680 = vmatpush1.bf16.msra.mxu1 %v6131_v9  ;;  %3828 = vmatpush1.bf16.msra.mxu0 %v7843_v38  ;;  %v7856_v38 = vld [vmem:[#allocation132_spill] sm:$0xff] }
 0x13c   : > { %3682 = vmatprep.subr.bf16.mxu1 %v6140_v13  ;;  %3830 = vmatprep.subr.bf16.mxu0 %v7846_v11  ;;  %v7858_v60 = vpack.c.bf16 %v7856_v38, %v7857_v10  ;;  %v7859_v11 = vld [vmem:[#allocation135_spill] sm:$0xff]  ;;  %v6177_v38 = vsub.f32 %v5691_v24, %v7866_v54  ;;  %v7872_v54 = vld [vmem:[#allocation93_spill] sm:$0xff] }
 0x13d   : > { %v7861_v26 = vpack.c.bf16 %v7859_v11, %v7860_v14  ;;  %v7870_v11 = vld [vmem:[#allocation16_spill] sm:$0xff] }
 0x13f   : > { %3684 = vmatpush1.bf16.msra.mxu1 %v7847_v49  ;;  %3832 = vmatpush1.bf16.msra.mxu0 %v7851_v39  ;;  %v6169_v39 = vsub.f32 %v5678_v2, %v7862_v17  ;;  %v7869_v17 = vld [vmem:[#allocation91_spill] sm:$0xff] }
 0x140   : > { %3686 = vmatprep.subr.bf16.mxu1 %v7848_v5  ;;  %3834 = vmatprep.subr.bf16.mxu0 %v7854_v52  ;;  %v7863_v52 = vld [vmem:[#allocation138_spill] sm:$0xff] }
 0x141   : > { %v7865_v42 = vpack.c.bf16 %v7863_v52, %v7864_v20 }
 0x143   : > { %3688 = vmatpush1.bf16.msra.mxu1 %v7855_v21  ;;  %3836 = vmatpush1.bf16.msra.mxu0 %v7858_v60  ;;  %v7867_v60 = vld [vmem:[#allocation14_spill] sm:$0xff] }
 0x144   : > { %3690 = vmatprep.subr.bf16.mxu1 %v5851_v15  ;;  %3838 = vmatprep.subr.bf16.mxu0 %v7861_v26  ;;  %v7868_v26 = vld [vmem:[#allocation141_spill] sm:$0xff] }
 0x145   : > { %v6184_v2 = vsub.f32 %v5712_v59, %v7868_v26  ;;  %v7874_v26 = vld [vmem:[#allocation94_spill] sm:$0xff] }
 0x147   : > { %3692 = vmatpush1.bf16.msra.mxu1 %v5857_v25  ;;  %3840 = vmatpush1.bf16.msra.mxu0 %v7865_v42  ;;  %v7871_v42 = vld [vmem:[#allocation142_spill] sm:$0xff] }
 0x148   : > { %3694 = vmatprep.subr.bf16.mxu1 %v5863_v12  ;;  %3842 = vmatprep.subr.bf16.mxu0 %v7867_v60  ;;  %v6191_v24 = vsub.f32 %v5722_v34, %v7871_v42  ;;  %v7873_v60 = vld [vmem:[#allocation143_spill] sm:$0xff]  ;;  %v7876_v42 = vld [vmem:[#allocation146_spill] sm:$0xff] }
 0x149   : > { %v6198_v59 = vsub.f32 %v5742_v1, %v7873_v60  ;;  %v6212_v1 = vsub.f32 %v5770_v55, %v7876_v42  ;;  %v7877_v60 = vld [vmem:[#allocation148_spill] sm:$0xff] }
 0x14a   : > { %1315 = vmatmul.mubr.f32.vlgmr.msra.gmra.mrb[0].mxu0 %v6169_v39  ;;  %v7881_v42 = vld [vmem:[#allocation80_spill] sm:$0xff] }
 0x14b   : > { %3696 = vmatpush1.bf16.msra.mxu1 %v5869_v18  ;;  %3844 = vmatpush1.bf16.msra.mxu0 %v7870_v11  ;;  %v7875_v11 = vld [vmem:[#allocation144_spill] sm:$0xff] }
 0x14c   : > { %3698 = vmatprep.subr.bf16.mxu1 %v7869_v17  ;;  %1322 = vmatprep.mubr.f32.mxu0 %v6177_v38  ;;  %v6205_v34 = vsub.f32 %v5748_v16, %v7875_v11  ;;  %v7879_v11 = vld [vmem:[#allocation15_spill] sm:$0xff] }
 0x14d   : > { %3846 = vmatprep.subr.bf16.mxu0 %v5907_v0 }
 0x14e   : > { %1325 = vmatmul.mubr.f32.gmra.mrb[2].mxu0 %v6184_v2 }
 0x14f   : > { %3700 = vmatpush1.bf16.msra.mxu1 %v7872_v54  ;;  %3848 = vmatpush1.bf16.msra.mxu0 %v5972_v19  ;;  %v7878_v19 = vld [vmem:[#allocation145_spill] sm:$0xff] }
 0x150   : > { %3702 = vmatprep.subr.bf16.mxu1 %v7874_v26  ;;  %1332 = vmatprep.mubr.f32.mxu0 %v6191_v24  ;;  %v6219_v16 = vsub.f32 %v7878_v19, %v7877_v60  ;;  %v7883_v60 = vld [vmem:[#allocation150_spill] sm:$0xff] }
 0x151   : > { %3850 = vmatprep.subr.bf16.mxu0 %v5981_v35  ;;  %v7880_v35 = vld [vmem:[#allocation147_spill] sm:$0xff] }
 0x152   : > { %1335 = vmatmul.mubr.f32.gmra.mrb[4].mxu0 %v6198_v59  ;;  %v6226_v55 = vsub.f32 %v7880_v35, %v7879_v11  ;;  %v6240_v35 = vsub.f32 %v7883_v60, %v5874_v56  ;;  %v7884_v11 = vld [vmem:[#allocation151_spill] sm:$0xff]  ;;  %v6258_v60 = vsub.f32 %v5901_v27, %v5962_v46  ;;  %v7886_v27 = vld [vmem:[#allocation112_spill] sm:$0xff] }
 0x153   : > { %3704 = vmatpush1.bf16.msra.mxu1 %v5922_v62  ;;  %3852 = vmatpush1.bf16.msra.mxu0 %v6008_v32  ;;  %v7882_v32 = vld [vmem:[#allocation149_spill] sm:$0xff]  ;;  %v6276_v46 = vsub.f32 %v7886_v27, %v6022_v8  ;;  %v494_v27 = vand.u32 4294901760, %v6063_v23 }
 0x154   : > { %3706 = vmatprep.subr.bf16.mxu1 %v5928_v3  ;;  %1342 = vmatprep.mubr.f32.mxu0 %v6205_v34  ;;  %v6233_v19 = vsub.f32 %v7882_v32, %v7881_v42  ;;  %v6252_v32 = vsub.f32 %v5878_v40, %v5945_v4  ;;  %v7885_v40 = vld [vmem:[#allocation110_spill] sm:$0xff] }
 0x155   : > { %3854 = vmatprep.subr.bf16.mxu0 %v6017_v36  ;;  %v6270_v4 = vsub.f32 %v7885_v40, %v5998_v30  ;;  %v6288_v40 = vsub.f32 %v6026_v28, %v6054_v33  ;;  %v7887_v28 = vld [vmem:[#allocation22_spill] sm:$0xff] }
 0x156   : > { %1345 = vmatmul.mubr.f32.gmra.mrb[6].mxu0 %v6212_v1 }
 0x157   : > { %3708 = vmatpush1.bf16.msra.mxu1 %v5934_v48  ;;  %3856 = vmatpush1.bf16.msra.mxu0 %v6040_v6  ;;  %v6246_v6 = vsub.f32 %v7884_v11, %v5897_v45  ;;  %v6264_v11 = vsub.f32 %v5949_v44, %v5986_v29  ;;  %v6282_v44 = vsub.f32 %v6002_v47, %v6034_v58  ;;  %v500_v47 = vand.u32 4294901760, %v6169_v39 }
 0x158   : > { %3710 = vmatprep.subr.bf16.mxu1 %v5940_v61  ;;  %1352 = vmatprep.mubr.f32.mxu0 %v6219_v16 }
 0x159   : > { %3858 = vmatprep.subr.bf16.mxu0 %v6049_v57 }
 0x15a   : > { %1355 = vmatmul.mubr.f32.gmra.mrb[8].mxu0 %v6226_v55 }
 0x15b   : > { %3712 = vmatpush1.bf16.msra.mxu1 %v5955_v63  ;;  %3860 = vmatpush1.bf16.msra.mxu0 %v6069_v41 }
 0x15c   : > { %1362 = vmatprep.mubr.f32.mxu0 %v6233_v19  ;;  %3862 = vmatprep.subr.bf16.mxu0 %v6078_v51 }
 0x15e   : > { %1365 = vmatmul.mubr.f32.gmra.mrb[10].mxu0 %v6240_v35 }
 0x15f   : > { %3864 = vmatpush1.bf16.msra.mxu0 %v6091_v43  ;;  %1372 = vmatprep.mubr.f32.mxu0 %v6246_v6 }
 0x160   : > { %3866 = vmatprep.subr.bf16.mxu0 %v6100_v50 }
 0x162   : > { %1375 = vmatmul.mubr.f32.gmra.mrb[12].mxu0 %v6252_v32 }
 0x163   : > { %3868 = vmatpush1.bf16.msra.mxu0 %v6111_v7  ;;  %1382 = vmatprep.mubr.f32.mxu0 %v6258_v60 }
 0x164   : > { %3870 = vmatprep.subr.bf16.mxu0 %v6120_v37 }
 0x166   : > { %1385 = vmatmul.mubr.f32.gmra.mrb[14].mxu0 %v6264_v11 }
 0x167   : > { %3872 = vmatpush1.bf16.msra.mxu0 %v6131_v9  ;;  %1392 = vmatprep.mubr.f32.mxu0 %v6270_v4 }
 0x168   : > { %3874 = vmatprep.subr.bf16.mxu0 %v6140_v13 }
 0x16a   : > { %1395 = vmatmul.mubr.f32.gmra.mrb[16].mxu0 %v6276_v46 }
 0x16b   : > { %3876 = vmatpush1.bf16.msra.mxu0 %v7847_v49  ;;  %1402 = vmatprep.mubr.f32.mxu0 %v6282_v44 }
 0x16c   : > { %3878 = vmatprep.subr.bf16.mxu0 %v7848_v5 }
 0x16e   : > { %1405 = vmatmul.mubr.f32.gmra.mrb[18].mxu0 %v6288_v40 }
 0x16f   : > { %3880 = vmatpush1.bf16.msra.mxu0 %v7855_v21  ;;  %1542 = vmatprep.mubr.f32.mxu0 %v494_v27  ;;  %v7893_v21 = vld [vmem:[#allocation25_spill] sm:$0xff] }
 0x170   : > { %3882 = vmatprep.subr.bf16.mxu0 %v5851_v15  ;;  %v7894_v33 = vand.u32 4294901760, %v7893_v21 }
 0x173   : > { %3884 = vmatpush1.bf16.msra.mxu0 %v5857_v25  ;;  %v7889_v25 = vld [vmem:[#allocation23_spill] sm:$0xff] }
 0x174   : > { %3886 = vmatprep.subr.bf16.mxu0 %v5863_v12  ;;  %v7888_v12 = vand.u32 4294901760, %v7887_v28 }
 0x177   : > { %3888 = vmatpush1.bf16.msra.mxu0 %v5869_v18  ;;  %v7890_v18 = vand.u32 4294901760, %v7889_v25  ;;  %v7895_v25 = vld [vmem:[#allocation26_spill] sm:$0xff] }
 0x178   : > { %3890 = vmatprep.subr.bf16.mxu0 %v7869_v17  ;;  %v495_v17 = vsub.f32 %v6063_v23, %v494_v27 }
 0x179   : > { %v3905_v15 = vpack.c.bf16 %v7890_v18, %v7888_v12  ;;  %v7896_v18 = vand.u32 4294901760, %v7895_v25  ;;  %v7897_v12 = vld [vmem:[#allocation27_spill] sm:$0xff]  ;;  %v532_v25 = vand.u32 4294901760, %v6198_v59 }
 0x17a   : > { %v7898_v23 = vand.u32 4294901760, %v7897_v12 }
 0x17b   : > { %3892 = vmatpush1.bf16.msra.mxu0 %v7872_v54  ;;  %v501_v54 = vsub.f32 %v6169_v39, %v500_v47 }
 0x17c   : > { %3894 = vmatprep.subr.bf16.mxu0 %v7874_v26  ;;  %v510_v26 = vand.u32 4294901760, %v6177_v38  ;;  %v3909_v27 = vpack.c.bf16 %v7898_v23, %v7896_v18  ;;  %v542_v23 = vand.u32 4294901760, %v6205_v34 }
 0x17d   : > { %v502_v28 = vand.u32 4294901760, %v501_v54  ;;  %v7901_v54 = vld [vmem:[#allocation29_spill] sm:$0xff] }
 0x17e   : > { %v511_v39 = vsub.f32 %v6177_v38, %v510_v26 }
 0x17f   : > { %3896 = vmatpush1.bf16.msra.mxu0 %v5922_v62  ;;  %v496_v62 = vand.u32 4294901760, %v495_v17 }
 0x180   : > { %3898 = vmatprep.subr.bf16.mxu0 %v5928_v3  ;;  %v7891_v3 = vld [vmem:[#allocation24_spill] sm:$0xff]  ;;  %v512_v21 = vand.u32 4294901760, %v511_v39 }
 0x181   : > { %497 = vmatprep.mubr.f32.mxu1 %v496_v62  ;;  %v7903_v62 = vld [vmem:[#allocation37_spill] sm:$0xff] }
 0x182   : > { %503 = vmatmul.mubr.f32.vlgmr.msra.gmra.mrb[0].mxu1 %v502_v28  ;;  %v7904_v38 = vand.u32 4294901760, %v7903_v62  ;;  %v7905_v28 = vld [vmem:[#allocation38_spill] sm:$0xff] }
 0x183   : > { %3900 = vmatpush1.bf16.msra.mxu0 %v5934_v48  ;;  %v7892_v48 = vand.u32 4294901760, %v7891_v3  ;;  %v526_v3 = vand.u32 4294901760, %v6191_v24  ;;  %v7906_v12 = vand.u32 4294901760, %v7905_v28  ;;  %513 = vmatprep.mubr.f32.mxu1 %v512_v21  ;;  %v7911_v21 = vld [vmem:[#allocation42_spill] sm:$0xff] }
 0x184   : > { %3902 = vmatprep.subr.bf16.mxu0 %v5940_v61  ;;  %v516_v61 = vand.u32 4294901760, %v6184_v2 }
 0x185   : > { %v3907_v5 = vpack.c.bf16 %v7894_v33, %v7892_v48  ;;  %v7899_v48 = vld [vmem:[#allocation28_spill] sm:$0xff] }
 0x186   : > { %v517_v17 = vsub.f32 %v6184_v2, %v516_v61  ;;  %v7900_v33 = vand.u32 4294901760, %v7899_v48  ;;  %v3913_v2 = vpack.c.bf16 %v7906_v12, %v7904_v38  ;;  %v558_v38 = vand.u32 4294901760, %v6219_v16 }
 0x187   : > { %3904 = vmatpush1.bf16.msra.mxu0 %v5955_v63 }
 0x188   : > { %3906 = vmatprep.subr.bf16.mxu0 %v3905_v15  ;;  %v7902_v15 = vand.u32 4294901760, %v7901_v54  ;;  %v518_v18 = vand.u32 4294901760, %v517_v17  ;;  %v7909_v17 = vld [vmem:[#allocation41_spill] sm:$0xff]  ;;  %v548_v54 = vand.u32 4294901760, %v6212_v1 }
 0x18a   : > { %1546 = vmatmul.mubr.f32.vlgmr.msra.gmra.mrb[0].mxu0 %v500_v47  ;;  %v3911_v63 = vpack.c.bf16 %v7902_v15, %v7900_v33  ;;  %v527_v47 = vsub.f32 %v6191_v24, %v526_v3  ;;  %519 = vmatmul.mubr.f32.gmra.mrb[2].mxu1 %v518_v18  ;;  %v7912_v24 = vand.u32 4294901760, %v7911_v21  ;;  %v7913_v18 = vld [vmem:[#allocation43_spill] sm:$0xff] }
 0x18b   : > { %3908 = vmatpush1.bf16.msra.mxu0 %v3907_v5  ;;  %1554 = vmatprep.mubr.f32.mxu0 %v510_v26  ;;  %v533_v5 = vsub.f32 %v6198_v59, %v532_v25  ;;  %v7907_v26 = vld [vmem:[#allocation40_spill] sm:$0xff]  ;;  %v7914_v62 = vand.u32 4294901760, %v7913_v18 }
 0x18c   : > { %3910 = vmatprep.subr.bf16.mxu0 %v3909_v27  ;;  %v528_v39 = vand.u32 4294901760, %v527_v47  ;;  %v7908_v48 = vand.u32 4294901760, %v7907_v26  ;;  %v7910_v27 = vand.u32 4294901760, %v7909_v17  ;;  %v7917_v47 = vld [vmem:[#allocation45_spill] sm:$0xff]  ;;  %v564_v26 = vand.u32 4294901760, %v6226_v55  ;;  %v7921_v17 = vld [vmem:[#allocation54_spill] sm:$0xff] }
 0x18d   : > { %v534_v15 = vand.u32 4294901760, %v533_v5  ;;  %v3917_v59 = vpack.c.bf16 %v7914_v62, %v7912_v24  ;;  %v7925_v18 = vld [vmem:[#allocation56_spill] sm:$0xff] }
 0x18e   : > { %1558 = vmatmul.mubr.f32.gmra.mrb[2].mxu0 %v516_v61  ;;  %v3915_v33 = vpack.c.bf16 %v7910_v27, %v7908_v48  ;;  %529 = vmatprep.mubr.f32.mxu1 %v528_v39  ;;  %v543_v61 = vsub.f32 %v6205_v34, %v542_v23  ;;  %v7919_v39 = vld [vmem:[#allocation52_spill] sm:$0xff]  ;;  %v7922_v27 = vand.u32 4294901760, %v7921_v17  ;;  %v7926_v62 = vand.u32 4294901760, %v7925_v18 }
 0x18f   : > { %3912 = vmatpush1.bf16.msra.mxu0 %v3911_v63  ;;  %1566 = vmatprep.mubr.f32.mxu0 %v526_v3  ;;  %v549_v63 = vsub.f32 %v6212_v1, %v548_v54  ;;  %v7915_v3 = vld [vmem:[#allocation44_spill] sm:$0xff]  ;;  %v7920_v34 = vand.u32 4294901760, %v7919_v39  ;;  %v7933_v39 = vld [vmem:[#allocation62_spill] sm:$0xff] }
 0x190   : > { %3914 = vmatprep.subr.bf16.mxu0 %v3913_v2  ;;  %535 = vmatmul.mubr.f32.gmra.mrb[4].mxu1 %v534_v15  ;;  %v544_v28 = vand.u32 4294901760, %v543_v61  ;;  %v7916_v12 = vand.u32 4294901760, %v7915_v3  ;;  %v7918_v2 = vand.u32 4294901760, %v7917_v47  ;;  %v574_v15 = vand.u32 4294901760, %v6233_v19  ;;  %v7929_v3 = vld [vmem:[#allocation59_spill] sm:$0xff] }
 0x191   : > { %v550_v48 = vand.u32 4294901760, %v549_v63  ;;  %v3921_v1 = vpack.c.bf16 %v7922_v27, %v7920_v34  ;;  %v580_v61 = vand.u32 4294901760, %v6240_v35  ;;  %v7934_v34 = vand.u32 4294901760, %v7933_v39 }
 0x192   : > { %1570 = vmatmul.mubr.f32.gmra.mrb[4].mxu0 %v532_v25  ;;  %v3919_v5 = vpack.c.bf16 %v7918_v2, %v7916_v12  ;;  %545 = vmatprep.mubr.f32.mxu1 %v544_v28  ;;  %v559_v25 = vsub.f32 %v6219_v16, %v558_v38  ;;  %v7927_v28 = vld [vmem:[#allocation58_spill] sm:$0xff]  ;;  %v7930_v12 = vand.u32 4294901760, %v7929_v3  ;;  %v590_v2 = vand.u32 4294901760, %v6246_v6 }
 0x193   : > { %3916 = vmatpush1.bf16.msra.mxu0 %v3915_v33  ;;  %1578 = vmatprep.mubr.f32.mxu0 %v542_v23  ;;  %v565_v33 = vsub.f32 %v6226_v55, %v564_v26  ;;  %v7923_v23 = vld [vmem:[#allocation55_spill] sm:$0xff]  ;;  %v7928_v16 = vand.u32 4294901760, %v7927_v28  ;;  %v581_v47 = vsub.f32 %v6240_v35, %v580_v61  ;;  %v596_v27 = vand.u32 4294901760, %v6252_v32 }
 0x194   : > { %3918 = vmatprep.subr.bf16.mxu0 %v3917_v59  ;;  %551 = vmatmul.mubr.f32.gmra.mrb[6].mxu1 %v550_v48  ;;  %v560_v21 = vand.u32 4294901760, %v559_v25  ;;  %v7924_v24 = vand.u32 4294901760, %v7923_v23  ;;  %v7935_v25 = vld [vmem:[#allocation67_spill] sm:$0xff] }
 0x195   : > { %v566_v63 = vand.u32 4294901760, %v565_v33  ;;  %v3925_v55 = vpack.c.bf16 %v7930_v12, %v7928_v16  ;;  %v7937_v33 = vld [vmem:[#allocation70_spill] sm:$0xff]  ;;  %v597_v23 = vsub.f32 %v6252_v32, %v596_v27  ;;  %v612_v16 = vand.u32 4294901760, %v6264_v11 }
 0x196   : > { %1582 = vmatmul.mubr.f32.gmra.mrb[6].mxu0 %v548_v54  ;;  %v3923_v59 = vpack.c.bf16 %v7926_v62, %v7924_v24  ;;  %561 = vmatprep.mubr.f32.mxu1 %v560_v21  ;;  %v575_v54 = vsub.f32 %v6233_v19, %v574_v15  ;;  %v7936_v19 = vand.u32 4294901760, %v7935_v25  ;;  %v7938_v21 = vand.u32 4294901760, %v7937_v33  ;;  %v7943_v12 = vld [vmem:[#allocation74_spill] sm:$0xff] }
 0x197   : > { %3920 = vmatpush1.bf16.msra.mxu0 %v3919_v5  ;;  %1590 = vmatprep.mubr.f32.mxu0 %v558_v38  ;;  %v7931_v38 = vld [vmem:[#allocation60_spill] sm:$0xff]  ;;  %v606_v24 = vand.u32 4294901760, %v6258_v60  ;;  %v598_v3 = vand.u32 4294901760, %v597_v23  ;;  %v7950_v25 = vld [vmem:[#allocation82_spill] sm:$0xff] }
 0x198   : > { %3922 = vmatprep.subr.bf16.mxu0 %v3921_v1  ;;  %567 = vmatmul.mubr.f32.gmra.mrb[8].mxu1 %v566_v63  ;;  %v576_v5 = vand.u32 4294901760, %v575_v54  ;;  %v7932_v48 = vand.u32 4294901760, %v7931_v38  ;;  %v582_v1 = vand.u32 4294901760, %v581_v47  ;;  %v3929_v35 = vpack.c.bf16 %v7938_v21, %v7936_v19  ;;  %v7952_v19 = vld [vmem:[#allocation83_spill] sm:$0xff] }
 0x199   : > { %v613_v47 = vsub.f32 %v6264_v11, %v612_v16  ;;  %v7953_v33 = vand.u32 4294901760, %v7952_v19 }
 0x19a   : > { %1594 = vmatmul.mubr.f32.gmra.mrb[8].mxu0 %v564_v26  ;;  %v3927_v17 = vpack.c.bf16 %v7934_v34, %v7932_v48  ;;  %577 = vmatprep.mubr.f32.mxu1 %v576_v5  ;;  %v591_v26 = vsub.f32 %v6246_v6, %v590_v2  ;;  %v7944_v6 = vand.u32 4294901760, %v7943_v12  ;;  %v622_v5 = vand.u32 4294901760, %v6270_v4  ;;  %v7948_v48 = vld [vmem:[#allocation78_spill] sm:$0xff] }
 0x19b   : > { %3924 = vmatpush1.bf16.msra.mxu0 %v3923_v59  ;;  %1602 = vmatprep.mubr.f32.mxu0 %v574_v15  ;;  %v7939_v15 = vld [vmem:[#allocation71_spill] sm:$0xff]  ;;  %v7941_v59 = vld [vmem:[#allocation72_spill] sm:$0xff]  ;;  %v7949_v39 = vand.u32 4294901760, %v7948_v48  ;;  %v7970_v48 = vld [vmem:[#allocation101_spill] sm:$0xff] }
 0x19c   : > { %3926 = vmatprep.subr.bf16.mxu0 %v3925_v55  ;;  %583 = vmatmul.mubr.f32.gmra.mrb[10].mxu1 %v582_v1  ;;  %v592_v18 = vand.u32 4294901760, %v591_v26  ;;  %v7940_v62 = vand.u32 4294901760, %v7939_v15  ;;  %v7942_v63 = vand.u32 4294901760, %v7941_v59  ;;  %v7945_v55 = vld [vmem:[#allocation75_spill] sm:$0xff]  ;;  %v614_v1 = vand.u32 4294901760, %v613_v47  ;;  %v7954_v26 = vld [vmem:[#allocation86_spill] sm:$0xff] }
 0x19d   : > { %v7946_v54 = vand.u32 4294901760, %v7945_v55  ;;  %v7955_v23 = vand.u32 4294901760, %v7954_v26  ;;  %v7962_v55 = vld [vmem:[#allocation92_spill] sm:$0xff] }
 0x19e   : > { %1606 = vmatmul.mubr.f32.gmra.mrb[10].mxu0 %v580_v61  ;;  %v3931_v28 = vpack.c.bf16 %v7942_v63, %v7940_v62  ;;  %593 = vmatprep.mubr.f32.mxu1 %v592_v18  ;;  %v607_v61 = vsub.f32 %v6258_v60, %v606_v24  ;;  %v7951_v60 = vand.u32 4294901760, %v7950_v25  ;;  %v644_v62 = vand.u32 4294901760, %v6288_v40  ;;  %v7959_v63 = vld [vmem:[#allocation90_spill] sm:$0xff]  ;;  %v7975_v25 = vld [vmem:[#allocation105_spill] sm:$0xff] }
 0x19f   : > { %3928 = vmatpush1.bf16.msra.mxu0 %v3927_v17  ;;  %1614 = vmatprep.mubr.f32.mxu0 %v590_v2  ;;  %v3933_v32 = vpack.c.bf16 %v7946_v54, %v7944_v6  ;;  %v7947_v2 = vand.u32 4294901760, %v5265_v22  ;;  %v628_v17 = vand.u32 4294901760, %v6276_v46  ;;  %v638_v22 = vand.u32 4294901760, %v6282_v44 }
 0x1a0   : > { %3930 = vmatprep.subr.bf16.mxu0 %v3929_v35  ;;  %599 = vmatmul.mubr.f32.gmra.mrb[12].mxu1 %v598_v3  ;;  %v608_v38 = vand.u32 4294901760, %v607_v61  ;;  %v3937_v11 = vpack.c.bf16 %v7953_v33, %v7951_v60  ;;  %v645_v3 = vsub.f32 %v6288_v40, %v644_v62  ;;  %v7961_v6 = vand.u32 4294901760, %v5360_v53  ;;  %v7977_v33 = vld [vmem:[#allocation106_spill] sm:$0xff] }
 0x1a1   : > { %v3935_v34 = vpack.c.bf16 %v7949_v39, %v7947_v2  ;;  %v629_v21 = vsub.f32 %v6276_v46, %v628_v17  ;;  %v7963_v54 = vand.u32 4294901760, %v7962_v55  ;;  %v7971_v39 = vand.u32 4294901760, %v7970_v48 }
 0x1a2   : > { %1618 = vmatmul.mubr.f32.gmra.mrb[12].mxu0 %v596_v27  ;;  %609 = vmatprep.mubr.f32.mxu1 %v608_v38  ;;  %v623_v27 = vsub.f32 %v6270_v4, %v622_v5  ;;  %v7958_v4 = vand.u32 4294901760, %v5334_v31  ;;  %v646_v61 = vand.u32 4294901760, %v645_v3  ;;  %v7964_v31 = vld [vmem:[#allocation96_spill] sm:$0xff]  ;;  %v7976_v60 = vand.u32 4294901760, %v7975_v25 }
 0x1a3   : > { %3932 = vmatpush1.bf16.msra.mxu0 %v3931_v28  ;;  %1626 = vmatprep.mubr.f32.mxu0 %v606_v24  ;;  %v7956_v24 = vld [vmem:[#allocation87_spill] sm:$0xff]  ;;  %v630_v59 = vand.u32 4294901760, %v629_v21  ;;  %v7960_v28 = vand.u32 4294901760, %v7959_v63  ;;  %v7965_v47 = vand.u32 4294901760, %v7964_v31 }
 0x1a4   : > { %3934 = vmatprep.subr.bf16.mxu0 %v3933_v32  ;;  %615 = vmatmul.mubr.f32.gmra.mrb[14].mxu1 %v614_v1  ;;  %v624_v35 = vand.u32 4294901760, %v623_v27  ;;  %v7957_v18 = vand.u32 4294901760, %v7956_v24  ;;  %v3943_v32 = vpack.c.bf16 %v7963_v54, %v7961_v6  ;;  %v7979_v27 = vld [vmem:[#allocation109_spill] sm:$0xff]  ;;  %v7993_v6 = vld [vmem:[#allocation122_spill] sm:$0xff]  ;;  %v7997_v31 = vld [vmem:[#allocation127_spill] sm:$0xff] }
 0x1a5   : > { %v3941_v46 = vpack.c.bf16 %v7960_v28, %v7958_v4  ;;  %v7980_v21 = vand.u32 4294901760, %v7979_v27  ;;  %v7989_v28 = vld [vmem:[#allocation118_spill] sm:$0xff]  ;;  %v7994_v55 = vand.u32 4294901760, %v7993_v6  ;;  %v7995_v54 = vld [vmem:[#allocation125_spill] sm:$0xff]  ;;  %v8011_v27 = vld [vmem:[#allocation16_spill] sm:$0xff] }
 0x1a6   : > { %1630 = vmatmul.mubr.f32.gmra.mrb[14].mxu0 %v612_v16  ;;  %v3939_v15 = vpack.c.bf16 %v7957_v18, %v7955_v23  ;;  %625 = vmatprep.mubr.f32.mxu1 %v624_v35  ;;  %v639_v16 = vsub.f32 %v6282_v44, %v638_v22  ;;  %v7968_v44 = vld [vmem:[#allocation99_spill] sm:$0xff]  ;;  %v7983_v23 = vld [vmem:[#allocation113_spill] sm:$0xff] }
 0x1a7   : > { %3936 = vmatpush1.bf16.msra.mxu0 %v3935_v34  ;;  %1638 = vmatprep.mubr.f32.mxu0 %v622_v5  ;;  %v7966_v5 = vld [vmem:[#allocation97_spill] sm:$0xff]  ;;  %v7969_v40 = vand.u32 4294901760, %v7968_v44  ;;  %v7981_v35 = vld [vmem:[#allocation111_spill] sm:$0xff]  ;;  %v7984_v24 = vand.u32 4294901760, %v7983_v23  ;;  %v8001_v44 = vand.u32 4294901760, %v7857_v10  ;;  %v8019_v23 = vld [vmem:[#allocation144_spill] sm:$0xff] }
 0x1a8   : > { %3938 = vmatprep.subr.bf16.mxu0 %v3937_v11  ;;  %631 = vmatmul.mubr.f32.gmra.mrb[16].mxu1 %v630_v59  ;;  %v640_v12 = vand.u32 4294901760, %v639_v16  ;;  %v7967_v38 = vand.u32 4294901760, %v7966_v5  ;;  %v7972_v34 = vld [vmem:[#allocation137_spill] sm:$0xff]  ;;  %v7978_v11 = vand.u32 4294901760, %v7977_v33  ;;  %v7982_v26 = vand.u32 4294901760, %v7981_v35  ;;  %v8010_v10 = vld [vmem:[#allocation139_spill] sm:$0xff] }
 0x1a9   : > { %v3947_v53 = vpack.c.bf16 %v7971_v39, %v7969_v40  ;;  %v7987_v59 = vld [vmem:[#allocation117_spill] sm:$0xff]  ;;  %v8002_v40 = vld [vmem:[#allocation132_spill] sm:$0xff]  ;;  %v8017_v35 = vld [vmem:[#allocation143_spill] sm:$0xff] }
 0x1aa   : > { %1642 = vmatmul.mubr.f32.gmra.mrb[16].mxu0 %v628_v17  ;;  %v3945_v2 = vpack.c.bf16 %v7967_v38, %v7965_v47  ;;  %641 = vmatprep.mubr.f32.mxu1 %v640_v12  ;;  %v7973_v17 = vld [vmem:[#allocation102_spill] sm:$0xff]  ;;  %v3953_v18 = vpack.c.bf16 %v7984_v24, %v7982_v26  ;;  %v7988_v4 = vand.u32 4294901760, %v7987_v59  ;;  %v7991_v16 = vld [vmem:[#allocation121_spill] sm:$0xff]  ;;  %v7998_v47 = vand.u32 4294901760, %v7997_v31  ;;  %v8036_v59 = vld [vmem:[#allocation95_spill] sm:$0xff] }
 0x1ab   : > { %3940 = vmatpush1.bf16.msra.mxu0 %v3939_v15  ;;  %1650 = vmatprep.mubr.f32.mxu0 %v638_v22  ;;  %v7974_v1 = vand.u32 4294901760, %v7973_v17  ;;  %v3951_v22 = vpack.c.bf16 %v7980_v21, %v7978_v11  ;;  %v7985_v15 = vld [vmem:[#allocation115_spill] sm:$0xff]  ;;  %v7992_v3 = vand.u32 4294901760, %v7991_v16  ;;  %v7999_v5 = vld [vmem:[#allocation129_spill] sm:$0xff]  ;;  %v8003_v48 = vand.u32 4294901760, %v8002_v40  ;;  %v8009_v11 = vld [vmem:[#allocation14_spill] sm:$0xff] }
 0x1ac   : > { %3942 = vmatprep.subr.bf16.mxu0 %v3941_v46  ;;  %647 = vmatmul.mubr.f32.gmra.mrb[18].mxu1 %v646_v61  ;;  %v7990_v46 = vand.u32 4294901760, %v7989_v28  ;;  %v8000_v38 = vand.u32 4294901760, %v7999_v5  ;;  %v8005_v17 = vld [vmem:[#allocation135_spill] sm:$0xff]  ;;  %v8012_v21 = vld [vmem:[#allocation140_spill] sm:$0xff]  ;;  %v8018_v26 = vld [vmem:[#allocation114_spill] sm:$0xff] }
 0x1ad   : > { %v3949_v19 = vpack.c.bf16 %v7976_v60, %v7974_v1  ;;  %v3963_v39 = vpack.c.bf16 %v8003_v48, %v8001_v44  ;;  %v8006_v1 = vand.u32 4294901760, %v8005_v17  ;;  %v8007_v60 = vand.u32 4294901760, %v7864_v20  ;;  %v8015_v20 = vld [vmem:[#allocation142_spill] sm:$0xff]  ;;  %v8040_v28 = vld [vmem:[#allocation107_spill] sm:$0xff]  ;;  %v2207_v48 = vld [vmem:[#allocation5 + $0x8] sm:$0xff] }
 0x1ae   : > { %1654 = vmatmul.mubr.f32.gmra.mrb[18].mxu0 %v644_v62  ;;  %v7986_v62 = vand.u32 4294901760, %v7985_v15  ;;  %v3957_v12 = vpack.c.bf16 %v7992_v3, %v7990_v46  ;;  %v8020_v24 = vld [vmem:[#allocation146_spill] sm:$0xff]  ;;  %v8023_v15 = vld [vmem:[#allocation15_spill] sm:$0xff] }
 0x1af   : > { %3944 = vmatpush1.bf16.msra.mxu0 %v3943_v32  ;;  %1917 = vmatprep.mubr.f32.mxu0 %v7972_v34  ;;  %v7996_v32 = vand.u32 4294901760, %v7995_v54  ;;  %v2206_v44 = vld [vmem:[#allocation5] sm:$0xff] }
 0x1b0   : > { %3946 = vmatprep.subr.bf16.mxu0 %v3945_v2  ;;  %v3955_v63 = vpack.c.bf16 %v7988_v4, %v7986_v62  ;;  %v3961_v2 = vpack.c.bf16 %v8000_v38, %v7998_v47  ;;  %v8035_v62 = vld [vmem:[#allocation94_spill] sm:$0xff]  ;;  %v2218_v40 = vsel %vm2216_vm0, %v2206_v44, 0 }
 0x1b1   : > { %v3959_v61 = vpack.c.bf16 %v7996_v32, %v7994_v55  ;;  %v8037_v4 = vld [vmem:[#allocation98_spill] sm:$0xff] }
 0x1b3   : > { %3948 = vmatpush1.bf16.msra.mxu0 %v3947_v53  ;;  %v8004_v53 = vand.u32 4294901760, %v7860_v14  ;;  %v8013_v14 = vld [vmem:[#allocation141_spill] sm:$0xff] }
 0x1b4   : > { %3950 = vmatprep.subr.bf16.mxu0 %v3949_v19  ;;  %v8008_v19 = vand.u32 4294901760, %v7863_v52  ;;  %v8016_v52 = vld [vmem:[#allocation19_spill] sm:$0xff] }
 0x1b5   : > { %v3965_v25 = vpack.c.bf16 %v8006_v1, %v8004_v53  ;;  %v2221_v53 = vsel %vm2216_vm0, %v2207_v48, 0 }
 0x1b6   : > { %v3967_v33 = vpack.c.bf16 %v8008_v19, %v8007_v60  ;;  %v6583_v1 = vand.u32 4294901760, %v2221_v53 }
 0x1b7   : > { %3952 = vmatpush1.bf16.msra.mxu0 %v3951_v22  ;;  %v8014_v22 = vld [vmem:[#allocation18_spill] sm:$0xff] }
 0x1b8   : > { %3954 = vmatprep.subr.bf16.mxu0 %v3953_v18  ;;  %v8021_v18 = vld [vmem:[#allocation116_spill] sm:$0xff] }
 0x1bb   : > { %3956 = vmatpush1.bf16.msra.mxu0 %v3955_v63  ;;  %v8038_v63 = vld [vmem:[#allocation100_spill] sm:$0xff] }
 0x1bc   : > { %3958 = vmatprep.subr.bf16.mxu0 %v3957_v12 }
 0x1bf   : > { %3960 = vmatpush1.bf16.msra.mxu0 %v3959_v61 }
 0x1c0   : > { %3962 = vmatprep.subr.bf16.mxu0 %v3961_v2  ;;  %v7440_v2 = vmov 0.0  }
 0x1c1   : > { %2331 = vmatprep.mubr.f32.mxu1 %v7440_v2 }
 0x1c3   : > { %3964 = vmatpush1.bf16.msra.mxu0 %v3963_v39  ;;  %v6577_v39 = vand.u32 4294901760, %v2218_v40 }
 0x1c4   : > { %3966 = vmatprep.subr.bf16.mxu0 %v3965_v25  ;;  %v2208_v25 = vld [vmem:[#allocation5 + $0x10] sm:$0xff] }
 0x1c5   : > { %v6581_v17 = vsub.f32 %v2218_v40, %v6577_v39 }
 0x1c7   : > { %3968 = vmatpush1.bf16.msra.mxu0 %v3967_v33  ;;  %v7439_v60 = vand.u32 4294901760, %v6581_v17  ;;  %v6587_v33 = vsub.f32 %v2221_v53, %v6583_v1 }
 0x1c8   : > { %3970 = vmatprep.subr.bf16.mxu0 %v8009_v11 }
 0x1ca   : > { %1919 = vmatmul.mubr.f32.vlgmr.msra.gmra.mrb[0].mxu0 %v8010_v10 }
 0x1cb   : > { %3972 = vmatpush1.bf16.msra.mxu0 %v8011_v27  ;;  %1925 = vmatprep.mubr.f32.mxu0 %v8012_v21  ;;  %v2224_v27 = vsel %vm2216_vm0, %v2208_v25, 0 }
 0x1cc   : > { %3974 = vmatprep.subr.bf16.mxu0 %v5907_v0  ;;  %v8022_v0 = vld [vmem:[#allocation148_spill] sm:$0xff] }
 0x1ce   : > { %1927 = vmatmul.mubr.f32.gmra.mrb[2].mxu0 %v8013_v14 }
 0x1cf   : > { %3976 = vmatpush1.bf16.msra.mxu0 %v8014_v22  ;;  %1933 = vmatprep.mubr.f32.mxu0 %v8015_v20  ;;  %v6593_v22 = vsub.f32 %v6581_v17, %v7439_v60 }
 0x1d0   : > { %3978 = vmatprep.subr.bf16.mxu0 %v8016_v52 }
 0x1d2   : > { %1935 = vmatmul.mubr.f32.gmra.mrb[4].mxu0 %v8017_v35 }
 0x1d3   : > { %3980 = vmatpush1.bf16.msra.mxu0 %v8018_v26  ;;  %1941 = vmatprep.mubr.f32.mxu0 %v8019_v23  ;;  %v7438_v26 = vand.u32 4294901760, %v6587_v33 }
 0x1d4   : > { %3982 = vmatprep.subr.bf16.mxu0 %v6017_v36  ;;  %v8024_v36 = vld [vmem:[#allocation104_spill] sm:$0xff] }
 0x1d6   : > { %1943 = vmatmul.mubr.f32.gmra.mrb[6].mxu0 %v8020_v24 }
 0x1d7   : > { %3984 = vmatpush1.bf16.msra.mxu0 %v8021_v18  ;;  %1949 = vmatprep.mubr.f32.mxu0 %v8022_v0 }
 0x1d8   : > { %3986 = vmatprep.subr.bf16.mxu0 %v6049_v57  ;;  %v8025_v57 = vld [vmem:[#allocation108_spill] sm:$0xff] }
 0x1da   : > { %1951 = vmatmul.mubr.f32.gmra.mrb[8].mxu0 %v8023_v15 }
 0x1db   : > { %3988 = vmatpush1.bf16.msra.mxu0 %v6069_v41  ;;  %1957 = vmatprep.mubr.f32.mxu0 %v7881_v42  ;;  %v8031_v41 = vld [vmem:[#allocation88_spill] sm:$0xff] }
 0x1dc   : > { %3990 = vmatprep.subr.bf16.mxu0 %v6078_v51  ;;  %v8027_v51 = vld [vmem:[#allocation119_spill] sm:$0xff] }
 0x1de   : > { %1959 = vmatmul.mubr.f32.gmra.mrb[10].mxu0 %v5874_v56 }
 0x1df   : > { %3992 = vmatpush1.bf16.msra.mxu0 %v6091_v43  ;;  %1965 = vmatprep.mubr.f32.mxu0 %v5897_v45  ;;  %v8033_v43 = vld [vmem:[#allocation91_spill] sm:$0xff] }
 0x1e0   : > { %3994 = vmatprep.subr.bf16.mxu0 %v6100_v50  ;;  %v8026_v50 = vld [vmem:[#allocation17_spill] sm:$0xff] }
 0x1e2   : > { %1967 = vmatmul.mubr.f32.gmra.mrb[12].mxu0 %v8024_v36 }
 0x1e3   : > { %3996 = vmatpush1.bf16.msra.mxu0 %v6111_v7  ;;  %1973 = vmatprep.mubr.f32.mxu0 %v8025_v57  ;;  %v8028_v7 = vld [vmem:[#allocation81_spill] sm:$0xff] }
 0x1e4   : > { %3998 = vmatprep.subr.bf16.mxu0 %v6120_v37  ;;  %v8029_v37 = vld [vmem:[#allocation84_spill] sm:$0xff] }
 0x1e6   : > { %1975 = vmatmul.mubr.f32.gmra.mrb[14].mxu0 %v5986_v29 }
 0x1e7   : > { %4000 = vmatpush1.bf16.msra.mxu0 %v6131_v9  ;;  %1981 = vmatprep.mubr.f32.mxu0 %v5998_v30  ;;  %v8030_v9 = vld [vmem:[#allocation85_spill] sm:$0xff] }
 0x1e8   : > { %4002 = vmatprep.subr.bf16.mxu0 %v6140_v13  ;;  %v8032_v13 = vld [vmem:[#allocation89_spill] sm:$0xff] }
 0x1ea   : > { %1983 = vmatmul.mubr.f32.gmra.mrb[16].mxu0 %v6022_v8 }
 0x1eb   : > { %4004 = vmatpush1.bf16.msra.mxu0 %v7847_v49  ;;  %1989 = vmatprep.mubr.f32.mxu0 %v6034_v58  ;;  %v8034_v49 = vld [vmem:[#allocation93_spill] sm:$0xff] }
 0x1ec   : > { %4006 = vmatprep.subr.bf16.mxu0 %v8026_v50 }
 0x1ee   : > { %1991 = vmatmul.mubr.f32.gmra.mrb[18].mxu0 %v8027_v51 }
 0x1ef   : > { %4008 = vmatpush1.bf16.msra.mxu0 %v8028_v7  ;;  %2126 = vmatprep.mubr.f32.mxu0 %v7972_v34  ;;  %v8039_v34 = vld [vmem:[#allocation103_spill] sm:$0xff] }
 0x1f0   : > { %4010 = vmatprep.subr.bf16.mxu0 %v8029_v37 }
 0x1f3   : > { %4012 = vmatpush1.bf16.msra.mxu0 %v8030_v9 }
 0x1f4   : > { %4014 = vmatprep.subr.bf16.mxu0 %v8031_v41 }
 0x1f7   : > { %4016 = vmatpush1.bf16.msra.mxu0 %v8032_v13  ;;  %v6611_v13 = vsub.f32 %v6587_v33, %v7438_v26 }
 0x1f8   : > { %4018 = vmatprep.subr.bf16.mxu0 %v8033_v43 }
 0x1fb   : > { %4020 = vmatpush1.bf16.msra.mxu0 %v8034_v49 }
 0x1fc   : > { %4022 = vmatprep.subr.bf16.mxu0 %v8035_v62 }
 0x1ff   : > { %4024 = vmatpush1.bf16.msra.mxu0 %v8036_v59 }
 0x200   : > { %4026 = vmatprep.subr.bf16.mxu0 %v8037_v4 }
 0x203   : > { %4028 = vmatpush1.bf16.msra.mxu0 %v8038_v63 }
 0x204   : > { %4030 = vmatprep.subr.bf16.mxu0 %v8039_v34  ;;  %v2210_v34 = vld [vmem:[#allocation5 + $0x20] sm:$0xff] }
 0x207   : > { %4032 = vmatpush1.bf16.msra.mxu0 %v8040_v28 }
 0x20a   : > { %2128 = vmatmul.mubr.f32.vlgmr.msra.gmra.mrb[0].mxu0 %v8010_v10 }
 0x20b   : > { %2134 = vmatprep.mubr.f32.mxu0 %v8012_v21 }
 0x20e   : > { %2136 = vmatmul.mubr.f32.gmra.mrb[2].mxu0 %v8013_v14 }
 0x20f   : > { %2142 = vmatprep.mubr.f32.mxu0 %v8015_v20  ;;  %v2209_v20 = vld [vmem:[#allocation5 + $0x18] sm:$0xff] }
 0x212   : > { %2144 = vmatmul.mubr.f32.gmra.mrb[4].mxu0 %v8017_v35 }
 0x213   : > { %2150 = vmatprep.mubr.f32.mxu0 %v8019_v23  ;;  %v6596_v23 = vand.u32 4294901760, %v2224_v27 }
 0x215   : > { %v6614_v43 = vsub.f32 %v2224_v27, %v6596_v23 }
 0x216   : > { %2152 = vmatmul.mubr.f32.gmra.mrb[6].mxu0 %v8020_v24 }
 0x217   : > { %2158 = vmatprep.mubr.f32.mxu0 %v8022_v0 }
 0x21a   : > { %2160 = vmatmul.mubr.f32.gmra.mrb[8].mxu0 %v8023_v15 }
 0x21b   : > { %2166 = vmatprep.mubr.f32.mxu0 %v7881_v42 }
 0x21e   : > { %2168 = vmatmul.mubr.f32.gmra.mrb[10].mxu0 %v5874_v56 }
 0x21f   : > { %2174 = vmatprep.mubr.f32.mxu0 %v5897_v45 }
 0x222   : > { %2176 = vmatmul.mubr.f32.gmra.mrb[12].mxu0 %v8024_v36 }
 0x223   : > { %2182 = vmatprep.mubr.f32.mxu0 %v8025_v57  ;;  %v6603_v57 = vsel %vm2216_vm0, %v2209_v20, 0 }
 0x224   : > { %v6621_v63 = vand.u32 4294901760, %v6603_v57 }
 0x226   : > { %2184 = vmatmul.mubr.f32.gmra.mrb[14].mxu0 %v5986_v29 }
 0x227   : > { %2190 = vmatprep.mubr.f32.mxu0 %v5998_v30 }
 0x22a   : > { %2192 = vmatmul.mubr.f32.gmra.mrb[16].mxu0 %v6022_v8 }
 0x22b   : > { %2198 = vmatprep.mubr.f32.mxu0 %v6034_v58 }
 0x22e   : > { %2200 = vmatmul.mubr.f32.gmra.mrb[18].mxu0 %v8027_v51 }
 0x255   : > { %v504_v46 = vpop.f32.mrb[0].mxu1 }
 0x256   : > { %v506_v42 = vpop.f32.mrb[1].mxu1 }
 0x25d   : > { %v520_v16 = vpop.f32.mrb[2].mxu1 }
 0x25e   : > { %v522_v56 = vpop.f32.mrb[3].mxu1 }
 0x263   : > { %v536_v3 = vpop.f32.mrb[4].mxu1 }
 0x264   : > { %v538_v45 = vpop.f32.mrb[5].mxu1 }
 0x267   : > { %v6547_v12 = vpop.f32.mrb[6].mxu1 }
 0x268   : > { %v6549_v6 = vpop.f32.mrb[7].mxu1 }
 0x26b   : > { %v6551_v55 = vpop.f32.mrb[8].mxu1 }
 0x26c   : > { %v6553_v29 = vpop.f32.mrb[9].mxu1 }
 0x26f   : > { %v6555_v30 = vpop.f32.mrb[10].mxu1 }
 0x270   : > { %v6557_v8 = vpop.f32.mrb[11].mxu1 }
 0x273   : > { %v6559_v58 = vpop.f32.mrb[12].mxu1 }
 0x274   : > { %v6561_v54 = vpop.f32.mrb[13].mxu1 }
 0x277   : > { %v6563_v32 = vpop.f32.mrb[14].mxu1 }
 0x278   : > { %v6565_v61 = vpop.f32.mrb[15].mxu1 }
 0x27b   : > { %v6567_v31 = vpop.f32.mrb[16].mxu1 }
 0x27c   : > { %v6569_v47 = vpop.f32.mrb[17].mxu1 }
 0x27f   : > { %v6571_v5 = vpop.f32.mrb[18].mxu1 }
 0x280   : > { %v6573_v38 = vpop.f32.mrb[19].mxu1 }
 0x2dd   : > { %v2129_v19 = vpop.f32.mrb[0].mxu0 }
 0x2de   : > { %v4153_v11 = vadd.f32 %v2129_v19, %v504_v46  ;;  %v2131_v10 = vpop.f32.mrb[1].mxu0  ;;  %v6635_v19 = vsel %vm2216_vm0, %v2210_v34, 0 }
 0x2df   : > { %v4154_v21 = vadd.f32 %v2131_v10, %v506_v42 }
 0x2e0   : > { %v2249_v14 = vand.u32 4294901760, %v4153_v11 }
 0x2e1   : > { %v2247_v52 = vand.u32 4294901760, %v4154_v21  ;;  %v2137_v35 = vpop.f32.mrb[2].mxu0 }
 0x2e2   : > { %v6598_v24 = vsub.f32 %v4153_v11, %v2249_v14  ;;  %v4155_v18 = vadd.f32 %v2137_v35, %v520_v16  ;;  %v2139_v0 = vpop.f32.mrb[3].mxu0 }
 0x2e3   : > { %v6600_v15 = vsub.f32 %v4154_v21, %v2247_v52  ;;  %v4156_v36 = vadd.f32 %v2139_v0, %v522_v56 }
 0x2e4   : > { %v2450_v50 = vand.u32 4294901760, %v6598_v24  ;;  %v2253_v51 = vand.u32 4294901760, %v4155_v18 }
 0x2e5   : > { %v2444_v37 = vand.u32 4294901760, %v6600_v15  ;;  %v2251_v9 = vand.u32 4294901760, %v4156_v36  ;;  %v2145_v41 = vpop.f32.mrb[4].mxu0 }
 0x2e6   : > { %v6616_v49 = vpack.c.bf16 %v2253_v51, %v2249_v14  ;;  %v6618_v62 = vsub.f32 %v4155_v18, %v2253_v51  ;;  %v4157_v59 = vadd.f32 %v2145_v41, %v536_v3  ;;  %v2147_v4 = vpop.f32.mrb[5].mxu0  ;;  %v2451_v28 = vsub.f32 %v6598_v24, %v2450_v50 }
 0x2e7   : > { %v6624_v46 = vsub.f32 %v4156_v36, %v2251_v9  ;;  %v4158_v42 = vadd.f32 %v2147_v4, %v538_v45  ;;  %v6626_v16 = vpack.c.bf16 %v2251_v9, %v2247_v52  ;;  %v2445_v3 = vsub.f32 %v6600_v15, %v2444_v37 }
 0x2e8   : > { %v2462_v56 = vand.u32 4294901760, %v6618_v62  ;;  %v2257_v40 = vand.u32 4294901760, %v4157_v59  ;;  %v2452_v0 = vand.u32 4294901760, %v2451_v28 }
 0x2e9   : > { %v2456_v48 = vand.u32 4294901760, %v6624_v46  ;;  %v2255_v53 = vand.u32 4294901760, %v4158_v42  ;;  %v2153_v25 = vpop.f32.mrb[6].mxu0  ;;  %4034 = vmatprep.subr.bf16.mxu1 %v6626_v16  ;;  %v2446_v9 = vand.u32 4294901760, %v2445_v3 }
 0x2ea   : > { %v2463_v11 = vsub.f32 %v6618_v62, %v2462_v56  ;;  %v6640_v10 = vsub.f32 %v4157_v59, %v2257_v40  ;;  %v4159_v27 = vadd.f32 %v2153_v25, %v6547_v12  ;;  %v2155_v21 = vpop.f32.mrb[7].mxu0  ;;  %4036 = vmatpush1.bf16.msra.mxu1 %v6616_v49  ;;  %v6644_v14 = vpack.c.bf16 %v2462_v56, %v2450_v50 }
 0x2eb   : > { %v6646_v20 = vsub.f32 %v4158_v42, %v2255_v53  ;;  %v4160_v52 = vadd.f32 %v2155_v21, %v6549_v6  ;;  %v2457_v35 = vsub.f32 %v6624_v46, %v2456_v48  ;;  %v6650_v18 = vpack.c.bf16 %v2456_v48, %v2444_v37 }
 0x2ec   : > { %8041 = vst [vmem:[#allocation120_spill] sm:$0xff] %v6644_v14  ;;  %v2474_v36 = vand.u32 4294901760, %v6640_v10  ;;  %v2261_v51 = vand.u32 4294901760, %v4159_v27  ;;  %v2464_v41 = vand.u32 4294901760, %v2463_v11 }
 0x2ed   : > { %8042 = vst [vmem:[#allocation123_spill] sm:$0xff] %v6650_v18  ;;  %v2468_v12 = vand.u32 4294901760, %v6646_v20  ;;  %v2259_v59 = vand.u32 4294901760, %v4160_v52  ;;  %v2161_v4 = vpop.f32.mrb[8].mxu0  ;;  %v2458_v50 = vand.u32 4294901760, %v2457_v35 }
 0x2ee   : > { %v2475_v34 = vsub.f32 %v6640_v10, %v2474_v36  ;;  %v6655_v42 = vpack.c.bf16 %v2261_v51, %v2257_v40  ;;  %v6657_v6 = vsub.f32 %v4159_v27, %v2261_v51  ;;  %v4161_v37 = vadd.f32 %v2161_v4, %v6551_v55  ;;  %v2163_v56 = vpop.f32.mrb[9].mxu0 }
 0x2ef   : > { %v6660_v28 = vsub.f32 %v4160_v52, %v2259_v59  ;;  %v4162_v48 = vadd.f32 %v2163_v56, %v6553_v29  ;;  %v6663_v3 = vpack.c.bf16 %v2259_v59, %v2255_v53  ;;  %v6665_v25 = vpack.c.bf16 %v2458_v50, %v2446_v9 }
 0x2f0   : > { %8043 = vst [vmem:[#allocation124_spill] sm:$0xff] %v6655_v42  ;;  %v2476_v11 = vand.u32 4294901760, %v2475_v34  ;;  %v2486_v21 = vand.u32 4294901760, %v6657_v6  ;;  %v2265_v35 = vand.u32 4294901760, %v4161_v37  ;;  %v6672_v52 = vpack.c.bf16 %v2464_v41, %v2452_v0 }
 0x2f1   : > { %v2480_v27 = vand.u32 4294901760, %v6660_v28  ;;  %v2263_v51 = vand.u32 4294901760, %v4162_v48  ;;  %v2169_v55 = vpop.f32.mrb[10].mxu0  ;;  %4038 = vmatprep.subr.bf16.mxu1 %v6663_v3  ;;  %v2469_v29 = vsub.f32 %v6646_v20, %v2468_v12 }
 0x2f2   : > { %v2487_v53 = vsub.f32 %v6657_v6, %v2486_v21  ;;  %v6676_v9 = vsub.f32 %v4161_v37, %v2265_v35  ;;  %v4163_v59 = vadd.f32 %v2169_v55, %v6555_v30  ;;  %v2171_v4 = vpop.f32.mrb[11].mxu0  ;;  %4040 = vmatpush1.bf16.msra.mxu1 %v6655_v42  ;;  %v6690_v2 = vpack.c.bf16 %v2486_v21, %v2474_v36 }
 0x2f3   : > { %v6682_v34 = vsub.f32 %v4162_v48, %v2263_v51  ;;  %v4164_v56 = vadd.f32 %v2171_v4, %v6557_v8  ;;  %v2470_v0 = vand.u32 4294901760, %v2469_v29  ;;  %v2481_v41 = vsub.f32 %v6660_v28, %v2480_v27 }
 0x2f4   : > { %v2488_v26 = vand.u32 4294901760, %v2487_v53  ;;  %v2498_v60 = vand.u32 4294901760, %v6676_v9  ;;  %v2269_v37 = vand.u32 4294901760, %v4163_v59  ;;  %v6687_v40 = vpack.c.bf16 %v2480_v27, %v2468_v12  ;;  %8045 = vst [vmem:[#allocation128_spill] sm:$0xff] %v6690_v2 }
 0x2f5   : > { %v2492_v30 = vand.u32 4294901760, %v6682_v34  ;;  %v2267_v55 = vand.u32 4294901760, %v4164_v56  ;;  %v2177_v44 = vpop.f32.mrb[12].mxu0  ;;  %v2482_v45 = vand.u32 4294901760, %v2481_v41 }
 0x2f6   : > { %8044 = vst [vmem:[#allocation126_spill] sm:$0xff] %v6687_v40  ;;  %v2499_v48 = vsub.f32 %v6676_v9, %v2498_v60  ;;  %v6693_v50 = vpack.c.bf16 %v2269_v37, %v2265_v35  ;;  %v6695_v8 = vsub.f32 %v4163_v59, %v2269_v37  ;;  %v4165_v29 = vadd.f32 %v2177_v44, %v6559_v58  ;;  %v2179_v53 = vpop.f32.mrb[13].mxu0 }
 0x2f7   : > { %v6698_v4 = vsub.f32 %v4164_v56, %v2267_v55  ;;  %v4166_v12 = vadd.f32 %v2179_v53, %v6561_v54  ;;  %v6701_v27 = vpack.c.bf16 %v2267_v55, %v2263_v51  ;;  %v6703_v7 = vpack.c.bf16 %v2482_v45, %v2470_v0 }
 0x2f8   : > { %8046 = vst [vmem:[#allocation130_spill] sm:$0xff] %v6693_v50  ;;  %v2500_v41 = vand.u32 4294901760, %v2499_v48  ;;  %v2510_v36 = vand.u32 4294901760, %v6695_v8  ;;  %v2273_v35 = vand.u32 4294901760, %v4165_v29  ;;  %v6710_v44 = vpack.c.bf16 %v2488_v26, %v2476_v11 }
 0x2f9   : > { %8047 = vst [vmem:[#allocation134_spill] sm:$0xff] %v6701_v27  ;;  %v2504_v59 = vand.u32 4294901760, %v6698_v4  ;;  %v2271_v37 = vand.u32 4294901760, %v4166_v12  ;;  %v2185_v58 = vpop.f32.mrb[14].mxu0  ;;  %4042 = vmatprep.subr.bf16.mxu1 %v6701_v27  ;;  %v2493_v54 = vsub.f32 %v6682_v34, %v2492_v30 }
 0x2fa   : > { %v2511_v45 = vsub.f32 %v6695_v8, %v2510_v36  ;;  %v6714_v51 = vsub.f32 %v4165_v29, %v2273_v35  ;;  %v4167_v56 = vadd.f32 %v2185_v58, %v6563_v32  ;;  %v2187_v0 = vpop.f32.mrb[15].mxu0  ;;  %4044 = vmatpush1.bf16.msra.mxu1 %v6693_v50  ;;  %v6728_v50 = vpack.c.bf16 %v2510_v36, %v2498_v60 }
 0x2fb   : > { %v6720_v48 = vsub.f32 %v4166_v12, %v2271_v37  ;;  %v4168_v53 = vadd.f32 %v2187_v0, %v6565_v61  ;;  %v2494_v26 = vand.u32 4294901760, %v2493_v54  ;;  %v2505_v11 = vsub.f32 %v6698_v4, %v2504_v59 }
 0x2fc   : > { %v2512_v21 = vand.u32 4294901760, %v2511_v45  ;;  %v2522_v2 = vand.u32 4294901760, %v6714_v51  ;;  %v2277_v29 = vand.u32 4294901760, %v4167_v56  ;;  %v6725_v40 = vpack.c.bf16 %v2504_v59, %v2492_v30  ;;  %8049 = vst [vmem:[#allocation21_spill] sm:$0xff] %v6728_v50 }
 0x2fd   : > { %v2516_v32 = vand.u32 4294901760, %v6720_v48  ;;  %v2275_v58 = vand.u32 4294901760, %v4168_v53  ;;  %v2193_v14 = vpop.f32.mrb[16].mxu0  ;;  %v2506_v18 = vand.u32 4294901760, %v2505_v11 }
 0x2fe   : > { %8048 = vst [vmem:[#allocation20_spill] sm:$0xff] %v6725_v40  ;;  %v2523_v12 = vsub.f32 %v6714_v51, %v2522_v2  ;;  %v6731_v55 = vpack.c.bf16 %v2277_v29, %v2273_v35  ;;  %v6733_v61 = vsub.f32 %v4167_v56, %v2277_v29  ;;  %v4169_v54 = vadd.f32 %v2193_v14, %v6567_v31  ;;  %v2195_v45 = vpop.f32.mrb[17].mxu0 }
 0x2ff   : > { %v6736_v0 = vsub.f32 %v4168_v53, %v2275_v58  ;;  %v4170_v30 = vadd.f32 %v2195_v45, %v6569_v47  ;;  %v6739_v59 = vpack.c.bf16 %v2275_v58, %v2271_v37  ;;  %v6741_v40 = vpack.c.bf16 %v2506_v18, %v2494_v26 }
 0x300   : > { %8050 = vst [vmem:[#allocation30_spill] sm:$0xff] %v6731_v55  ;;  %v2524_v11 = vand.u32 4294901760, %v2523_v12  ;;  %v2534_v60 = vand.u32 4294901760, %v6733_v61  ;;  %v2281_v35 = vand.u32 4294901760, %v4169_v54  ;;  %v6748_v14 = vpack.c.bf16 %v2512_v21, %v2500_v41 }
 0x301   : > { %8051 = vst [vmem:[#allocation31_spill] sm:$0xff] %v6739_v59  ;;  %v2528_v56 = vand.u32 4294901760, %v6736_v0  ;;  %v2279_v29 = vand.u32 4294901760, %v4170_v30  ;;  %v2201_v31 = vpop.f32.mrb[18].mxu0  ;;  %4046 = vmatprep.subr.bf16.mxu1 %v6739_v59  ;;  %v2517_v47 = vsub.f32 %v6720_v48, %v2516_v32 }
 0x302   : > { %v2535_v18 = vsub.f32 %v6733_v61, %v2534_v60  ;;  %v6752_v37 = vsub.f32 %v4169_v54, %v2281_v35  ;;  %v4171_v53 = vadd.f32 %v2201_v31, %v6571_v5  ;;  %v2203_v26 = vpop.f32.mrb[19].mxu0  ;;  %4048 = vmatpush1.bf16.msra.mxu1 %v6731_v55  ;;  %v6766_v27 = vpack.c.bf16 %v2534_v60, %v2522_v2 }
 0x303   : > { %v6758_v12 = vsub.f32 %v4170_v30, %v2279_v29  ;;  %v4172_v45 = vadd.f32 %v2203_v26, %v6573_v38  ;;  %v2518_v41 = vand.u32 4294901760, %v2517_v47  ;;  %v2529_v21 = vsub.f32 %v6736_v0, %v2528_v56 }
 0x304   : > { %v2536_v36 = vand.u32 4294901760, %v2535_v18  ;;  %v2546_v50 = vand.u32 4294901760, %v6752_v37  ;;  %v2285_v54 = vand.u32 4294901760, %v4171_v53  ;;  %v6763_v59 = vpack.c.bf16 %v2528_v56, %v2516_v32  ;;  %8052 = vst [vmem:[#allocation32_spill] sm:$0xff] %v6766_v27  ;;  %v2211_v18 = vld [vmem:[#allocation5 + $0x28] sm:$0xff] }
 0x305   : > { %v2540_v5 = vand.u32 4294901760, %v6758_v12  ;;  %v2283_v31 = vand.u32 4294901760, %v4172_v45  ;;  %v2530_v55 = vand.u32 4294901760, %v2529_v21  ;;  %v2356_v38 = vand.u32 4294901760, %v6614_v43 }
 0x306   : > { %v6768_v58 = vpack.c.bf16 %v2285_v54, %v2281_v35  ;;  %v6770_v30 = vsub.f32 %v4171_v53, %v2285_v54  ;;  %v6773_v47 = vpack.c.bf16 %v2536_v36, %v2524_v11  ;;  %v6781_v56 = vsub.f32 %v6603_v57, %v6621_v63  ;;  %v2212_v54 = vld [vmem:[#allocation5 + $0x30] sm:$0xff] }
 0x307   : > { %v6775_v26 = vsub.f32 %v4172_v45, %v2283_v31  ;;  %v6777_v42 = vpack.c.bf16 %v2283_v31, %v2279_v29  ;;  %v4065_v32 = vpack.c.bf16 %v2530_v55, %v2518_v41  ;;  %v2547_v2 = vsub.f32 %v6752_v37, %v2546_v50 }
 0x308   : > { %v2558_v60 = vand.u32 4294901760, %v6770_v30  ;;  %v6788_v11 = vand.u32 4294901760, %v6635_v19  ;;  %v2541_v55 = vsub.f32 %v6758_v12, %v2540_v5  ;;  %v2233_v29 = vsel %vm2216_vm0, %v2211_v18, 0 }
 0x309   : > { %v2552_v36 = vand.u32 4294901760, %v6775_v26  ;;  %4050 = vmatprep.subr.bf16.mxu1 %v6777_v42  ;;  %v2347_v41 = vand.u32 4294901760, %v6611_v13  ;;  %v2548_v35 = vand.u32 4294901760, %v2547_v2  ;;  %v2357_v57 = vsub.f32 %v6614_v43, %v2356_v38 }
 0x30a   : > { %v2559_v53 = vsub.f32 %v6770_v30, %v2558_v60  ;;  %4052 = vmatpush1.bf16.msra.mxu1 %v6768_v58  ;;  %v6798_v45 = vpack.c.bf16 %v2558_v60, %v2546_v50  ;;  %v6808_v27 = vand.u32 4294901760, %v2233_v29  ;;  %v8054_v50 = vand.u32 4294901760, %v6593_v22  ;;  %v2213_v22 = vld [vmem:[#allocation5 + $0x38] sm:$0xff] }
 0x30b   : > { %4054 = vmatprep.subr.bf16.mxu1 %v6665_v25  ;;  %v2553_v21 = vsub.f32 %v6775_v26, %v2552_v36  ;;  %v6803_v31 = vpack.c.bf16 %v2552_v36, %v2540_v5  ;;  %v2367_v25 = vand.u32 4294901760, %v6781_v56  ;;  %v2542_v60 = vand.u32 4294901760, %v2541_v55 }
 0x30c   : > { %8053 = vst [vmem:[#allocation33_spill] sm:$0xff] %v6798_v45  ;;  %v2560_v18 = vand.u32 4294901760, %v2559_v53  ;;  %v6815_v45 = vsub.f32 %v6635_v19, %v6788_v11  ;;  %v8055_v5 = vmov 0.0   ;;  %v2236_v36 = vsel %vm2216_vm0, %v2212_v54, 0 }
 0x30d   : > { %2337 = vmatmul.mubr.f32.vlgmr.msra.gmra.mrb[20].mxu1 %v8054_v50  ;;  %v2554_v13 = vand.u32 4294901760, %v2553_v21  ;;  %v6822_v50 = vsub.f32 %v2233_v29, %v6808_v27  ;;  %v2358_v55 = vand.u32 4294901760, %v2357_v57  ;;  %v2368_v19 = vsub.f32 %v6781_v56, %v2367_v25 }
 0x30e   : > { %4056 = vmatpush1.bf16.msra.mxu1 %v6672_v52  ;;  %2342 = vmatprep.mubr.f32.mxu1 %v8055_v5  ;;  %v4071_v2 = vpack.c.bf16 %v2560_v18, %v2548_v35  ;;  %v2378_v52 = vand.u32 4294901760, %v6815_v45  ;;  %v6828_v21 = vand.u32 4294901760, %v2236_v36  ;;  %v2214_v35 = vld [vmem:[#allocation5 + $0x40] sm:$0xff] }
 0x30f   : > { %4058 = vmatprep.subr.bf16.mxu1 %v6703_v7  ;;  %v4069_v53 = vpack.c.bf16 %v2554_v13, %v2542_v60  ;;  %v2239_v7 = vsel %vm2216_vm0, %v2213_v22, 0  ;;  %v2389_v29 = vand.u32 4294901760, %v6822_v50  ;;  %v2369_v57 = vand.u32 4294901760, %v2368_v19 }
 0x310   : > { %v6839_v54 = vsub.f32 %v2236_v36, %v6828_v21  ;;  %v6841_v18 = vand.u32 4294901760, %v2239_v7 }
 0x311   : > { %2348 = vmatmul.mubr.f32.gmra.mrb[22].mxu1 %v2347_v41  ;;  %v2379_v41 = vsub.f32 %v6815_v45, %v2378_v52  ;;  %v2390_v60 = vsub.f32 %v6822_v50, %v2389_v29 }
 0x312   : > { %4060 = vmatpush1.bf16.msra.mxu1 %v6710_v44  ;;  %2353 = vmatprep.mubr.f32.mxu1 %v8055_v5  ;;  %v2215_v44 = vld [vmem:[#allocation5 + $0x48] sm:$0xff]  ;;  %v2400_v22 = vand.u32 4294901760, %v6839_v54  ;;  %v6851_v36 = vsub.f32 %v2239_v7, %v6841_v18 }
 0x313   : > { %4062 = vmatprep.subr.bf16.mxu1 %v6741_v40  ;;  %v2242_v40 = vsel %vm2216_vm0, %v2214_v35, 0  ;;  %v2380_v13 = vand.u32 4294901760, %v2379_v41 }
 0x314   : > { %v2401_v19 = vsub.f32 %v6839_v54, %v2400_v22  ;;  %v2411_v35 = vand.u32 4294901760, %v6851_v36 }
 0x315   : > { %2359 = vmatmul.mubr.f32.gmra.mrb[24].mxu1 %v2358_v55  ;;  %v6853_v55 = vand.u32 4294901760, %v2242_v40 }
 0x316   : > { %4064 = vmatpush1.bf16.msra.mxu1 %v6748_v14  ;;  %2364 = vmatprep.mubr.f32.mxu1 %v8055_v5  ;;  %v2245_v14 = vsel %vm2216_vm0, %v2215_v44, 0  ;;  %v2412_v41 = vsub.f32 %v6851_v36, %v2411_v35 }
 0x317   : > { %4066 = vmatprep.subr.bf16.mxu1 %v4065_v32  ;;  %v2391_v32 = vand.u32 4294901760, %v2390_v60  ;;  %v6863_v7 = vsub.f32 %v2242_v40, %v6853_v55 }
 0x319   : > { %2370 = vmatmul.mubr.f32.gmra.mrb[26].mxu1 %v2369_v57  ;;  %v6865_v57 = vand.u32 4294901760, %v2245_v14  ;;  %v2422_v44 = vand.u32 4294901760, %v6863_v7 }
 0x31a   : > { %4068 = vmatpush1.bf16.msra.mxu1 %v6773_v47  ;;  %2375 = vmatprep.mubr.f32.mxu1 %v8055_v5  ;;  %v8056_v47 = vpack.c.bf16 %v6624_v46, %v6600_v15 }
 0x31b   : > { %4070 = vmatprep.subr.bf16.mxu1 %v4069_v53  ;;  %v2402_v53 = vand.u32 4294901760, %v2401_v19  ;;  %v6876_v40 = vsub.f32 %v2245_v14, %v6865_v57  ;;  %v2423_v15 = vsub.f32 %v6863_v7, %v2422_v44  ;;  %v8058_v19 = vpack.c.bf16 %v6660_v28, %v6646_v20  ;;  %v8066_v28 = vld [vmem:[#allocation124_spill] sm:$0xff] }
 0x31c   : > { %v8064_v20 = vpack.c.bf16 %v6775_v26, %v6758_v12  ;;  %v8076_v12 = vld [vmem:[#allocation128_spill] sm:$0xff] }
 0x31d   : > { %2381 = vmatmul.mubr.f32.gmra.mrb[28].mxu1 %v2380_v13  ;;  %v2433_v46 = vand.u32 4294901760, %v6876_v40  ;;  %v2424_v60 = vand.u32 4294901760, %v2423_v15 }
 0x31e   : > { %4072 = vmatpush1.bf16.msra.mxu1 %v4071_v2  ;;  %2386 = vmatprep.mubr.f32.mxu1 %v8055_v5  ;;  %v2413_v2 = vand.u32 4294901760, %v2412_v41 }
 0x31f   : > { %4074 = vmatprep.subr.bf16.mxu1 %v8056_v47  ;;  %v2434_v13 = vsub.f32 %v6876_v40, %v2433_v46  ;;  %v8059_v47 = vpack.c.bf16 %v6657_v6, %v6640_v10  ;;  %v8063_v10 = vpack.c.bf16 %v6733_v61, %v6714_v51  ;;  %v8065_v6 = vpack.c.bf16 %v6770_v30, %v6752_v37  ;;  %v8071_v51 = vld [vmem:[#allocation123_spill] sm:$0xff]  ;;  %v8073_v61 = vld [vmem:[#allocation120_spill] sm:$0xff] }
 0x320   : > { %v8075_v37 = vand.u32 4294901760, %v6587_v33  ;;  %v8077_v30 = vld [vmem:[#allocation20_spill] sm:$0xff] }
 0x321   : > { %2392 = vmatmul.mubr.f32.gmra.mrb[30].mxu1 %v2391_v32  ;;  %v2435_v14 = vand.u32 4294901760, %v2434_v13  ;;  %v8057_v32 = vpack.c.bf16 %v6618_v62, %v6598_v24  ;;  %v8061_v24 = vpack.c.bf16 %v6695_v8, %v6676_v9  ;;  %v8062_v62 = vpack.c.bf16 %v6736_v0, %v6720_v48  ;;  %v8067_v9 = vld [vmem:[#allocation134_spill] sm:$0xff]  ;;  %v8069_v8 = vld [vmem:[#allocation31_spill] sm:$0xff] }
 0x322   : > { %2397 = vmatprep.mubr.f32.mxu1 %v8055_v5  ;;  %v8072_v48 = vand.u32 4294901760, %v6581_v17  ;;  %v8074_v0 = vld [vmem:[#allocation126_spill] sm:$0xff] }
 0x325   : > { %2403 = vmatmul.mubr.f32.gmra.mrb[32].mxu1 %v2402_v53  ;;  %v8060_v53 = vpack.c.bf16 %v6698_v4, %v6682_v34  ;;  %v8068_v34 = vld [vmem:[#allocation130_spill] sm:$0xff] }
 0x326   : > { %2408 = vmatprep.mubr.f32.mxu1 %v8055_v5  ;;  %v8070_v4 = vld [vmem:[#allocation30_spill] sm:$0xff] }
 0x329   : > { %2414 = vmatmul.mubr.f32.gmra.mrb[34].mxu1 %v2413_v2 }
 0x32a   : > { %2419 = vmatprep.mubr.f32.mxu1 %v8055_v5 }
 0x32d   : > { %2425 = vmatmul.mubr.f32.gmra.mrb[36].mxu1 %v2424_v60 }
 0x32e   : > { %2430 = vmatprep.mubr.f32.mxu1 %v8055_v5 }
 0x331   : > { %2436 = vmatmul.mubr.f32.gmra.mrb[38].mxu1 %v2435_v14 }
 0x332   : > { %2606 = vmatprep.mubr.f32.mxu1 %v8055_v5 }
 0x335   : > { %2608 = vmatmul.mubr.f32.vlgmr.msra.gmra.mrb[20].mxu1 %v6577_v39 }
 0x336   : > { %4076 = vmatpush1.bf16.msra.mxu1 %v8057_v32  ;;  %2613 = vmatprep.mubr.f32.mxu1 %v8055_v5 }
 0x337   : > { %4078 = vmatprep.subr.bf16.mxu1 %v8058_v19 }
 0x339   : > { %2615 = vmatmul.mubr.f32.gmra.mrb[22].mxu1 %v6583_v1 }
 0x33a   : > { %4080 = vmatpush1.bf16.msra.mxu1 %v8059_v47  ;;  %2620 = vmatprep.mubr.f32.mxu1 %v8055_v5 }
 0x33b   : > { %4082 = vmatprep.subr.bf16.mxu1 %v8060_v53 }
 0x33d   : > { %2622 = vmatmul.mubr.f32.gmra.mrb[24].mxu1 %v6596_v23 }
 0x33e   : > { %4084 = vmatpush1.bf16.msra.mxu1 %v8061_v24  ;;  %2627 = vmatprep.mubr.f32.mxu1 %v8055_v5 }
 0x33f   : > { %4086 = vmatprep.subr.bf16.mxu1 %v8062_v62 }
 0x341   : > { %2629 = vmatmul.mubr.f32.gmra.mrb[26].mxu1 %v6621_v63 }
 0x342   : > { %4088 = vmatpush1.bf16.msra.mxu1 %v8063_v10  ;;  %2634 = vmatprep.mubr.f32.mxu1 %v8055_v5 }
 0x343   : > { %4090 = vmatprep.subr.bf16.mxu1 %v8064_v20 }
 0x345   : > { %2636 = vmatmul.mubr.f32.gmra.mrb[28].mxu1 %v6788_v11 }
 0x346   : > { %4092 = vmatpush1.bf16.msra.mxu1 %v8065_v6  ;;  %2641 = vmatprep.mubr.f32.mxu1 %v8055_v5 }
 0x347   : > { %4094 = vmatprep.subr.bf16.mxu1 %v6626_v16 }
 0x349   : > { %2643 = vmatmul.mubr.f32.gmra.mrb[30].mxu1 %v6808_v27 }
 0x34a   : > { %2648 = vmatprep.mubr.f32.mxu1 %v8055_v5 }
 0x34d   : > { %2650 = vmatmul.mubr.f32.gmra.mrb[32].mxu1 %v6828_v21 }
 0x34e   : > { %2655 = vmatprep.mubr.f32.mxu1 %v8055_v5 }
 0x351   : > { %2657 = vmatmul.mubr.f32.gmra.mrb[34].mxu1 %v6841_v18 }
 0x352   : > { %2662 = vmatprep.mubr.f32.mxu1 %v8055_v5 }
 0x355   : > { %2664 = vmatmul.mubr.f32.gmra.mrb[36].mxu1 %v6853_v55 }
 0x356   : > { %2669 = vmatprep.mubr.f32.mxu1 %v8055_v5 }
 0x359   : > { %2671 = vmatmul.mubr.f32.gmra.mrb[38].mxu1 %v6865_v57 }
 0x35a   : > { %2781 = vmatprep.mubr.f32.mxu1 %v8055_v5 }
 0x35d   : > { %2784 = vmatmul.mubr.f32.vlgmr.msra.gmra.mrb[20].mxu1 %v6581_v17  ;;  %v8078_v17 = vld [vmem:[#allocation21_spill] sm:$0xff] }
 0x35e   : > { %4096 = vmatpush1.bf16.msra.mxu1 %v6616_v49  ;;  %2789 = vmatprep.mubr.f32.mxu1 %v8055_v5 }
 0x35f   : > { %4098 = vmatprep.subr.bf16.mxu1 %v6663_v3 }
 0x361   : > { %2792 = vmatmul.mubr.f32.gmra.mrb[22].mxu1 %v6587_v33  ;;  %v8079_v33 = vld [vmem:[#allocation32_spill] sm:$0xff] }
 0x362   : > { %4100 = vmatpush1.bf16.msra.mxu1 %v8066_v28  ;;  %2797 = vmatprep.mubr.f32.mxu1 %v8055_v5 }
 0x363   : > { %4102 = vmatprep.subr.bf16.mxu1 %v8067_v9 }
 0x365   : > { %2800 = vmatmul.mubr.f32.gmra.mrb[24].mxu1 %v6614_v43  ;;  %v8080_v43 = vld [vmem:[#allocation33_spill] sm:$0xff] }
 0x366   : > { %4104 = vmatpush1.bf16.msra.mxu1 %v8068_v34  ;;  %2805 = vmatprep.mubr.f32.mxu1 %v8055_v5 }
 0x367   : > { %4106 = vmatprep.subr.bf16.mxu1 %v8069_v8 }
 0x369   : > { %2808 = vmatmul.mubr.f32.gmra.mrb[26].mxu1 %v6781_v56 }
 0x36a   : > { %4108 = vmatpush1.bf16.msra.mxu1 %v8070_v4  ;;  %2813 = vmatprep.mubr.f32.mxu1 %v8055_v5 }
 0x36b   : > { %4110 = vmatprep.subr.bf16.mxu1 %v6777_v42 }
 0x36d   : > { %2816 = vmatmul.mubr.f32.gmra.mrb[28].mxu1 %v6815_v45 }
 0x36e   : > { %4112 = vmatpush1.bf16.msra.mxu1 %v6768_v58  ;;  %2821 = vmatprep.mubr.f32.mxu1 %v8055_v5 }
 0x36f   : > { %4114 = vmatprep.subr.bf16.mxu1 %v8071_v51 }
 0x371   : > { %2824 = vmatmul.mubr.f32.gmra.mrb[30].mxu1 %v6822_v50 }
 0x372   : > { %2829 = vmatprep.mubr.f32.mxu1 %v8055_v5 }
 0x375   : > { %2832 = vmatmul.mubr.f32.gmra.mrb[32].mxu1 %v6839_v54 }
 0x376   : > { %2837 = vmatprep.mubr.f32.mxu1 %v8055_v5 }
 0x379   : > { %2840 = vmatmul.mubr.f32.gmra.mrb[34].mxu1 %v6851_v36 }
 0x37a   : > { %2845 = vmatprep.mubr.f32.mxu1 %v8055_v5 }
 0x37d   : > { %2848 = vmatmul.mubr.f32.gmra.mrb[36].mxu1 %v6863_v7 }
 0x37e   : > { %2853 = vmatprep.mubr.f32.mxu1 %v8055_v5 }
 0x381   : > { %2856 = vmatmul.mubr.f32.gmra.mrb[38].mxu1 %v6876_v40 }
 0x382   : > { %2946 = vmatprep.mubr.f32.mxu1 %v8055_v5 }
 0x385   : > { %2950 = vmatmul.mubr.f32.vlgmr.msra.gmra.mrb[20].mxu1 %v8072_v48 }
 0x386   : > { %4116 = vmatpush1.bf16.msra.mxu1 %v8073_v61  ;;  %2955 = vmatprep.mubr.f32.mxu1 %v8055_v5 }
 0x387   : > { %4118 = vmatprep.subr.bf16.mxu1 %v8074_v0 }
 0x389   : > { %2959 = vmatmul.mubr.f32.gmra.mrb[22].mxu1 %v8075_v37 }
 0x38a   : > { %4120 = vmatpush1.bf16.msra.mxu1 %v8076_v12  ;;  %2964 = vmatprep.mubr.f32.mxu1 %v8055_v5 }
 0x38b   : > { %4122 = vmatprep.subr.bf16.mxu1 %v8077_v30 }
 0x38d   : > { %2968 = vmatmul.mubr.f32.gmra.mrb[24].mxu1 %v2356_v38 }
 0x38e   : > { %4124 = vmatpush1.bf16.msra.mxu1 %v8078_v17  ;;  %2973 = vmatprep.mubr.f32.mxu1 %v8055_v5 }
 0x38f   : > { %4126 = vmatprep.subr.bf16.mxu1 %v6763_v59 }
 0x391   : > { %2977 = vmatmul.mubr.f32.gmra.mrb[26].mxu1 %v2367_v25 }
 0x392   : > { %4128 = vmatpush1.bf16.msra.mxu1 %v8079_v33  ;;  %2982 = vmatprep.mubr.f32.mxu1 %v8055_v5 }
 0x393   : > { %4130 = vmatprep.subr.bf16.mxu1 %v6803_v31 }
 0x395   : > { %2986 = vmatmul.mubr.f32.gmra.mrb[28].mxu1 %v2378_v52 }
 0x396   : > { %4132 = vmatpush1.bf16.msra.mxu1 %v8080_v43  ;;  %2991 = vmatprep.mubr.f32.mxu1 %v8055_v5 }
 0x397   : > { %4134 = vmatprep.subr.bf16.mxu1 %v6626_v16 }
 0x399   : > { %2995 = vmatmul.mubr.f32.gmra.mrb[30].mxu1 %v2389_v29 }
 0x39a   : > { %3000 = vmatprep.mubr.f32.mxu1 %v8055_v5 }
 0x39d   : > { %3004 = vmatmul.mubr.f32.gmra.mrb[32].mxu1 %v2400_v22 }
 0x39e   : > { %3009 = vmatprep.mubr.f32.mxu1 %v8055_v5 }
 0x3a1   : > { %3013 = vmatmul.mubr.f32.gmra.mrb[34].mxu1 %v2411_v35 }
 0x3a2   : > { %3018 = vmatprep.mubr.f32.mxu1 %v8055_v5 }
 0x3a5   : > { %3022 = vmatmul.mubr.f32.gmra.mrb[36].mxu1 %v2422_v44 }
 0x3a6   : > { %3027 = vmatprep.mubr.f32.mxu1 %v8055_v5 }
 0x3a9   : > { %3031 = vmatmul.mubr.f32.gmra.mrb[38].mxu1 %v2433_v46 }
 0x3aa   : > { %3161 = vmatprep.mubr.f32.mxu1 %v8055_v5 }
 0x3ad   : > { %3163 = vmatmul.mubr.f32.vlgmr.msra.gmra.mrb[20].mxu1 %v6577_v39 }
 0x3ae   : > { %4136 = vmatpush1.bf16.msra.mxu1 %v6616_v49  ;;  %3168 = vmatprep.mubr.f32.mxu1 %v8055_v5 }
 0x3af   : > { %4138 = vmatprep.subr.bf16.mxu1 %v6663_v3 }
 0x3b1   : > { %3170 = vmatmul.mubr.f32.gmra.mrb[22].mxu1 %v6583_v1 }
 0x3b2   : > { %4140 = vmatpush1.bf16.msra.mxu1 %v8066_v28  ;;  %3175 = vmatprep.mubr.f32.mxu1 %v8055_v5 }
 0x3b3   : > { %4142 = vmatprep.subr.bf16.mxu1 %v8067_v9 }
 0x3b5   : > { %3177 = vmatmul.mubr.f32.gmra.mrb[24].mxu1 %v6596_v23 }
 0x3b6   : > { %4144 = vmatpush1.bf16.msra.mxu1 %v8068_v34  ;;  %3182 = vmatprep.mubr.f32.mxu1 %v8055_v5 }
 0x3b7   : > { %4146 = vmatprep.subr.bf16.mxu1 %v8069_v8 }
 0x3b9   : > { %3184 = vmatmul.mubr.f32.gmra.mrb[26].mxu1 %v6621_v63 }
 0x3ba   : > { %4148 = vmatpush1.bf16.msra.mxu1 %v8070_v4  ;;  %3189 = vmatprep.mubr.f32.mxu1 %v8055_v5 }
 0x3bb   : > { %4150 = vmatprep.subr.bf16.mxu1 %v6777_v42 }
 0x3bd   : > { %3191 = vmatmul.mubr.f32.gmra.mrb[28].mxu1 %v6788_v11 }
 0x3be   : > { %4152 = vmatpush1.bf16.msra.mxu1 %v6768_v58  ;;  %3196 = vmatprep.mubr.f32.mxu1 %v8055_v5 }
 0x3c1   : > { %3198 = vmatmul.mubr.f32.gmra.mrb[30].mxu1 %v6808_v27 }
 0x3c2   : > { %3203 = vmatprep.mubr.f32.mxu1 %v8055_v5 }
 0x3c5   : > { %3205 = vmatmul.mubr.f32.gmra.mrb[32].mxu1 %v6828_v21 }
 0x3c6   : > { %3210 = vmatprep.mubr.f32.mxu1 %v8055_v5 }
 0x3c9   : > { %3212 = vmatmul.mubr.f32.gmra.mrb[34].mxu1 %v6841_v18 }
 0x3ca   : > { %3217 = vmatprep.mubr.f32.mxu1 %v8055_v5 }
 0x3cd   : > { %3219 = vmatmul.mubr.f32.gmra.mrb[36].mxu1 %v6853_v55 }
 0x3ce   : > { %3224 = vmatprep.mubr.f32.mxu1 %v8055_v5 }
 0x3d1   : > { %3226 = vmatmul.mubr.f32.gmra.mrb[38].mxu1 %v6865_v57 }
 0x3d2   : > { %3316 = vmatprep.mubr.f32.mxu1 %v8055_v5 }
 0x3d5   : > { %3318 = vmatmul.mubr.f32.vlgmr.msra.gmra.mrb[20].mxu1 %v6577_v39 }
 0x3d6   : > { %3323 = vmatprep.mubr.f32.mxu1 %v8055_v5 }
 0x3d9   : > { %3325 = vmatmul.mubr.f32.gmra.mrb[22].mxu1 %v6583_v1 }
 0x3da   : > { %3330 = vmatprep.mubr.f32.mxu1 %v8055_v5 }
 0x3dd   : > { %3332 = vmatmul.mubr.f32.gmra.mrb[24].mxu1 %v6596_v23 }
 0x3de   : > { %3337 = vmatprep.mubr.f32.mxu1 %v8055_v5 }
 0x3e1   : > { %3339 = vmatmul.mubr.f32.gmra.mrb[26].mxu1 %v6621_v63 }
 0x3e2   : > { %3344 = vmatprep.mubr.f32.mxu1 %v8055_v5 }
 0x3e5   : > { %3346 = vmatmul.mubr.f32.gmra.mrb[28].mxu1 %v6788_v11 }
 0x3e6   : > { %3351 = vmatprep.mubr.f32.mxu1 %v8055_v5 }
 0x3e9   : > { %3353 = vmatmul.mubr.f32.gmra.mrb[30].mxu1 %v6808_v27 }
 0x3ea   : > { %3358 = vmatprep.mubr.f32.mxu1 %v8055_v5 }
 0x3ed   : > { %3360 = vmatmul.mubr.f32.gmra.mrb[32].mxu1 %v6828_v21 }
 0x3ee   : > { %3365 = vmatprep.mubr.f32.mxu1 %v8055_v5 }
 0x3f1   : > { %3367 = vmatmul.mubr.f32.gmra.mrb[34].mxu1 %v6841_v18 }
 0x3f2   : > { %3372 = vmatprep.mubr.f32.mxu1 %v8055_v5 }
 0x3f5   : > { %3374 = vmatmul.mubr.f32.gmra.mrb[36].mxu1 %v6853_v55 }
 0x3f6   : > { %3379 = vmatprep.mubr.f32.mxu1 %v8055_v5 }
 0x3f9   : > { %3381 = vmatmul.mubr.f32.gmra.mrb[38].mxu1 %v6865_v57 }
 0x4a8   : > { %v3319_v39 = vpop.f32.mrb[20].mxu1 }
 0x4a9   : > { %v3321_v1 = vpop.f32.mrb[21].mxu1  ;;  %v3411_v63 = vmul.f32 2.0, %v3319_v39  ;;  %v3387_v59 = vmul.f32 %v3319_v39, %v3319_v39 }
 0x4aa   : > { %v3412_v16 = vmul.f32 2.0, %v3321_v1  ;;  %v3388_v56 = vmul.f32 %v3321_v1, %v3321_v1 }
 0x4ac   : > { %v3326_v23 = vpop.f32.mrb[22].mxu1 }
 0x4ad   : > { %v3328_v49 = vpop.f32.mrb[23].mxu1  ;;  %v3413_v31 = vmul.f32 2.0, %v3326_v23  ;;  %v3389_v54 = vmul.f32 %v3326_v23, %v3326_v23 }
 0x4ae   : > { %v3414_v5 = vmul.f32 2.0, %v3328_v49  ;;  %v3390_v55 = vmul.f32 %v3328_v49, %v3328_v49 }
 0x4b0   : > { %v3333_v42 = vpop.f32.mrb[24].mxu1 }
 0x4b1   : > { %v7056_v3 = vmul.f32 %v3411_v63, %v3333_v42  ;;  %v3335_v27 = vpop.f32.mrb[25].mxu1  ;;  %v3395_v58 = vmul.f32 %v3333_v42, %v3333_v42  ;;  %v3403_v38 = vmul.f32 %v3333_v42, %v3319_v39 }
 0x4b2   : > { %v7058_v26 = vmul.f32 %v3412_v16, %v3335_v27  ;;  %v3396_v11 = vmul.f32 %v3335_v27, %v3335_v27  ;;  %v3404_v45 = vmul.f32 %v3335_v27, %v3321_v1 }
 0x4b3   : > { %v3435_v25 = vadd.f32 %v3395_v58, %v3387_v59  ;;  %v3419_v27 = vadd.f32 0.0001, %v7056_v3 }
 0x4b4   : > { %v3340_v50 = vpop.f32.mrb[26].mxu1  ;;  %v3436_v52 = vadd.f32 %v3396_v11, %v3388_v56 }
 0x4b5   : > { %v7060_v21 = vmul.f32 %v3413_v31, %v3340_v50  ;;  %v3342_v29 = vpop.f32.mrb[27].mxu1  ;;  %v3397_v18 = vmul.f32 %v3340_v50, %v3340_v50  ;;  %v3405_v22 = vmul.f32 %v3340_v50, %v3326_v23  ;;  %v3439_v20 = vadd.f32 0.0001, %v3435_v25 }
 0x4b6   : > { %v3418_v36 = vmul.f32 %v3414_v5, %v3342_v29  ;;  %v3398_v35 = vmul.f32 %v3342_v29, %v3342_v29  ;;  %v3406_v7 = vmul.f32 %v3342_v29, %v3328_v49  ;;  %v3440_v34 = vadd.f32 0.0001, %v3436_v52 }
 0x4b7   : > { %v3437_v57 = vadd.f32 %v3397_v18, %v3389_v54  ;;  %v3421_v52 = vadd.f32 0.0001, %v7060_v21 }
 0x4b8   : > { %v3347_v41 = vpop.f32.mrb[28].mxu1  ;;  %v3438_v44 = vadd.f32 %v3398_v35, %v3390_v55 }
 0x4b9   : > { %v3391_v40 = vsub.f32 %v3347_v41, %v3387_v59  ;;  %v3349_v2 = vpop.f32.mrb[29].mxu1  ;;  %v3441_v12 = vadd.f32 0.0001, %v3437_v57 }
 0x4ba   : > { %v3392_v15 = vsub.f32 %v3349_v2, %v3388_v56  ;;  %v3442_v43 = vadd.f32 0.0001, %v3438_v44 }
 0x4bc   : > { %v3354_v46 = vpop.f32.mrb[30].mxu1 }
 0x4bd   : > { %v3393_v60 = vsub.f32 %v3354_v46, %v3389_v54  ;;  %v3356_v13 = vpop.f32.mrb[31].mxu1  ;;  %v3422_v54 = vadd.f32 0.0001, %v3418_v36 }
 0x4be   : > { %v3394_v14 = vsub.f32 %v3356_v13, %v3390_v55 }
 0x4c0   : > { %v3361_v32 = vpop.f32.mrb[32].mxu1 }
 0x4c1   : > { %v3399_v19 = vsub.f32 %v3361_v32, %v3395_v58  ;;  %v3363_v47 = vpop.f32.mrb[33].mxu1  ;;  %v3483_v32 = vlaneseq }
 0x4c2   : > { %v3400_v53 = vsub.f32 %v3363_v47, %v3396_v11  ;;  %v3420_v11 = vadd.f32 0.0001, %v7058_v26 }
 0x4c3   : > { %v3443_v24 = vadd.f32 %v3399_v19, %v3391_v40  ;;  %vm3497_vm1 = vcmp.lt.s32.totalorder %v3483_v32, 256 }
 0x4c4   : > { %v3444_v62 = vadd.f32 %v3400_v53, %v3392_v15  ;;  %v3368_v10 = vpop.f32.mrb[34].mxu1 }
 0x4c5   : > { %v3447_v6 = vadd.f32 0.0009, %v3443_v24  ;;  %v3401_v28 = vsub.f32 %v3368_v10, %v3397_v18  ;;  %v3370_v9 = vpop.f32.mrb[35].mxu1  ;;  %v3484_v10 = vshrl.u32 %v3483_v32, 7 }
 0x4c6   : > { %v3448_v8 = vadd.f32 0.0009, %v3444_v62  ;;  %v3402_v4 = vsub.f32 %v3370_v9, %v3398_v35 }
 0x4c7   : > { %v3451_v51 = vmul.f32 %v3447_v6, %v3439_v20  ;;  %v3445_v48 = vadd.f32 %v3401_v28, %v3393_v60 }
 0x4c8   : > { %v3452_v61 = vmul.f32 %v3448_v8, %v3440_v34  ;;  %v3446_v0 = vadd.f32 %v3402_v4, %v3394_v14  ;;  %v3375_v37 = vpop.f32.mrb[36].mxu1  ;;  %v4640_v14 = vmov 1966171168  }
 0x4c9   : > { %4431 = vrcp.f32 %v3451_v51  ;;  %v3449_v30 = vadd.f32 0.0009, %v3445_v48  ;;  %v3407_v17 = vsub.f32 %v3375_v37, %v3403_v38  ;;  %v3377_v33 = vpop.f32.mrb[37].mxu1  ;;  %v3481_v36 = vunpack.c.l.s4 %v4640_v14 }
 0x4ca   : > { %4433 = vrcp.f32 %v3452_v61  ;;  %v3450_v39 = vadd.f32 0.0009, %v3446_v0  ;;  %v3408_v1 = vsub.f32 %v3377_v33, %v3404_v45 }
 0x4cb   : > { %v3453_v23 = vmul.f32 %v3449_v30, %v3441_v12  ;;  %v3423_v49 = vmul.f32 2.0, %v3407_v17  ;;  %v3482_v62 = vunpack.c.0.s8 %v3481_v36 }
 0x4cc   : > { %v3454_v63 = vmul.f32 %v3450_v39, %v3442_v43  ;;  %v3424_v16 = vmul.f32 2.0, %v3408_v1  ;;  %v3382_v42 = vpop.f32.mrb[38].mxu1 }
 0x4cd   : > { %4435 = vrcp.f32 %v3453_v23  ;;  %v3427_v59 = vadd.f32 0.0009, %v3423_v49  ;;  %v3409_v58 = vsub.f32 %v3382_v42, %v3405_v22  ;;  %v3384_v56 = vpop.f32.mrb[39].mxu1  ;;  %v3485_v34 = vsub.s32 %v3482_v62, %v3484_v10 }
 0x4ce   : > { %4437 = vrcp.f32 %v3454_v63  ;;  %v3428_v38 = vadd.f32 0.0009, %v3424_v16  ;;  %v3410_v31 = vsub.f32 %v3384_v56, %v3406_v7 }
 0x4cf   : > { %v3431_v25 = vmul.f32 %v3427_v59, %v3419_v27  ;;  %v3425_v5 = vmul.f32 2.0, %v3409_v58 }
 0x4d0   : > { %v3432_v50 = vmul.f32 %v3428_v38, %v3420_v11  ;;  %v3426_v45 = vmul.f32 2.0, %v3410_v31 }
 0x4d1   : > { %v3429_v29 = vadd.f32 0.0009, %v3425_v5 }
 0x4d2   : > { %v3430_v18 = vadd.f32 0.0009, %v3426_v45 }
 0x4d3   : > { %v4432_v55 = vpop.eup %4431  ;;  %v3433_v3 = vmul.f32 %v3429_v29, %v3421_v52 }
 0x4d4   : > { %v4434_v35 = vpop.eup %4433  ;;  %v3456_v57 = vmul.f32 %v4432_v55, %v3431_v25  ;;  %v3434_v22 = vmul.f32 %v3430_v18, %v3422_v54 }
 0x4d5   : > { %v3458_v41 = vmul.f32 %v4434_v35, %v3432_v50 }
 0x4d7   : > { %v4436_v44 = vpop.eup %4435 }
 0x4d8   : > { %v4438_v26 = vpop.eup %4437  ;;  %v3460_v40 = vmul.f32 %v4436_v44, %v3433_v3 }
 0x4d9   : > { %v3462_v2 = vmul.f32 %v4438_v26, %v3434_v22 }
 0x4da   : > { %v3463_v7 = vadd.f32 %v3460_v40, %v3456_v57 }
 0x4db   : > { %v3470_v15 = vadd.f32 %v3462_v2, %v3458_v41 }
 0x4dc   : > { %v3464_v46 = vrot.slane %v3463_v7, 4 }
 0x4dd   : > { %v3471_v60 = vrot.slane %v3470_v15, 4 }
 0x4de   : > { %v3465_v13 = vadd.f32 %v3464_v46, %v3463_v7 }
 0x4df   : > { %v3472_v21 = vadd.f32 %v3471_v60, %v3470_v15 }
 0x4e0   : > { %v3466_v19 = vrot.slane %v3465_v13, 2 }
 0x4e1   : > { %v3473_v47 = vrot.slane %v3472_v21, 2 }
 0x4e2   : > { %v3467_v53 = vadd.f32 %v3466_v19, %v3465_v13 }
 0x4e3   : > { %v3474_v24 = vadd.f32 %v3473_v47, %v3472_v21 }
 0x4e4   : > { %v3468_v20 = vrot.slane %v3467_v53, 1 }
 0x4e5   : > { %v3475_v6 = vrot.slane %v3474_v24, 1 }
 0x4e6   : > { %v3469_v28 = vadd.f32 %v3468_v20, %v3467_v53 }
 0x4e7   : > { %v3476_v9 = vadd.f32 %v3475_v6, %v3474_v24 }
 0x4e9   : > { %v3479_v8 = vcombine.low %v3469_v28, %v3476_v9 }
 0x4eb   : > { %v3486_v4 = vrot.slane %v3479_v8, %v3485_v34 }
 0x4ed   : > { %v3493_v51 = vrot.slane %v3486_v4, %v3485_v34 }
 0x4ef   : > { %3499 = vst.msk [vmem:[%s279_s20] sm:$0x3] %vm3497_vm1, %v3493_v51 }
 0x4f0   : > { %4568 = shalt.err (!%p4565_p4)
}
 0x4f1   : > { %s4569_s25 = scalar_lea.hbm %s7070_s0, 32  ;;  %s4573_s30 = scalar_lea.hbm %s7118_s4, 64 }
 0x4f2   : > { %p4570_p2 = scmp.ne.s32.totalorder %s7070_s0, %s4569_s25  ;;  %p4574_p13 = scmp.lt.u32.totalorder %s7070_s0, %s7118_s4 }
 0x4f3   : > { %p4575_p3 = scmp.lt.u32.totalorder %s4573_s30, %s4569_s25  ;;  %p4577_p7 = scmp.lt.u32.totalorder %s4569_s25, %s7070_s0 }
 0x4f4   : > { %p4571_p6 = pnand %p4570_p2, %p8081_p9 }
 0x4f5   : > { %p4576_p12 = por %p4575_p3, %p4574_p13 }
 0x4f6   : > { %p4572_p5 = pneg %p4571_p6 }
 0x4f7   : > { %p4578_p0 = por %p4577_p7, %p4576_p12 }
 0x4f9   : > { %p4579_p11 = pnand %p4578_p0, %p4572_p5 }
 0x4fb   : > { %4582 = shalt.err (!%p4579_p11)
}
 0x4fc   : > { %4365 = dma.vmem_to_hbm [thread:$0]  (%p8081_p9), %s7072_s6, 32, %s7070_s0, %s3501_s2  }
 0x4fd PF: > { %s3527_s7 = sand.u32 1, %s4617_s15   ;;  %p8082_p8 = scmp.ne.s32.totalorder %s7457_s28, 0 }
 0x4fe   : > { %p8083_p10 = scmp.ge.s32.totalorder %s4629_s18, 2  ;;  %s3528_s26 = scalar_lea.sflag [#allocation4], %s3527_s7 }
 0x500   : > { %p4382_p1 = pnand %p8083_p10, %p8082_p8 }
 0x502   : > { %4612 = dma.done.wait (!%p4382_p1), %s3528_s26, 32  }
 0x503   : > { %4614 = vsyncadd (!%p4382_p1), %s3528_s26, 4294967264  ;;  %p16_p4 = scmp.ge.s32.totalorder %s4692_s21, 4   ;;  %s8084_s15 = smov %s4621_s16 }
 0x504   : > { %s8085_s16 = smov %s4625_s17  ;;  %s8086_s17 = smov %s4704_s24 }
 0x505   : > { %s8087_s18 = smov %s4692_s21  ;;  %18 = sbr.rel (!%p16_p4) target bundleno = 8 (0x8), region = 99 }
 0x50c   :  { %3533 = vsyncpa [#allocation3], 1 }
 0x50d   :  { %3535 = vsyncpa [#allocation3 + $0x1], 1 }
 0x50e   :  { %3536 = vsyncpa [#allocation6], 1 }
 0x50f   :  { %3537 = vsyncpa [#allocation4], 1 }
 0x510   :  { %3539 = vsyncpa [#allocation4 + $0x1], 1 }

</bundles_post_ra>
